<compile_context>
chip_gen: v6e
topology: v6e:2x2x1
jax: 0.10.0
libtpu: 0.0.40
codegen_flags: <defaults>
</compile_context>

<pallas_src>
import functools

import jax
import jax.numpy as jnp
import numpy as np
from jax.experimental import pallas as pl
from jax.experimental.pallas import tpu as pltpu


def _stft_mse_kernel(K, TM, m_real, eps, inv_count,
                     fx_ref, fy_ref, wt_ref, out_ref, acc_ref):
    """Per-tile: 2 fused windowed-DFT matmuls, magnitudes, masked SSE accumulate."""
    i = pl.program_id(0)

    @pl.when(i == 0)
    def _():
        acc_ref[0, 0] = 0.0

    wt = wt_ref[...]                                                   # (2K, n_fft)
    zx = jnp.dot(wt, fx_ref[...], preferred_element_type=jnp.float32)  # (2K, TM)
    zy = jnp.dot(wt, fy_ref[...], preferred_element_type=jnp.float32)  # (2K, TM)

    re_x, im_x = zx[:K, :], zx[K:, :]
    re_y, im_y = zy[:K, :], zy[K:, :]
    re_s, im_s = re_x + re_y, im_x + im_y        # STFT(x + y) via linearity

    def mag(re, im):
        return jnp.sqrt(jnp.maximum(re * re + im * im, eps))

    diff = (mag(re_x, im_x) + mag(re_y, im_y)) - mag(re_s, im_s)       # (K, TM)

    # Mask columns corresponding to zero-padded (non-existent) frames so they
    # do not contribute sqrt(eps) residuals to the sum.
    col = jax.lax.broadcasted_iota(jnp.int32, (K, TM), 1) + i * TM
    diff = jnp.where(col < m_real, diff, 0.0)

    acc_ref[0, 0] += jnp.sum(diff * diff)

    @pl.when(i == pl.num_programs(0) - 1)
    def _():
        out_ref[0, 0] = acc_ref[0, 0] * inv_count


def _frames_T(sig_2d, fft_size, hop_size, m_pad):
    """torch.stft framing (center=True -> reflect pad fft_size//2 each side),
    transposed to (n_fft, M) so the frame index lands on the lane axis,
    zero-padded along frames to m_pad."""
    pad = fft_size // 2
    sp = jnp.pad(sig_2d, ((0, 0), (pad, pad)), mode="reflect")
    n_frames = 1 + (sp.shape[1] - fft_size) // hop_size
    idx = jnp.arange(n_frames)[:, None] * hop_size + jnp.arange(fft_size)[None, :]
    frames = sp[:, idx]                                   # (B, n_frames, n_fft)
    ft = frames.reshape(-1, fft_size).T                   # (n_fft, M)
    m = ft.shape[1]
    if m_pad > m:
        ft = jnp.pad(ft, ((0, 0), (0, m_pad - m)))
    return ft


def _dft_basis_T(fft_size, win_length):
    """Fused window-weighted DFT basis, transposed: (2K, n_fft)."""
    K = fft_size // 8
    n = np.arange(fft_size, dtype=np.float64)
    window = 0.5 - 0.5 * np.cos(2.0 * np.pi * n / win_length)   # periodic Hann
    f = np.arange(K, dtype=np.float64)
    ang = 2.0 * np.pi * np.outer(f, n) / fft_size               # (K, n_fft)
    wr = window[None, :] * np.cos(ang)                          # Re rows
    wi = -window[None, :] * np.sin(ang)                         # Im rows
    wt = np.concatenate([wr, wi], axis=0).astype(np.float32)    # (2K, n_fft)
    return jnp.asarray(wt), K


def stft_loss(x, y, fft_size=1024, hop_size=256, win_length=1024, eps=1e-8,
              tm=128):
    # tm: frames per grid step (multiple of 128). Raise to 512+ for long audio.
    assert win_length == fft_size, "kernel assumes win_length == fft_size"
    assert fft_size % 128 == 0 and (fft_size // 8) % 8 == 0
    assert tm % 128 == 0

    x2 = x.reshape(-1, x.shape[-1]).astype(jnp.float32)
    y2 = y.reshape(-1, y.shape[-1]).astype(jnp.float32)
    B, L = x2.shape

    n_frames = 1 + L // hop_size            # center=True framing
    m_real = B * n_frames
    n_tiles = pl.cdiv(m_real, tm)
    m_pad = n_tiles * tm

    fx = _frames_T(x2, fft_size, hop_size, m_pad)      # (n_fft, m_pad)
    fy = _frames_T(y2, fft_size, hop_size, m_pad)
    wt, K = _dft_basis_T(fft_size, win_length)         # (2K, n_fft)

    inv_count = 1.0 / float(m_real * K)                # MSE mean denominator

    kernel = functools.partial(_stft_mse_kernel, K, tm, m_real,
                               float(eps), inv_count)

    flops = 2 * 2 * (2 * K) * fft_size * m_pad
    bytes_accessed = 4 * (2 * fft_size * m_pad + 2 * K * fft_size + 1)

    out = pl.pallas_call(
        kernel,
        out_shape=jax.ShapeDtypeStruct((1, 1), jnp.float32),
        grid_spec=pltpu.PrefetchScalarGridSpec(
            num_scalar_prefetch=0,
            grid=(n_tiles,),
            in_specs=[
                pl.BlockSpec((fft_size, tm), lambda i: (0, i)),
                pl.BlockSpec((fft_size, tm), lambda i: (0, i)),
                pl.BlockSpec((2 * K, fft_size), lambda i: (0, 0)),
            ],
            out_specs=pl.BlockSpec((1, 1), lambda i: (0, 0),
                                   memory_space=pltpu.SMEM),
            scratch_shapes=[pltpu.SMEM((1, 1), jnp.float32)],
        ),
        compiler_params=pltpu.CompilerParams(
            dimension_semantics=("arbitrary",),
            vmem_limit_bytes=32 * 1024 * 1024,
        ),
        cost_estimate=pl.CostEstimate(
            flops=flops,
            transcendentals=3 * K * m_pad,
            bytes_accessed=bytes_accessed,
        ),
    )(fx, fy, wt)
    return out[0, 0]


# ----------------------------- pure-JAX reference ---------------------------

def _stft_mag_ref(sig2d, fft_size, hop_size, win_length, eps):
    pad = fft_size // 2
    sp = jnp.pad(sig2d, ((0, 0), (pad, pad)), mode="reflect")
    n_frames = 1 + (sp.shape[1] - fft_size) // hop_size
    idx = jnp.arange(n_frames)[:, None] * hop_size + jnp.arange(fft_size)[None, :]
    frames = sp[:, idx]                                   # (B, T, n_fft)
    n = jnp.arange(fft_size, dtype=jnp.float32)
    window = 0.5 - 0.5 * jnp.cos(2.0 * jnp.pi * n / win_length)
    spec = jnp.fft.rfft(frames * window, axis=-1)
    mag = jnp.sqrt(jnp.maximum(spec.real ** 2 + spec.imag ** 2, eps))
    return mag[..., : fft_size // 8]


def _stft_loss_ref(x, y, fft_size=1024, hop_size=256, win_length=1024, eps=1e-8):
    x2 = x.reshape(-1, x.shape[-1]).astype(jnp.float32)
    y2 = y.reshape(-1, y.shape[-1]).astype(jnp.float32)
    mx = _stft_mag_ref(x2, fft_size, hop_size, win_length, eps)
    my = _stft_mag_ref(y2, fft_size, hop_size, win_length, eps)
    ms = _stft_mag_ref(x2 + y2, fft_size, hop_size, win_length, eps)
    return jnp.mean((mx + my - ms) ** 2)


if __name__ == "__main__":
    # Module defaults: fft_size=1024, hop=256, win=1024.  Input (2, 4, 4096)
    # -> view(-1, 4096) = 8 signals of 4096 samples, 17 frames each
    # -> M = 136 frames, K = 128 kept bins, 2 grid steps at TM = 128.
    key = jax.random.PRNGKey(0)
    kx, ky = jax.random.split(key)
    x = jax.random.normal(kx, (2, 4, 4096), dtype=jnp.float32)
    y = jax.random.normal(ky, (2, 4, 4096), dtype=jnp.float32)

    loss = jax.block_until_ready(stft_loss(x, y))
    ref = jax.block_until_ready(_stft_loss_ref(x, y))

    np.testing.assert_allclose(np.asarray(loss), np.asarray(ref),
                               rtol=2e-2, atol=1e-3)
    print("KERNEL_OK")
</pallas_src>

<mosaic_0001>
module attributes {stable_mosaic.version = 11 : i64} {
  func.func @_stft_mse_kernel(%arg0: i32, %arg1: memref<1024x128xf32, #tpu.memory_space<vmem>>, %arg2: memref<1024x128xf32, #tpu.memory_space<vmem>>, %arg3: memref<256x1024xf32, #tpu.memory_space<vmem>>, %arg4: memref<1x1xf32, #tpu.memory_space<smem>>, %arg5: memref<1x1xf32, #tpu.memory_space<smem>>) attributes {dimension_semantics = [#tpu.dimension_semantics<arbitrary>], iteration_bounds = array<i64: 2>, scalar_prefetch = 0 : i64, scratch_operands = 1 : i64, tpu.core_type = #tpu.core_type<tc>, window_params = [{transform_indices = @transform_0, window_bounds = array<i64: 1024, 128>}, {transform_indices = @transform_1, window_bounds = array<i64: 1024, 128>}, {pipeline_mode = #tpu.pipeline_mode<synchronous>, transform_indices = @transform_2, window_bounds = array<i64: 256, 1024>}, {transform_indices = @transform_3, window_bounds = array<i64: 1, 1>}]} {
    %c0_i32 = arith.constant 0 : i32
    %0 = arith.cmpi eq, %arg0, %c0_i32 : i32
    %1 = arith.extui %0 : i1 to i32
    %c0_i32_0 = arith.constant 0 : i32
    %2 = arith.cmpi ne, %1, %c0_i32_0 : i32
    scf.if %2 {
      %cst_17 = arith.constant 0.000000e+00 : f32
      %c0_18 = arith.constant 0 : index
      %c0_19 = arith.constant 0 : index
      %53 = memref.load %arg5[%c0_18, %c0_19] : memref<1x1xf32, #tpu.memory_space<smem>>
      memref.store %cst_17, %arg5[%c0_18, %c0_19] : memref<1x1xf32, #tpu.memory_space<smem>>
    } else {
    }
    %c0 = arith.constant 0 : index
    %c0_1 = arith.constant 0 : index
    %3 = vector.load %arg3[%c0, %c0_1] : memref<256x1024xf32, #tpu.memory_space<vmem>>, vector<256x1024xf32>
    %c0_2 = arith.constant 0 : index
    %c0_3 = arith.constant 0 : index
    %4 = vector.load %arg1[%c0_2, %c0_3] : memref<1024x128xf32, #tpu.memory_space<vmem>>, vector<1024x128xf32>
    %cst = arith.constant dense<0.000000e+00> : vector<256x128xf32>
    %5 = tpu.matmul %3, %4, %cst {dimension_numbers = #tpu.dot_dimension_numbers<[1], [0], [0], [1], [0, 0, 1, 1], [], []>} : vector<256x1024xf32>, vector<1024x128xf32>, vector<256x128xf32> -> vector<256x128xf32>
    %c0_4 = arith.constant 0 : index
    %c0_5 = arith.constant 0 : index
    %6 = vector.load %arg2[%c0_4, %c0_5] : memref<1024x128xf32, #tpu.memory_space<vmem>>, vector<1024x128xf32>
    %cst_6 = arith.constant dense<0.000000e+00> : vector<256x128xf32>
    %7 = tpu.matmul %3, %6, %cst_6 {dimension_numbers = #tpu.dot_dimension_numbers<[1], [0], [0], [1], [0, 0, 1, 1], [], []>} : vector<256x1024xf32>, vector<1024x128xf32>, vector<256x128xf32> -> vector<256x128xf32>
    %8 = vector.extract_strided_slice %5 {offsets = [0, 0], sizes = [128, 128], strides = [1, 1]} : vector<256x128xf32> to vector<128x128xf32>
    %9 = vector.extract_strided_slice %5 {offsets = [128, 0], sizes = [128, 128], strides = [1, 1]} : vector<256x128xf32> to vector<128x128xf32>
    %10 = vector.extract_strided_slice %7 {offsets = [0, 0], sizes = [128, 128], strides = [1, 1]} : vector<256x128xf32> to vector<128x128xf32>
    %11 = vector.extract_strided_slice %7 {offsets = [128, 0], sizes = [128, 128], strides = [1, 1]} : vector<256x128xf32> to vector<128x128xf32>
    %12 = arith.addf %8, %10 : vector<128x128xf32>
    %13 = arith.addf %9, %11 : vector<128x128xf32>
    %14 = arith.mulf %8, %8 : vector<128x128xf32>
    %15 = arith.mulf %9, %9 : vector<128x128xf32>
    %16 = arith.addf %14, %15 : vector<128x128xf32>
    %cst_7 = arith.constant 9.99999993E-9 : f32
    %17 = vector.broadcast %cst_7 : f32 to vector<128x128xf32>
    %18 = arith.maximumf %16, %17 : vector<128x128xf32>
    %19 = math.sqrt %18 : vector<128x128xf32>
    %20 = arith.mulf %10, %10 : vector<128x128xf32>
    %21 = arith.mulf %11, %11 : vector<128x128xf32>
    %22 = arith.addf %20, %21 : vector<128x128xf32>
    %cst_8 = arith.constant 9.99999993E-9 : f32
    %23 = vector.broadcast %cst_8 : f32 to vector<128x128xf32>
    %24 = arith.maximumf %22, %23 : vector<128x128xf32>
    %25 = math.sqrt %24 : vector<128x128xf32>
    %26 = arith.addf %19, %25 : vector<128x128xf32>
    %27 = arith.mulf %12, %12 : vector<128x128xf32>
    %28 = arith.mulf %13, %13 : vector<128x128xf32>
    %29 = arith.addf %27, %28 : vector<128x128xf32>
    %cst_9 = arith.constant 9.99999993E-9 : f32
    %30 = vector.broadcast %cst_9 : f32 to vector<128x128xf32>
    %31 = arith.maximumf %29, %30 : vector<128x128xf32>
    %32 = math.sqrt %31 : vector<128x128xf32>
    %33 = arith.subf %26, %32 : vector<128x128xf32>
    %34 = tpu.iota {dimensions = array<i32: 1>} : vector<128x128xi32>
    %c128_i32 = arith.constant 128 : i32
    %35 = arith.muli %arg0, %c128_i32 : i32
    %36 = vector.broadcast %35 : i32 to vector<128x128xi32>
    %37 = arith.addi %34, %36 : vector<128x128xi32>
    %c136_i32 = arith.constant 136 : i32
    %38 = vector.broadcast %c136_i32 : i32 to vector<128x128xi32>
    %39 = arith.cmpi slt, %37, %38 : vector<128x128xi32>
    %cst_10 = arith.constant 0.000000e+00 : f32
    %40 = vector.broadcast %cst_10 : f32 to vector<128x128xf32>
    %41 = arith.select %39, %33, %40 : vector<128x128xi1>, vector<128x128xf32>
    %c0_11 = arith.constant 0 : index
    %c0_12 = arith.constant 0 : index
    %42 = memref.load %arg5[%c0_11, %c0_12] : memref<1x1xf32, #tpu.memory_space<smem>>
    %43 = arith.mulf %41, %41 : vector<128x128xf32>
    %44 = vector.shape_cast %43 : vector<128x128xf32> to vector<1x128x128xf32>
    %cst_13 = arith.constant dense<0.000000e+00> : vector<1xf32>
    %45 = vector.multi_reduction <add>, %44, %cst_13 [1, 2] : vector<1x128x128xf32> to vector<1xf32>
    %46 = vector.shape_cast %45 : vector<1xf32> to vector<1x1x1xf32>
    %47 = vector.extract %46[0, 0, 0] : f32 from vector<1x1x1xf32>
    %48 = arith.addf %42, %47 : f32
    %c0_14 = arith.constant 0 : index
    %c0_15 = arith.constant 0 : index
    %49 = memref.load %arg5[%c0_14, %c0_15] : memref<1x1xf32, #tpu.memory_space<smem>>
    memref.store %48, %arg5[%c0_14, %c0_15] : memref<1x1xf32, #tpu.memory_space<smem>>
    %c1_i32 = arith.constant 1 : i32
    %50 = arith.cmpi eq, %arg0, %c1_i32 : i32
    %51 = arith.extui %50 : i1 to i32
    %c0_i32_16 = arith.constant 0 : i32
    %52 = arith.cmpi ne, %51, %c0_i32_16 : i32
    scf.if %52 {
      %c0_17 = arith.constant 0 : index
      %c0_18 = arith.constant 0 : index
      %53 = memref.load %arg5[%c0_17, %c0_18] : memref<1x1xf32, #tpu.memory_space<smem>>
      %cst_19 = arith.constant 5.74448532E-5 : f32
      %54 = arith.mulf %53, %cst_19 : f32
      %c0_20 = arith.constant 0 : index
      %c0_21 = arith.constant 0 : index
      %55 = memref.load %arg4[%c0_20, %c0_21] : memref<1x1xf32, #tpu.memory_space<smem>>
      memref.store %54, %arg4[%c0_20, %c0_21] : memref<1x1xf32, #tpu.memory_space<smem>>
    } else {
    }
    return
  }
  func.func @transform_0(%arg0: i32) -> (i32, i32) {
    %c0_i32 = arith.constant 0 : i32
    %c0_i32_0 = arith.constant 0 : i32
    return %c0_i32, %arg0 : i32, i32
  }
  func.func @transform_1(%arg0: i32) -> (i32, i32) {
    %c0_i32 = arith.constant 0 : i32
    %c0_i32_0 = arith.constant 0 : i32
    return %c0_i32, %arg0 : i32, i32
  }
  func.func @transform_2(%arg0: i32) -> (i32, i32) {
    %c0_i32 = arith.constant 0 : i32
    %c0_i32_0 = arith.constant 0 : i32
    %c0_i32_1 = arith.constant 0 : i32
    return %c0_i32, %c0_i32_0 : i32, i32
  }
  func.func @transform_3(%arg0: i32) -> (i32, i32) {
    %c0_i32 = arith.constant 0 : i32
    %c0_i32_0 = arith.constant 0 : i32
    %c0_i32_1 = arith.constant 0 : i32
    return %c0_i32, %c0_i32_0 : i32, i32
  }
}

</mosaic_0001>

<bundles_post_ra>
// kernel: tpu_custom_call.1
= control target key start
LH: loop header
LB: loop body
LE: loop exit
PB: predicated region body
PF: predicated region fallthrough
CT: control target
= control target key end

     0   :  { %8 = vsyncpa [#allocation4], 0  ;;  %s6008_s0 = inlined_call_operand.hbm [shape: f32[1024,256], index: 0, kind: input, shape index: {}]   ;;  %s6009_s1 = inlined_call_operand.hbm [shape: f32[1024,256], index: 1, kind: input, shape index: {}]   ;;  %s6010_s2 = inlined_call_operand.hbm [shape: f32[256,1024], index: 2, kind: input, shape index: {}]   ;;  %s6011_s3 = inlined_call_operand.hbm [shape: f32[1,1], index: 3, kind: output, shape index: {}]  }
   0x1   :  { %10 = vsyncpa [#allocation4 + $0x1], 0 }
   0x2   :  { %11 = vsyncpa [#allocation7], 0 }
   0x3   :  { %13 = vsyncpa [#allocation7 + $0x1], 0 }
   0x4   :  { %14 = vsyncpa [#allocation5], 0  ;;  %s3920_s12 = smov 0   ;;  %s3922_s13 = smov 0  }
   0x5   :  { %s3924_s14 = smov 0   ;;  %s3926_s15 = smov 0  }
   0x6 LB: > { %s3939_s16 = sadd.s32 4294967295, %s3887_s15   ;;  %s3942_s17 = sadd.s32 1, %s3887_s15   ;;  %s3887_s15 = sphi %s3926_s15, %s6148_s15   ;;  %s3883_s14 = sphi %s3924_s14, %s6147_s14   ;;  %s3879_s13 = sphi %s3922_s13, %s6146_s13   ;;  %s3875_s12 = sphi %s3920_s12, %s6145_s12  }
   0x7   : > { %s24_s18 = ssub.s32 %s3887_s15, %s3942_s17  ;;  %s27_s19 = sadd.s32 1, %s3883_s14 }
   0x8   : > { %p25_p0 = scmp.eq.s32.totalorder %s24_s18, 0  ;;  %p34_p1 = scmp.ne.s32.totalorder %s3883_s14, %s3879_s13 }
   0x9   : > { %p35_p2 = scmp.eq.s32.totalorder %s3887_s15, 0  ;;  %p40_p3 = scmp.ne.s32.totalorder %s3879_s13, %s3875_s12 }
   0xa   : > { %s3952_s20 = scalar_select %p25_p0, %s3883_s14, %s27_s19  }
   0xb   : > { %p3954_p4 = por %p35_p2, %p34_p1  ;;  %p6012_p5 = scmp.eq.s32.totalorder %s3939_s16, 0 }
   0xc   : > { %p3302_p6 = scmp.ge.s32.totalorder %s3887_s15, 1  ;;  %p119_p7 = scmp.lt.s32.totalorder %s3887_s15, 3 }
   0xd   : > { %p3963_p8 = por %p6012_p5, %p40_p3  ;;  %s3889_s24 = smov [#allocation8]  }
   0xe   : > { %p3967_p9 = pnand %p3302_p6, %p119_p7  ;;  %s131_s25 = sshll.u32 %s3889_s24, 4  ;;  %s132_s25 = int_to_ptr.vmem [resolvable:$true] %s131_s25 }
   0xf   : > { %s6036_s22 = scalar_select %p3963_p8, 1, 0 }
  0x10   : > { %p3338_p10 = pneg %p3967_p9  ;;  %p3350_p12 = scmp.lt.s32.totalorder %s3887_s15, 2 }
  0x11   : > { %s145_s27 = sand.u32 1, %s3883_s14   ;;  %s3306_s28 = sshll.u32 %s3887_s15, 7 }
  0x12   : > { %p3975_p11 = pnand %p3338_p10, %p6012_p5  ;;  %p3984_p13 = pnand %p3350_p12, %p3954_p4 }
  0x13   : > { %s3760_s30 = scalar_lea.vmem %s132_s25, 32768  ;;  %p3768_p6 = scmp.lt.s32.totalorder %s132_s25, %s132_s25 }
  0x14   : > { %p3751_p0 = pneg %p3975_p11  ;;  %p3761_p1 = scmp.ne.s32.totalorder %s132_s25, %s3760_s30 }
  0x15   : > { %p3769_p7 = scmp.lt.s32.totalorder %s3760_s30, %s3760_s30 }
  0x16   : > { %p3763_p2 = pnand %p3761_p1, %p3751_p0 }
  0x17   : > { %p3770_p10 = por %p3769_p7, %p3768_p6 }
  0x18   : > { %p3764_p3 = pneg %p3763_p2 }
  0x1a   : > { %p3771_p5 = pnand %p3770_p10, %p3764_p3 }
  0x1c   : > { %3774 = shalt.err (!%p3771_p5)
}
  0x1d   : > { %s3890_s4 = smov 1024   ;;  %s3891_s5 = smov 64  }
  0x1e   : > { %3341 = dma.hbm_to_vmem [thread:$0]  (!%p3975_p11), %s6010_s2, 32768, %s132_s25, [#allocation7], %s3890_s4, %s3890_s4, %s3891_s5  }
  0x1f   : > { %s3995_s8 = sshll.u32 %s145_s27, 10  ;;  %s4002_s11 = scalar_lea.hbm %s6008_s0, %s3306_s28 }
  0x20   : > { %s149_s12 = scalar_lea.vmem [#allocation3], %s3995_s8  ;;  %s4007_s19 = scalar_lea.sflag [#allocation4], %s145_s27 }
  0x21   : > { %s155_s18 = sshll.u32 %s149_s12, 4  ;;  %s3775_s21 = scalar_lea.hbm %s4002_s11, 16384  ;;  %s4005_s18 = int_to_ptr.vmem [resolvable:$true] %s155_s18 }
  0x22   : > { %p3776_p4 = scmp.ne.s32.totalorder %s4002_s11, %s3775_s21  ;;  %p3777_p5 = pneg %p3984_p13 }
  0x23   : > { %s3780_s26 = scalar_lea.hbm %s6008_s0, 32768  ;;  %p3781_p0 = scmp.lt.s32.totalorder %s4002_s11, %s6008_s0 }
  0x24   : > { %p3778_p11 = pnand %p3777_p5, %p3776_p4  ;;  %p3782_p1 = scmp.lt.s32.totalorder %s3780_s26, %s3775_s21 }
  0x26   : > { %p3779_p12 = pneg %p3778_p11  ;;  %p3783_p2 = por %p3782_p1, %p3781_p0 }
  0x28   : > { %p3784_p3 = pnand %p3783_p2, %p3779_p12 }
  0x2a   : > { %3787 = shalt.err (!%p3784_p3)
}
  0x2b   : > { %s3788_s27 = scalar_lea.vmem %s4005_s18, 16384  ;;  %s3892_s5 = smov [#allocation3]  }
  0x2c   : > { %p3789_p6 = scmp.ne.s32.totalorder %s4005_s18, %s3788_s27  ;;  %s3793_s6 = sshll.u32 %s3892_s5, 4  ;;  %s3794_s6 = int_to_ptr.vmem [resolvable:$false] %s3793_s6 }
  0x2d   : > { %s3795_s7 = scalar_lea.vmem %s3794_s6, 32768  ;;  %p3796_p4 = scmp.lt.s32.totalorder %s4005_s18, %s3794_s6 }
  0x2e   : > { %p3791_p7 = pnand %p3789_p6, %p3777_p5  ;;  %p3797_p11 = scmp.lt.s32.totalorder %s3795_s7, %s3788_s27 }
  0x30   : > { %p3792_p10 = pneg %p3791_p7  ;;  %p3798_p8 = por %p3797_p11, %p3796_p4 }
  0x32   : > { %p3799_p0 = pnand %p3798_p8, %p3792_p10 }
  0x34   : > { %3802 = shalt.err (!%p3799_p0)
}
  0x35   : > { %s3893_s9 = smov 256   ;;  %s3894_s10 = smov 128  }
  0x36   : > { %s3895_s12 = smov 8   ;;  %s4042_s25 = scalar_lea.hbm %s6009_s1, %s3306_s28 }
  0x37   : > { %3345 = dma.hbm_to_vmem [thread:$0]  (!%p3984_p13), %s4002_s11, 16384, %s4005_s18, %s4007_s19, %s3893_s9, %s3894_s10, %s3895_s12  }
  0x38   : > { %s169_s26 = scalar_lea.vmem [#allocation6], %s3995_s8  ;;  %s165_s4 = sand.u32 1, %s3887_s15  }
  0x39   : > { %s175_s30 = sshll.u32 %s169_s26, 4  ;;  %s166_s27 = scalar_lea.sflag [#allocation7], %s165_s4  ;;  %s4046_s30 = int_to_ptr.vmem [resolvable:$true] %s175_s30 }
  0x3a   : > { %s3803_s5 = scalar_lea.hbm %s4042_s25, 16384  ;;  %s3808_s28 = scalar_lea.hbm %s6009_s1, 32768 }
  0x3b   : > { %p3804_p8 = scmp.ne.s32.totalorder %s4042_s25, %s3803_s5  ;;  %p3809_p2 = scmp.lt.s32.totalorder %s4042_s25, %s6009_s1 }
  0x3c   : > { %p3810_p3 = scmp.lt.s32.totalorder %s3808_s28, %s3803_s5 }
  0x3d   : > { %p3806_p12 = pnand %p3804_p8, %p3777_p5 }
  0x3e   : > { %p3811_p6 = por %p3810_p3, %p3809_p2 }
  0x3f   : > { %p3807_p1 = pneg %p3806_p12 }
  0x41   : > { %p3812_p7 = pnand %p3811_p6, %p3807_p1 }
  0x43   : > { %3815 = shalt.err (!%p3812_p7)
}
  0x44   : > { %s3816_s15 = scalar_lea.vmem %s4046_s30, 16384  ;;  %s3896_s8 = smov [#allocation6]  }
  0x45   : > { %p3817_p10 = scmp.ne.s32.totalorder %s4046_s30, %s3816_s15  ;;  %s3821_s7 = sshll.u32 %s3896_s8, 4  ;;  %s3822_s7 = int_to_ptr.vmem [resolvable:$false] %s3821_s7 }
  0x46   : > { %s3823_s21 = scalar_lea.vmem %s3822_s7, 32768  ;;  %p3824_p0 = scmp.lt.s32.totalorder %s4046_s30, %s3822_s7 }
  0x47   : > { %p3819_p4 = pnand %p3817_p10, %p3777_p5  ;;  %p3825_p8 = scmp.lt.s32.totalorder %s3823_s21, %s3816_s15 }
  0x49   : > { %p3820_p11 = pneg %p3819_p4  ;;  %p3826_p12 = por %p3825_p8, %p3824_p0 }
  0x4b   : > { %p3827_p2 = pnand %p3826_p12, %p3820_p11 }
  0x4d   : > { %3830 = shalt.err (!%p3827_p2)
}
  0x4e   : > { %3348 = dma.hbm_to_vmem [thread:$0]  (!%p3984_p13), %s4042_s25, 16384, %s4046_s30, %s166_s27, %s3893_s9, %s3894_s10, %s3895_s12  }
  0x4f   : > { %187 = sbr.rel (%p3967_p9) target bundleno = 1156 (0x484), region = 32 }
  0x54   : > { %s189_s24 = sand.u32 1, %s3879_s13   ;;  %p6040_p5 = scmp.ne.s32.totalorder %s6036_s22, 0 }
  0x55   : > { %s3310_s26 = sshll.u32 %s189_s24, 10  ;;  %s190_s4 = scalar_lea.sflag [#allocation4], %s189_s24 }
  0x56   : > { %s4076_s5 = scalar_lea.vmem [#allocation3], %s3310_s26 }
  0x57   : > { %3858 = dma.done.wait (%p6040_p5), %s190_s4, 16384  }
  0x58   : > { %3860 = vsyncadd (%p6040_p5), %s190_s4, 4294950912  ;;  %s198_s29 = sand.u32 1, %s3939_s16   ;;  %s4083_s9 = scalar_lea.vmem [#allocation6], %s3310_s26 }
  0x59   : > { %s199_s11 = scalar_lea.sflag [#allocation7], %s198_s29 }
  0x5a   : > { %3862 = dma.done.wait (%p6040_p5), %s199_s11, 16384  }
  0x5b   : > { %3864 = vsyncadd (%p6040_p5), %s199_s11, 4294950912  ;;  %p6041_p9 = scmp.eq.s32.totalorder %s3939_s16, 0 }
  0x5d   : > { %3866 = dma.done.wait (%p6041_p9), [#allocation7], 32768   ;;  %p6042_p13 = pmov %p6041_p9 }
  0x5e   : > { %v3897_v0 = vmov 0.0   ;;  %v506_v1 = vld [vmem:[%s4076_s5 + $0x78] sm:$0xff]  ;;  %v505_v3 = vld [vmem:[%s4076_s5 + $0x70] sm:$0xff]  ;;  %v504_v5 = vld [vmem:[%s4076_s5 + $0x68] sm:$0xff]  ;;  %s3314_s22 = sshll.u32 %s3939_s16, 7  ;;  %s3898_s23 = smov 0.0  }
  0x5f   : > { %3868 = vsyncadd (%p6042_p13), [#allocation7], 4294934528  ;;  %619 = vmatprep.subr.mxu0 %v3897_v0  ;;  %844 = vmatprep.subr.mxu1 %v3897_v0  ;;  %v538_v2 = vld [vmem:[%s4076_s5 + $0x178] sm:$0xff]  ;;  %v537_v4 = vld [vmem:[%s4076_s5 + $0x170] sm:$0xff]  ;;  %p6144_p1 = pmov %p6041_p9  ;;  %p3353_p3 = scmp.eq.s32.totalorder %s3939_s16, 1 }
  0x60   : > { %620 = vmatpush1.msra.mxu0 %v506_v1  ;;  %845 = vmatpush1.msra.mxu1 %v538_v2  ;;  %v536_v6 = vld [vmem:[%s4076_s5 + $0x168] sm:$0xff]  ;;  %v503_v7 = vld [vmem:[%s4076_s5 + $0x60] sm:$0xff]  ;;  %v502_v9 = vld [vmem:[%s4076_s5 + $0x58] sm:$0xff]  ;;  %s3899_s27 = smov [#allocation9]  }
  0x61   : > { %621 = vmatprep.subr.mxu0 %v3897_v0  ;;  %846 = vmatprep.subr.mxu1 %v3897_v0  ;;  %v535_v8 = vld [vmem:[%s4076_s5 + $0x160] sm:$0xff]  ;;  %v534_v10 = vld [vmem:[%s4076_s5 + $0x158] sm:$0xff]  ;;  %v501_v11 = vld [vmem:[%s4076_s5 + $0x50] sm:$0xff]  ;;  %3331 = sst [smem:[#allocation2]] (%p6144_p1), %s3898_s23 }
  0x62   : > { %622 = vmatpush1.msra.mxu0 %v505_v3  ;;  %847 = vmatpush1.msra.mxu1 %v537_v4  ;;  %v533_v12 = vld [vmem:[%s4076_s5 + $0x150] sm:$0xff]  ;;  %v500_v13 = vld [vmem:[%s4076_s5 + $0x48] sm:$0xff]  ;;  %v499_v15 = vld [vmem:[%s4076_s5 + $0x40] sm:$0xff]  ;;  %s3161_s10 = sld [smem:[#allocation2]] }
  0x63   : > { %623 = vmatprep.subr.mxu0 %v3897_v0  ;;  %848 = vmatprep.subr.mxu1 %v3897_v0  ;;  %v532_v14 = vld [vmem:[%s4076_s5 + $0x148] sm:$0xff]  ;;  %v531_v16 = vld [vmem:[%s4076_s5 + $0x140] sm:$0xff]  ;;  %v498_v17 = vld [vmem:[%s4076_s5 + $0x38] sm:$0xff] }
  0x64   : > { %624 = vmatpush1.msra.mxu0 %v504_v5  ;;  %849 = vmatpush1.msra.mxu1 %v536_v6  ;;  %v530_v18 = vld [vmem:[%s4076_s5 + $0x138] sm:$0xff]  ;;  %v497_v19 = vld [vmem:[%s4076_s5 + $0x30] sm:$0xff]  ;;  %v496_v21 = vld [vmem:[%s4076_s5 + $0x28] sm:$0xff] }
  0x65   : > { %625 = vmatprep.subr.mxu0 %v3897_v0  ;;  %850 = vmatprep.subr.mxu1 %v3897_v0  ;;  %v529_v20 = vld [vmem:[%s4076_s5 + $0x130] sm:$0xff]  ;;  %v528_v22 = vld [vmem:[%s4076_s5 + $0x128] sm:$0xff]  ;;  %v495_v23 = vld [vmem:[%s4076_s5 + $0x20] sm:$0xff] }
  0x66   : > { %626 = vmatpush1.msra.mxu0 %v503_v7  ;;  %851 = vmatpush1.msra.mxu1 %v535_v8  ;;  %v527_v24 = vld [vmem:[%s4076_s5 + $0x120] sm:$0xff]  ;;  %v494_v25 = vld [vmem:[%s4076_s5 + $0x18] sm:$0xff]  ;;  %v493_v27 = vld [vmem:[%s4076_s5 + $0x10] sm:$0xff] }
  0x67   : > { %627 = vmatprep.subr.mxu0 %v3897_v0  ;;  %852 = vmatprep.subr.mxu1 %v3897_v0  ;;  %v526_v26 = vld [vmem:[%s4076_s5 + $0x118] sm:$0xff]  ;;  %v525_v28 = vld [vmem:[%s4076_s5 + $0x110] sm:$0xff]  ;;  %v492_v29 = vld [vmem:[%s4076_s5 + $0x8] sm:$0xff] }
  0x68   : > { %628 = vmatpush1.msra.mxu0 %v502_v9  ;;  %853 = vmatpush1.msra.mxu1 %v534_v10  ;;  %v524_v30 = vld [vmem:[%s4076_s5 + $0x108] sm:$0xff]  ;;  %v491_v31 = vld [vmem:[%s4076_s5] sm:$0xff]  ;;  %v522_v33 = vld [vmem:[%s4076_s5 + $0xf8] sm:$0xff] }
  0x69   : > { %629 = vmatprep.subr.mxu0 %v3897_v0  ;;  %854 = vmatprep.subr.mxu1 %v3897_v0  ;;  %v523_v32 = vld [vmem:[%s4076_s5 + $0x100] sm:$0xff]  ;;  %v554_v34 = vld [vmem:[%s4076_s5 + $0x1f8] sm:$0xff]  ;;  %v521_v35 = vld [vmem:[%s4076_s5 + $0xf0] sm:$0xff] }
  0x6a   : > { %630 = vmatpush1.msra.mxu0 %v501_v11  ;;  %855 = vmatpush1.msra.mxu1 %v533_v12  ;;  %v553_v36 = vld [vmem:[%s4076_s5 + $0x1f0] sm:$0xff]  ;;  %v520_v37 = vld [vmem:[%s4076_s5 + $0xe8] sm:$0xff]  ;;  %v519_v39 = vld [vmem:[%s4076_s5 + $0xe0] sm:$0xff] }
  0x6b   : > { %631 = vmatprep.subr.mxu0 %v3897_v0  ;;  %856 = vmatprep.subr.mxu1 %v3897_v0  ;;  %v552_v38 = vld [vmem:[%s4076_s5 + $0x1e8] sm:$0xff]  ;;  %v551_v40 = vld [vmem:[%s4076_s5 + $0x1e0] sm:$0xff]  ;;  %v518_v41 = vld [vmem:[%s4076_s5 + $0xd8] sm:$0xff] }
  0x6c   : > { %632 = vmatpush1.msra.mxu0 %v500_v13  ;;  %857 = vmatpush1.msra.mxu1 %v532_v14  ;;  %v550_v42 = vld [vmem:[%s4076_s5 + $0x1d8] sm:$0xff]  ;;  %v517_v43 = vld [vmem:[%s4076_s5 + $0xd0] sm:$0xff]  ;;  %v516_v45 = vld [vmem:[%s4076_s5 + $0xc8] sm:$0xff] }
  0x6d   : > { %633 = vmatprep.subr.mxu0 %v3897_v0  ;;  %858 = vmatprep.subr.mxu1 %v3897_v0  ;;  %v549_v44 = vld [vmem:[%s4076_s5 + $0x1d0] sm:$0xff]  ;;  %v548_v46 = vld [vmem:[%s4076_s5 + $0x1c8] sm:$0xff]  ;;  %v515_v47 = vld [vmem:[%s4076_s5 + $0xc0] sm:$0xff] }
  0x6e   : > { %634 = vmatpush1.msra.mxu0 %v499_v15  ;;  %859 = vmatpush1.msra.mxu1 %v531_v16  ;;  %v547_v48 = vld [vmem:[%s4076_s5 + $0x1c0] sm:$0xff]  ;;  %v514_v49 = vld [vmem:[%s4076_s5 + $0xb8] sm:$0xff]  ;;  %v513_v51 = vld [vmem:[%s4076_s5 + $0xb0] sm:$0xff] }
  0x6f   : > { %635 = vmatprep.subr.mxu0 %v3897_v0  ;;  %860 = vmatprep.subr.mxu1 %v3897_v0  ;;  %v546_v50 = vld [vmem:[%s4076_s5 + $0x1b8] sm:$0xff]  ;;  %v545_v52 = vld [vmem:[%s4076_s5 + $0x1b0] sm:$0xff]  ;;  %v512_v53 = vld [vmem:[%s4076_s5 + $0xa8] sm:$0xff] }
  0x70   : > { %636 = vmatpush1.msra.mxu0 %v498_v17  ;;  %861 = vmatpush1.msra.mxu1 %v530_v18  ;;  %v544_v54 = vld [vmem:[%s4076_s5 + $0x1a8] sm:$0xff]  ;;  %v511_v55 = vld [vmem:[%s4076_s5 + $0xa0] sm:$0xff]  ;;  %v510_v57 = vld [vmem:[%s4076_s5 + $0x98] sm:$0xff] }
  0x71   : > { %637 = vmatprep.subr.mxu0 %v3897_v0  ;;  %862 = vmatprep.subr.mxu1 %v3897_v0  ;;  %v543_v56 = vld [vmem:[%s4076_s5 + $0x1a0] sm:$0xff]  ;;  %v542_v58 = vld [vmem:[%s4076_s5 + $0x198] sm:$0xff]  ;;  %v509_v59 = vld [vmem:[%s4076_s5 + $0x90] sm:$0xff] }
  0x72   : > { %638 = vmatpush1.msra.mxu0 %v497_v19  ;;  %863 = vmatpush1.msra.mxu1 %v529_v20  ;;  %v541_v60 = vld [vmem:[%s4076_s5 + $0x190] sm:$0xff]  ;;  %v508_v61 = vld [vmem:[%s4076_s5 + $0x88] sm:$0xff]  ;;  %v507_v1 = vld [vmem:[%s4076_s5 + $0x80] sm:$0xff] }
  0x73   : > { %639 = vmatprep.subr.mxu0 %v3897_v0  ;;  %864 = vmatprep.subr.mxu1 %v3897_v0  ;;  %v540_v62 = vld [vmem:[%s4076_s5 + $0x188] sm:$0xff]  ;;  %v235_v2 = vld [vmem:[#allocation8] sm:$0xff]  ;;  %v238_v4 = vld [vmem:[#allocation8 + $0x18] sm:$0xff] }
  0x74   : > { %640 = vmatpush1.msra.mxu0 %v496_v21  ;;  %865 = vmatpush1.msra.mxu1 %v528_v22  ;;  %v236_v63 = vld [vmem:[#allocation8 + $0x8] sm:$0xff]  ;;  %v539_v3 = vld [vmem:[%s4076_s5 + $0x180] sm:$0xff]  ;;  %v237_v5 = vld [vmem:[#allocation8 + $0x10] sm:$0xff] }
  0x75   : > { %641 = vmatprep.subr.mxu0 %v3897_v0  ;;  %866 = vmatprep.subr.mxu1 %v3897_v0  ;;  %v570_v6 = vld [vmem:[%s4076_s5 + $0x278] sm:$0xff]  ;;  %v244_v7 = vld [vmem:[#allocation8 + $0x48] sm:$0xff]  ;;  %v243_v9 = vld [vmem:[#allocation8 + $0x40] sm:$0xff] }
  0x76   : > { %642 = vmatpush1.msra.mxu0 %v495_v23  ;;  %867 = vmatpush1.msra.mxu1 %v527_v24  ;;  %v602_v8 = vld [vmem:[%s4076_s5 + $0x378] sm:$0xff]  ;;  %v245_v11 = vld [vmem:[#allocation8 + $0x50] sm:$0xff]  ;;  %v252_v13 = vld [vmem:[#allocation8 + $0x88] sm:$0xff] }
  0x77   : > { %643 = vmatprep.subr.mxu0 %v3897_v0  ;;  %868 = vmatprep.subr.mxu1 %v3897_v0  ;;  %v246_v10 = vld [vmem:[#allocation8 + $0x58] sm:$0xff]  ;;  %v569_v12 = vld [vmem:[%s4076_s5 + $0x270] sm:$0xff]  ;;  %v251_v15 = vld [vmem:[#allocation8 + $0x80] sm:$0xff] }
  0x78   : > { %644 = vmatpush1.msra.mxu0 %v494_v25  ;;  %869 = vmatpush1.msra.mxu1 %v526_v26  ;;  %v601_v14 = vld [vmem:[%s4076_s5 + $0x370] sm:$0xff]  ;;  %v254_v16 = vld [vmem:[#allocation8 + $0x98] sm:$0xff]  ;;  %v568_v18 = vld [vmem:[%s4076_s5 + $0x268] sm:$0xff] }
  0x79   : > { %645 = vmatprep.subr.mxu0 %v3897_v0  ;;  %870 = vmatprep.subr.mxu1 %v3897_v0  ;;  %v253_v17 = vld [vmem:[#allocation8 + $0x90] sm:$0xff]  ;;  %v260_v19 = vld [vmem:[#allocation8 + $0xc8] sm:$0xff]  ;;  %v259_v21 = vld [vmem:[#allocation8 + $0xc0] sm:$0xff] }
  0x7a   : > { %646 = vmatpush1.msra.mxu0 %v493_v27  ;;  %871 = vmatpush1.msra.mxu1 %v525_v28  ;;  %v600_v20 = vld [vmem:[%s4076_s5 + $0x368] sm:$0xff]  ;;  %v262_v22 = vld [vmem:[#allocation8 + $0xd8] sm:$0xff]  ;;  %v261_v23 = vld [vmem:[#allocation8 + $0xd0] sm:$0xff] }
  0x7b   : > { %647 = vmatprep.subr.mxu0 %v3897_v0  ;;  %872 = vmatprep.subr.mxu1 %v3897_v0  ;;  %v567_v24 = vld [vmem:[%s4076_s5 + $0x260] sm:$0xff]  ;;  %v268_v25 = vld [vmem:[#allocation8 + $0x108] sm:$0xff]  ;;  %v270_v28 = vld [vmem:[#allocation8 + $0x118] sm:$0xff] }
  0x7c   : > { %648 = vmatpush1.msra.mxu0 %v492_v29  ;;  %873 = vmatpush1.msra.mxu1 %v524_v30  ;;  %v599_v26 = vld [vmem:[%s4076_s5 + $0x360] sm:$0xff]  ;;  %v269_v29 = vld [vmem:[#allocation8 + $0x110] sm:$0xff]  ;;  %v566_v30 = vld [vmem:[%s4076_s5 + $0x258] sm:$0xff] }
  0x7d   : > { %649 = vmatprep.subr.mxu0 %v3897_v0  ;;  %874 = vmatprep.subr.mxu1 %v3897_v0  ;;  %v267_v27 = vld [vmem:[#allocation8 + $0x100] sm:$0xff] }
  0x7e   : > { %650 = vmatpush1.msra.mxu0 %v491_v31  ;;  %875 = vmatpush1.msra.mxu1 %v523_v32  ;;  %v276_v31 = vld [vmem:[#allocation8 + $0x148] sm:$0xff]  ;;  %v598_v32 = vld [vmem:[%s4076_s5 + $0x358] sm:$0xff] }
  0x7f   : > { %651 = vmatprep.subr.mxu0 %v3897_v0  ;;  %876 = vmatprep.subr.mxu1 %v3897_v0 }
  0x80   : > { %652 = vmatpush2.msra.mxu0 %v522_v33  ;;  %877 = vmatpush2.msra.mxu1 %v554_v34  ;;  %v275_v33 = vld [vmem:[#allocation8 + $0x140] sm:$0xff]  ;;  %v278_v34 = vld [vmem:[#allocation8 + $0x158] sm:$0xff] }
  0x81   : > { %653 = vmatprep.subr.mxu0 %v3897_v0  ;;  %878 = vmatprep.subr.mxu1 %v3897_v0 }
  0x82   : > { %654 = vmatpush2.msra.mxu0 %v521_v35  ;;  %879 = vmatpush2.msra.mxu1 %v553_v36  ;;  %v277_v35 = vld [vmem:[#allocation8 + $0x150] sm:$0xff] }
  0x83   : > { %655 = vmatprep.subr.mxu0 %v3897_v0  ;;  %880 = vmatprep.subr.mxu1 %v3897_v0  ;;  %v565_v36 = vld [vmem:[%s4076_s5 + $0x250] sm:$0xff] }
  0x84   : > { %656 = vmatpush2.msra.mxu0 %v520_v37  ;;  %881 = vmatpush2.msra.mxu1 %v552_v38  ;;  %v284_v37 = vld [vmem:[#allocation8 + $0x188] sm:$0xff]  ;;  %v597_v38 = vld [vmem:[%s4076_s5 + $0x350] sm:$0xff] }
  0x85   : > { %657 = vmatprep.subr.mxu0 %v3897_v0  ;;  %882 = vmatprep.subr.mxu1 %v3897_v0 }
  0x86   : > { %658 = vmatpush2.msra.mxu0 %v519_v39  ;;  %883 = vmatpush2.msra.mxu1 %v551_v40  ;;  %v283_v39 = vld [vmem:[#allocation8 + $0x180] sm:$0xff]  ;;  %v286_v40 = vld [vmem:[#allocation8 + $0x198] sm:$0xff] }
  0x87   : > { %659 = vmatprep.subr.mxu0 %v3897_v0  ;;  %884 = vmatprep.subr.mxu1 %v3897_v0 }
  0x88   : > { %660 = vmatpush2.msra.mxu0 %v518_v41  ;;  %885 = vmatpush2.msra.mxu1 %v550_v42  ;;  %v285_v41 = vld [vmem:[#allocation8 + $0x190] sm:$0xff]  ;;  %v564_v42 = vld [vmem:[%s4076_s5 + $0x248] sm:$0xff] }
  0x89   : > { %661 = vmatprep.subr.mxu0 %v3897_v0  ;;  %886 = vmatprep.subr.mxu1 %v3897_v0 }
  0x8a   : > { %662 = vmatpush2.msra.mxu0 %v517_v43  ;;  %887 = vmatpush2.msra.mxu1 %v549_v44  ;;  %v292_v43 = vld [vmem:[#allocation8 + $0x1c8] sm:$0xff] }
  0x8b   : > { %663 = vmatprep.subr.mxu0 %v3897_v0  ;;  %888 = vmatprep.subr.mxu1 %v3897_v0  ;;  %v596_v44 = vld [vmem:[%s4076_s5 + $0x348] sm:$0xff] }
  0x8c   : > { %664 = vmatpush2.msra.mxu0 %v516_v45  ;;  %889 = vmatpush2.msra.mxu1 %v548_v46  ;;  %v291_v45 = vld [vmem:[#allocation8 + $0x1c0] sm:$0xff]  ;;  %v294_v46 = vld [vmem:[#allocation8 + $0x1d8] sm:$0xff] }
  0x8d   : > { %665 = vmatprep.subr.mxu0 %v3897_v0  ;;  %890 = vmatprep.subr.mxu1 %v3897_v0 }
  0x8e   : > { %666 = vmatpush2.msra.mxu0 %v515_v47  ;;  %891 = vmatpush2.msra.mxu1 %v547_v48  ;;  %v293_v47 = vld [vmem:[#allocation8 + $0x1d0] sm:$0xff]  ;;  %v563_v48 = vld [vmem:[%s4076_s5 + $0x240] sm:$0xff] }
  0x8f   : > { %667 = vmatprep.subr.mxu0 %v3897_v0  ;;  %892 = vmatprep.subr.mxu1 %v3897_v0 }
  0x90   : > { %668 = vmatpush2.msra.mxu0 %v514_v49  ;;  %893 = vmatpush2.msra.mxu1 %v546_v50  ;;  %v300_v49 = vld [vmem:[#allocation8 + $0x208] sm:$0xff]  ;;  %v595_v50 = vld [vmem:[%s4076_s5 + $0x340] sm:$0xff] }
  0x91   : > { %669 = vmatprep.subr.mxu0 %v3897_v0  ;;  %894 = vmatprep.subr.mxu1 %v3897_v0 }
  0x92   : > { %670 = vmatpush2.msra.mxu0 %v513_v51  ;;  %895 = vmatpush2.msra.mxu1 %v545_v52  ;;  %v299_v51 = vld [vmem:[#allocation8 + $0x200] sm:$0xff]  ;;  %v302_v52 = vld [vmem:[#allocation8 + $0x218] sm:$0xff] }
  0x93   : > { %671 = vmatprep.subr.mxu0 %v3897_v0  ;;  %896 = vmatprep.subr.mxu1 %v3897_v0 }
  0x94   : > { %672 = vmatpush2.msra.mxu0 %v512_v53  ;;  %897 = vmatpush2.msra.mxu1 %v544_v54  ;;  %v301_v53 = vld [vmem:[#allocation8 + $0x210] sm:$0xff]  ;;  %v562_v54 = vld [vmem:[%s4076_s5 + $0x238] sm:$0xff] }
  0x95   : > { %673 = vmatprep.subr.mxu0 %v3897_v0  ;;  %898 = vmatprep.subr.mxu1 %v3897_v0 }
  0x96   : > { %674 = vmatpush2.msra.mxu0 %v511_v55  ;;  %899 = vmatpush2.msra.mxu1 %v543_v56  ;;  %v308_v55 = vld [vmem:[#allocation8 + $0x248] sm:$0xff]  ;;  %v594_v56 = vld [vmem:[%s4076_s5 + $0x338] sm:$0xff] }
  0x97   : > { %675 = vmatprep.subr.mxu0 %v3897_v0  ;;  %900 = vmatprep.subr.mxu1 %v3897_v0 }
  0x98   : > { %676 = vmatpush2.msra.mxu0 %v510_v57  ;;  %901 = vmatpush2.msra.mxu1 %v542_v58  ;;  %v307_v57 = vld [vmem:[#allocation8 + $0x240] sm:$0xff]  ;;  %v310_v58 = vld [vmem:[#allocation8 + $0x258] sm:$0xff] }
  0x99   : > { %677 = vmatprep.subr.mxu0 %v3897_v0  ;;  %902 = vmatprep.subr.mxu1 %v3897_v0 }
  0x9a   : > { %678 = vmatpush2.msra.mxu0 %v509_v59  ;;  %903 = vmatpush2.msra.mxu1 %v541_v60  ;;  %v309_v59 = vld [vmem:[#allocation8 + $0x250] sm:$0xff] }
  0x9b   : > { %679 = vmatprep.subr.mxu0 %v3897_v0  ;;  %904 = vmatprep.subr.mxu1 %v3897_v0  ;;  %v561_v60 = vld [vmem:[%s4076_s5 + $0x230] sm:$0xff] }
  0x9c   : > { %680 = vmatpush2.msra.mxu0 %v508_v61  ;;  %905 = vmatpush2.msra.mxu1 %v540_v62  ;;  %v316_v61 = vld [vmem:[#allocation8 + $0x288] sm:$0xff]  ;;  %v593_v62 = vld [vmem:[%s4076_s5 + $0x330] sm:$0xff] }
  0x9d   : > { %681 = vmatprep.subr.mxu0 %v3897_v0  ;;  %683 = vmatprep.mubr.f32.mxu0 %v236_v63  ;;  %v315_v63 = vld [vmem:[#allocation8 + $0x280] sm:$0xff] }
  0x9e   : > { %682 = vmatpush2.msra.mxu0 %v507_v1  ;;  %906 = vmatprep.subr.mxu1 %v3897_v0  ;;  %v318_v1 = vld [vmem:[#allocation8 + $0x298] sm:$0xff] }
  0x9f   : > { %684 = vmatmul.mubr.f32.vlgmr.msra.gmra.mxu0 %v235_v2  ;;  %907 = vmatpush2.msra.mxu1 %v539_v3  ;;  %v317_v2 = vld [vmem:[#allocation8 + $0x290] sm:$0xff]  ;;  %v560_v3 = vld [vmem:[%s4076_s5 + $0x228] sm:$0xff] }
  0xa0   : > { %908 = vmatprep.mubr.f32.mxu1 %v238_v4  ;;  %1069 = vmatprep.subr.mxu0 %v3897_v0  ;;  %v324_v4 = vld [vmem:[#allocation8 + $0x2c8] sm:$0xff] }
  0xa1   : > { %909 = vmatmul.mubr.f32.vlgmr.msra.gmra.mxu1 %v237_v5  ;;  %1070 = vmatpush1.msra.mxu0 %v570_v6  ;;  %v592_v5 = vld [vmem:[%s4076_s5 + $0x328] sm:$0xff]  ;;  %v323_v6 = vld [vmem:[#allocation8 + $0x2c0] sm:$0xff] }
  0xa2   : > { %1294 = vmatprep.subr.mxu1 %v3897_v0  ;;  %688 = vmatprep.mubr.f32.mxu0 %v244_v7  ;;  %v326_v7 = vld [vmem:[#allocation8 + $0x2d8] sm:$0xff] }
  0xa3   : > { %1295 = vmatpush1.msra.mxu1 %v602_v8  ;;  %689 = vmatmul.mubr.f32.gmra.mxu0 %v243_v9  ;;  %v325_v8 = vld [vmem:[#allocation8 + $0x2d0] sm:$0xff]  ;;  %v559_v9 = vld [vmem:[%s4076_s5 + $0x220] sm:$0xff] }
  0xa4   : > { %913 = vmatprep.mubr.f32.mxu1 %v246_v10  ;;  %1071 = vmatprep.subr.mxu0 %v3897_v0  ;;  %v332_v10 = vld [vmem:[#allocation8 + $0x308] sm:$0xff] }
  0xa5   : > { %914 = vmatmul.mubr.f32.gmra.mxu1 %v245_v11  ;;  %1072 = vmatpush1.msra.mxu0 %v569_v12  ;;  %v591_v11 = vld [vmem:[%s4076_s5 + $0x320] sm:$0xff] }
  0xa6   : > { %1296 = vmatprep.subr.mxu1 %v3897_v0  ;;  %693 = vmatprep.mubr.f32.mxu0 %v252_v13  ;;  %v331_v12 = vld [vmem:[#allocation8 + $0x300] sm:$0xff]  ;;  %v334_v13 = vld [vmem:[#allocation8 + $0x318] sm:$0xff] }
  0xa7   : > { %1297 = vmatpush1.msra.mxu1 %v601_v14  ;;  %694 = vmatmul.mubr.f32.gmra.mxu0 %v251_v15  ;;  %v333_v14 = vld [vmem:[#allocation8 + $0x310] sm:$0xff]  ;;  %v558_v15 = vld [vmem:[%s4076_s5 + $0x218] sm:$0xff] }
  0xa8   : > { %918 = vmatprep.mubr.f32.mxu1 %v254_v16  ;;  %1073 = vmatprep.subr.mxu0 %v3897_v0  ;;  %v340_v16 = vld [vmem:[#allocation8 + $0x348] sm:$0xff] }
  0xa9   : > { %919 = vmatmul.mubr.f32.gmra.mxu1 %v253_v17  ;;  %1074 = vmatpush1.msra.mxu0 %v568_v18  ;;  %v590_v17 = vld [vmem:[%s4076_s5 + $0x318] sm:$0xff]  ;;  %v339_v18 = vld [vmem:[#allocation8 + $0x340] sm:$0xff] }
  0xaa   : > { %1298 = vmatprep.subr.mxu1 %v3897_v0  ;;  %698 = vmatprep.mubr.f32.mxu0 %v260_v19  ;;  %v342_v19 = vld [vmem:[#allocation8 + $0x358] sm:$0xff] }
  0xab   : > { %1299 = vmatpush1.msra.mxu1 %v600_v20  ;;  %699 = vmatmul.mubr.f32.gmra.mxu0 %v259_v21  ;;  %v341_v20 = vld [vmem:[#allocation8 + $0x350] sm:$0xff] }
  0xac   : > { %923 = vmatprep.mubr.f32.mxu1 %v262_v22  ;;  %1075 = vmatprep.subr.mxu0 %v3897_v0  ;;  %v557_v21 = vld [vmem:[%s4076_s5 + $0x210] sm:$0xff]  ;;  %v348_v22 = vld [vmem:[#allocation8 + $0x388] sm:$0xff] }
  0xad   : > { %924 = vmatmul.mubr.f32.gmra.mxu1 %v261_v23  ;;  %1076 = vmatpush1.msra.mxu0 %v567_v24  ;;  %v589_v23 = vld [vmem:[%s4076_s5 + $0x310] sm:$0xff]  ;;  %v347_v24 = vld [vmem:[#allocation8 + $0x380] sm:$0xff] }
  0xae   : > { %1300 = vmatprep.subr.mxu1 %v3897_v0  ;;  %703 = vmatprep.mubr.f32.mxu0 %v268_v25  ;;  %v350_v25 = vld [vmem:[#allocation8 + $0x398] sm:$0xff] }
  0xaf   : > { %1301 = vmatpush1.msra.mxu1 %v599_v26  ;;  %704 = vmatmul.mubr.f32.gmra.mxu0 %v267_v27  ;;  %v349_v26 = vld [vmem:[#allocation8 + $0x390] sm:$0xff]  ;;  %v556_v27 = vld [vmem:[%s4076_s5 + $0x208] sm:$0xff] }
  0xb0   : > { %928 = vmatprep.mubr.f32.mxu1 %v270_v28  ;;  %1077 = vmatprep.subr.mxu0 %v3897_v0  ;;  %v356_v28 = vld [vmem:[#allocation8 + $0x3c8] sm:$0xff] }
  0xb1   : > { %929 = vmatmul.mubr.f32.gmra.mxu1 %v269_v29  ;;  %1078 = vmatpush1.msra.mxu0 %v566_v30  ;;  %v588_v29 = vld [vmem:[%s4076_s5 + $0x308] sm:$0xff]  ;;  %v355_v30 = vld [vmem:[#allocation8 + $0x3c0] sm:$0xff] }
  0xb2   : > { %1302 = vmatprep.subr.mxu1 %v3897_v0  ;;  %708 = vmatprep.mubr.f32.mxu0 %v276_v31  ;;  %v358_v31 = vld [vmem:[#allocation8 + $0x3d8] sm:$0xff] }
  0xb3   : > { %1303 = vmatpush1.msra.mxu1 %v598_v32  ;;  %709 = vmatmul.mubr.f32.gmra.mxu0 %v275_v33  ;;  %v357_v32 = vld [vmem:[#allocation8 + $0x3d0] sm:$0xff]  ;;  %v555_v33 = vld [vmem:[%s4076_s5 + $0x200] sm:$0xff] }
  0xb4   : > { %933 = vmatprep.mubr.f32.mxu1 %v278_v34  ;;  %1079 = vmatprep.subr.mxu0 %v3897_v0  ;;  %v364_v34 = vld [vmem:[#allocation8 + $0x408] sm:$0xff] }
  0xb5   : > { %934 = vmatmul.mubr.f32.gmra.mxu1 %v277_v35  ;;  %1080 = vmatpush1.msra.mxu0 %v565_v36  ;;  %v587_v35 = vld [vmem:[%s4076_s5 + $0x300] sm:$0xff] }
  0xb6   : > { %1304 = vmatprep.subr.mxu1 %v3897_v0  ;;  %713 = vmatprep.mubr.f32.mxu0 %v284_v37  ;;  %v363_v36 = vld [vmem:[#allocation8 + $0x400] sm:$0xff]  ;;  %v366_v37 = vld [vmem:[#allocation8 + $0x418] sm:$0xff] }
  0xb7   : > { %1305 = vmatpush1.msra.mxu1 %v597_v38  ;;  %714 = vmatmul.mubr.f32.gmra.mxu0 %v283_v39  ;;  %v365_v38 = vld [vmem:[#allocation8 + $0x410] sm:$0xff]  ;;  %v586_v39 = vld [vmem:[%s4076_s5 + $0x2f8] sm:$0xff] }
  0xb8   : > { %938 = vmatprep.mubr.f32.mxu1 %v286_v40  ;;  %1081 = vmatprep.subr.mxu0 %v3897_v0  ;;  %v372_v40 = vld [vmem:[#allocation8 + $0x448] sm:$0xff] }
  0xb9   : > { %939 = vmatmul.mubr.f32.gmra.mxu1 %v285_v41  ;;  %1082 = vmatpush1.msra.mxu0 %v564_v42  ;;  %v618_v41 = vld [vmem:[%s4076_s5 + $0x3f8] sm:$0xff]  ;;  %v371_v42 = vld [vmem:[#allocation8 + $0x440] sm:$0xff] }
  0xba   : > { %1306 = vmatprep.subr.mxu1 %v3897_v0  ;;  %718 = vmatprep.mubr.f32.mxu0 %v292_v43  ;;  %v374_v43 = vld [vmem:[#allocation8 + $0x458] sm:$0xff] }
  0xbb   : > { %1307 = vmatpush1.msra.mxu1 %v596_v44  ;;  %719 = vmatmul.mubr.f32.gmra.mxu0 %v291_v45  ;;  %v373_v44 = vld [vmem:[#allocation8 + $0x450] sm:$0xff] }
  0xbc   : > { %943 = vmatprep.mubr.f32.mxu1 %v294_v46  ;;  %1083 = vmatprep.subr.mxu0 %v3897_v0  ;;  %v585_v45 = vld [vmem:[%s4076_s5 + $0x2f0] sm:$0xff]  ;;  %v380_v46 = vld [vmem:[#allocation8 + $0x488] sm:$0xff] }
  0xbd   : > { %944 = vmatmul.mubr.f32.gmra.mxu1 %v293_v47  ;;  %1084 = vmatpush1.msra.mxu0 %v563_v48  ;;  %v617_v47 = vld [vmem:[%s4076_s5 + $0x3f0] sm:$0xff]  ;;  %v379_v48 = vld [vmem:[#allocation8 + $0x480] sm:$0xff] }
  0xbe   : > { %1308 = vmatprep.subr.mxu1 %v3897_v0  ;;  %723 = vmatprep.mubr.f32.mxu0 %v300_v49  ;;  %v382_v49 = vld [vmem:[#allocation8 + $0x498] sm:$0xff] }
  0xbf   : > { %1309 = vmatpush1.msra.mxu1 %v595_v50  ;;  %724 = vmatmul.mubr.f32.gmra.mxu0 %v299_v51  ;;  %v381_v50 = vld [vmem:[#allocation8 + $0x490] sm:$0xff]  ;;  %v584_v51 = vld [vmem:[%s4076_s5 + $0x2e8] sm:$0xff] }
  0xc0   : > { %948 = vmatprep.mubr.f32.mxu1 %v302_v52  ;;  %1085 = vmatprep.subr.mxu0 %v3897_v0  ;;  %v388_v52 = vld [vmem:[#allocation8 + $0x4c8] sm:$0xff] }
  0xc1   : > { %949 = vmatmul.mubr.f32.gmra.mxu1 %v301_v53  ;;  %1086 = vmatpush1.msra.mxu0 %v562_v54  ;;  %v616_v53 = vld [vmem:[%s4076_s5 + $0x3e8] sm:$0xff]  ;;  %v387_v54 = vld [vmem:[#allocation8 + $0x4c0] sm:$0xff] }
  0xc2   : > { %1310 = vmatprep.subr.mxu1 %v3897_v0  ;;  %728 = vmatprep.mubr.f32.mxu0 %v308_v55  ;;  %v390_v55 = vld [vmem:[#allocation8 + $0x4d8] sm:$0xff] }
  0xc3   : > { %1311 = vmatpush1.msra.mxu1 %v594_v56  ;;  %729 = vmatmul.mubr.f32.gmra.mxu0 %v307_v57  ;;  %v389_v56 = vld [vmem:[#allocation8 + $0x4d0] sm:$0xff]  ;;  %v583_v57 = vld [vmem:[%s4076_s5 + $0x2e0] sm:$0xff] }
  0xc4   : > { %953 = vmatprep.mubr.f32.mxu1 %v310_v58  ;;  %1087 = vmatprep.subr.mxu0 %v3897_v0  ;;  %v396_v58 = vld [vmem:[#allocation8 + $0x508] sm:$0xff] }
  0xc5   : > { %954 = vmatmul.mubr.f32.gmra.mxu1 %v309_v59  ;;  %1088 = vmatpush1.msra.mxu0 %v561_v60  ;;  %v615_v59 = vld [vmem:[%s4076_s5 + $0x3e0] sm:$0xff] }
  0xc6   : > { %1312 = vmatprep.subr.mxu1 %v3897_v0  ;;  %733 = vmatprep.mubr.f32.mxu0 %v316_v61  ;;  %v395_v60 = vld [vmem:[#allocation8 + $0x500] sm:$0xff]  ;;  %v398_v61 = vld [vmem:[#allocation8 + $0x518] sm:$0xff] }
  0xc7   : > { %1313 = vmatpush1.msra.mxu1 %v593_v62  ;;  %734 = vmatmul.mubr.f32.gmra.mxu0 %v315_v63  ;;  %v397_v62 = vld [vmem:[#allocation8 + $0x510] sm:$0xff]  ;;  %v582_v63 = vld [vmem:[%s4076_s5 + $0x2d8] sm:$0xff] }
  0xc8   : > { %958 = vmatprep.mubr.f32.mxu1 %v318_v1  ;;  %1089 = vmatprep.subr.mxu0 %v3897_v0  ;;  %v404_v1 = vld [vmem:[#allocation8 + $0x548] sm:$0xff] }
  0xc9   : > { %959 = vmatmul.mubr.f32.gmra.mxu1 %v317_v2  ;;  %1090 = vmatpush1.msra.mxu0 %v560_v3  ;;  %v614_v2 = vld [vmem:[%s4076_s5 + $0x3d8] sm:$0xff]  ;;  %v403_v3 = vld [vmem:[#allocation8 + $0x540] sm:$0xff] }
  0xca   : > { %1314 = vmatprep.subr.mxu1 %v3897_v0  ;;  %738 = vmatprep.mubr.f32.mxu0 %v324_v4  ;;  %v406_v4 = vld [vmem:[#allocation8 + $0x558] sm:$0xff] }
  0xcb   : > { %1315 = vmatpush1.msra.mxu1 %v592_v5  ;;  %739 = vmatmul.mubr.f32.gmra.mxu0 %v323_v6  ;;  %v405_v5 = vld [vmem:[#allocation8 + $0x550] sm:$0xff] }
  0xcc   : > { %963 = vmatprep.mubr.f32.mxu1 %v326_v7  ;;  %1091 = vmatprep.subr.mxu0 %v3897_v0  ;;  %v581_v6 = vld [vmem:[%s4076_s5 + $0x2d0] sm:$0xff]  ;;  %v412_v7 = vld [vmem:[#allocation8 + $0x588] sm:$0xff] }
  0xcd   : > { %964 = vmatmul.mubr.f32.gmra.mxu1 %v325_v8  ;;  %1092 = vmatpush1.msra.mxu0 %v559_v9  ;;  %v613_v8 = vld [vmem:[%s4076_s5 + $0x3d0] sm:$0xff]  ;;  %v411_v9 = vld [vmem:[#allocation8 + $0x580] sm:$0xff] }
  0xce   : > { %1316 = vmatprep.subr.mxu1 %v3897_v0  ;;  %743 = vmatprep.mubr.f32.mxu0 %v332_v10  ;;  %v414_v10 = vld [vmem:[#allocation8 + $0x598] sm:$0xff] }
  0xcf   : > { %1317 = vmatpush1.msra.mxu1 %v591_v11  ;;  %744 = vmatmul.mubr.f32.gmra.mxu0 %v331_v12  ;;  %v413_v11 = vld [vmem:[#allocation8 + $0x590] sm:$0xff]  ;;  %v580_v12 = vld [vmem:[%s4076_s5 + $0x2c8] sm:$0xff] }
  0xd0   : > { %968 = vmatprep.mubr.f32.mxu1 %v334_v13  ;;  %1093 = vmatprep.subr.mxu0 %v3897_v0  ;;  %v420_v13 = vld [vmem:[#allocation8 + $0x5c8] sm:$0xff] }
  0xd1   : > { %969 = vmatmul.mubr.f32.gmra.mxu1 %v333_v14  ;;  %1094 = vmatpush1.msra.mxu0 %v558_v15  ;;  %v612_v14 = vld [vmem:[%s4076_s5 + $0x3c8] sm:$0xff]  ;;  %v419_v15 = vld [vmem:[#allocation8 + $0x5c0] sm:$0xff] }
  0xd2   : > { %1318 = vmatprep.subr.mxu1 %v3897_v0  ;;  %748 = vmatprep.mubr.f32.mxu0 %v340_v16  ;;  %v422_v16 = vld [vmem:[#allocation8 + $0x5d8] sm:$0xff] }
  0xd3   : > { %1319 = vmatpush1.msra.mxu1 %v590_v17  ;;  %749 = vmatmul.mubr.f32.gmra.mxu0 %v339_v18  ;;  %v421_v17 = vld [vmem:[#allocation8 + $0x5d0] sm:$0xff]  ;;  %v579_v18 = vld [vmem:[%s4076_s5 + $0x2c0] sm:$0xff] }
  0xd4   : > { %973 = vmatprep.mubr.f32.mxu1 %v342_v19  ;;  %1095 = vmatprep.subr.mxu0 %v3897_v0  ;;  %v428_v19 = vld [vmem:[#allocation8 + $0x608] sm:$0xff] }
  0xd5   : > { %974 = vmatmul.mubr.f32.gmra.mxu1 %v341_v20  ;;  %1096 = vmatpush1.msra.mxu0 %v557_v21  ;;  %v611_v20 = vld [vmem:[%s4076_s5 + $0x3c0] sm:$0xff] }
  0xd6   : > { %1320 = vmatprep.subr.mxu1 %v3897_v0  ;;  %753 = vmatprep.mubr.f32.mxu0 %v348_v22  ;;  %v427_v21 = vld [vmem:[#allocation8 + $0x600] sm:$0xff]  ;;  %v430_v22 = vld [vmem:[#allocation8 + $0x618] sm:$0xff] }
  0xd7   : > { %1321 = vmatpush1.msra.mxu1 %v589_v23  ;;  %754 = vmatmul.mubr.f32.gmra.mxu0 %v347_v24  ;;  %v429_v23 = vld [vmem:[#allocation8 + $0x610] sm:$0xff]  ;;  %v578_v24 = vld [vmem:[%s4076_s5 + $0x2b8] sm:$0xff] }
  0xd8   : > { %978 = vmatprep.mubr.f32.mxu1 %v350_v25  ;;  %1097 = vmatprep.subr.mxu0 %v3897_v0  ;;  %v436_v25 = vld [vmem:[#allocation8 + $0x648] sm:$0xff] }
  0xd9   : > { %979 = vmatmul.mubr.f32.gmra.mxu1 %v349_v26  ;;  %1098 = vmatpush1.msra.mxu0 %v556_v27  ;;  %v610_v26 = vld [vmem:[%s4076_s5 + $0x3b8] sm:$0xff]  ;;  %v435_v27 = vld [vmem:[#allocation8 + $0x640] sm:$0xff] }
  0xda   : > { %1322 = vmatprep.subr.mxu1 %v3897_v0  ;;  %758 = vmatprep.mubr.f32.mxu0 %v356_v28  ;;  %v438_v28 = vld [vmem:[#allocation8 + $0x658] sm:$0xff] }
  0xdb   : > { %1323 = vmatpush1.msra.mxu1 %v588_v29  ;;  %759 = vmatmul.mubr.f32.gmra.mxu0 %v355_v30  ;;  %v437_v29 = vld [vmem:[#allocation8 + $0x650] sm:$0xff] }
  0xdc   : > { %983 = vmatprep.mubr.f32.mxu1 %v358_v31  ;;  %1099 = vmatprep.subr.mxu0 %v3897_v0  ;;  %v577_v30 = vld [vmem:[%s4076_s5 + $0x2b0] sm:$0xff]  ;;  %v444_v31 = vld [vmem:[#allocation8 + $0x688] sm:$0xff] }
  0xdd   : > { %984 = vmatmul.mubr.f32.gmra.mxu1 %v357_v32  ;;  %1100 = vmatpush1.msra.mxu0 %v555_v33  ;;  %v609_v32 = vld [vmem:[%s4076_s5 + $0x3b0] sm:$0xff]  ;;  %v443_v33 = vld [vmem:[#allocation8 + $0x680] sm:$0xff] }
  0xde   : > { %1324 = vmatprep.subr.mxu1 %v3897_v0  ;;  %763 = vmatprep.mubr.f32.mxu0 %v364_v34  ;;  %v446_v34 = vld [vmem:[#allocation8 + $0x698] sm:$0xff] }
  0xdf   : > { %1325 = vmatpush1.msra.mxu1 %v587_v35  ;;  %764 = vmatmul.mubr.f32.gmra.mxu0 %v363_v36  ;;  %v445_v35 = vld [vmem:[#allocation8 + $0x690] sm:$0xff]  ;;  %v576_v36 = vld [vmem:[%s4076_s5 + $0x2a8] sm:$0xff] }
  0xe0   : > { %988 = vmatprep.mubr.f32.mxu1 %v366_v37  ;;  %1101 = vmatprep.subr.mxu0 %v3897_v0  ;;  %v452_v37 = vld [vmem:[#allocation8 + $0x6c8] sm:$0xff] }
  0xe1   : > { %989 = vmatmul.mubr.f32.gmra.mxu1 %v365_v38  ;;  %1102 = vmatpush2.msra.mxu0 %v586_v39  ;;  %v608_v38 = vld [vmem:[%s4076_s5 + $0x3a8] sm:$0xff]  ;;  %v451_v39 = vld [vmem:[#allocation8 + $0x6c0] sm:$0xff] }
  0xe2   : > { %1326 = vmatprep.subr.mxu1 %v3897_v0  ;;  %768 = vmatprep.mubr.f32.mxu0 %v372_v40  ;;  %v454_v40 = vld [vmem:[#allocation8 + $0x6d8] sm:$0xff] }
  0xe3   : > { %1327 = vmatpush2.msra.mxu1 %v618_v41  ;;  %769 = vmatmul.mubr.f32.gmra.mxu0 %v371_v42  ;;  %v453_v41 = vld [vmem:[#allocation8 + $0x6d0] sm:$0xff]  ;;  %v575_v42 = vld [vmem:[%s4076_s5 + $0x2a0] sm:$0xff] }
  0xe4   : > { %993 = vmatprep.mubr.f32.mxu1 %v374_v43  ;;  %1103 = vmatprep.subr.mxu0 %v3897_v0  ;;  %v460_v43 = vld [vmem:[#allocation8 + $0x708] sm:$0xff] }
  0xe5   : > { %994 = vmatmul.mubr.f32.gmra.mxu1 %v373_v44  ;;  %1104 = vmatpush2.msra.mxu0 %v585_v45  ;;  %v607_v44 = vld [vmem:[%s4076_s5 + $0x3a0] sm:$0xff] }
  0xe6   : > { %1328 = vmatprep.subr.mxu1 %v3897_v0  ;;  %773 = vmatprep.mubr.f32.mxu0 %v380_v46  ;;  %v459_v45 = vld [vmem:[#allocation8 + $0x700] sm:$0xff]  ;;  %v462_v46 = vld [vmem:[#allocation8 + $0x718] sm:$0xff] }
  0xe7   : > { %1329 = vmatpush2.msra.mxu1 %v617_v47  ;;  %774 = vmatmul.mubr.f32.gmra.mxu0 %v379_v48  ;;  %v461_v47 = vld [vmem:[#allocation8 + $0x710] sm:$0xff]  ;;  %v574_v48 = vld [vmem:[%s4076_s5 + $0x298] sm:$0xff] }
  0xe8   : > { %998 = vmatprep.mubr.f32.mxu1 %v382_v49  ;;  %1105 = vmatprep.subr.mxu0 %v3897_v0  ;;  %v468_v49 = vld [vmem:[#allocation8 + $0x748] sm:$0xff] }
  0xe9   : > { %999 = vmatmul.mubr.f32.gmra.mxu1 %v381_v50  ;;  %1106 = vmatpush2.msra.mxu0 %v584_v51  ;;  %v606_v50 = vld [vmem:[%s4076_s5 + $0x398] sm:$0xff]  ;;  %v467_v51 = vld [vmem:[#allocation8 + $0x740] sm:$0xff] }
  0xea   : > { %1330 = vmatprep.subr.mxu1 %v3897_v0  ;;  %778 = vmatprep.mubr.f32.mxu0 %v388_v52  ;;  %v470_v52 = vld [vmem:[#allocation8 + $0x758] sm:$0xff] }
  0xeb   : > { %1331 = vmatpush2.msra.mxu1 %v616_v53  ;;  %779 = vmatmul.mubr.f32.gmra.mxu0 %v387_v54  ;;  %v469_v53 = vld [vmem:[#allocation8 + $0x750] sm:$0xff] }
  0xec   : > { %1003 = vmatprep.mubr.f32.mxu1 %v390_v55  ;;  %1107 = vmatprep.subr.mxu0 %v3897_v0  ;;  %v573_v54 = vld [vmem:[%s4076_s5 + $0x290] sm:$0xff]  ;;  %v476_v55 = vld [vmem:[#allocation8 + $0x788] sm:$0xff] }
  0xed   : > { %1004 = vmatmul.mubr.f32.gmra.mxu1 %v389_v56  ;;  %1108 = vmatpush2.msra.mxu0 %v583_v57  ;;  %v605_v56 = vld [vmem:[%s4076_s5 + $0x390] sm:$0xff]  ;;  %v475_v57 = vld [vmem:[#allocation8 + $0x780] sm:$0xff] }
  0xee   : > { %1332 = vmatprep.subr.mxu1 %v3897_v0  ;;  %783 = vmatprep.mubr.f32.mxu0 %v396_v58  ;;  %v478_v58 = vld [vmem:[#allocation8 + $0x798] sm:$0xff] }
  0xef   : > { %1333 = vmatpush2.msra.mxu1 %v615_v59  ;;  %784 = vmatmul.mubr.f32.gmra.mxu0 %v395_v60  ;;  %v477_v59 = vld [vmem:[#allocation8 + $0x790] sm:$0xff]  ;;  %v572_v60 = vld [vmem:[%s4076_s5 + $0x288] sm:$0xff] }
  0xf0   : > { %1008 = vmatprep.mubr.f32.mxu1 %v398_v61  ;;  %1109 = vmatprep.subr.mxu0 %v3897_v0  ;;  %v484_v61 = vld [vmem:[#allocation8 + $0x7c8] sm:$0xff] }
  0xf1   : > { %1009 = vmatmul.mubr.f32.gmra.mxu1 %v397_v62  ;;  %1110 = vmatpush2.msra.mxu0 %v582_v63  ;;  %v604_v62 = vld [vmem:[%s4076_s5 + $0x388] sm:$0xff]  ;;  %v483_v63 = vld [vmem:[#allocation8 + $0x7c0] sm:$0xff] }
  0xf2   : > { %1334 = vmatprep.subr.mxu1 %v3897_v0  ;;  %788 = vmatprep.mubr.f32.mxu0 %v404_v1  ;;  %v486_v1 = vld [vmem:[#allocation8 + $0x7d8] sm:$0xff] }
  0xf3   : > { %1335 = vmatpush2.msra.mxu1 %v614_v2  ;;  %789 = vmatmul.mubr.f32.gmra.mxu0 %v403_v3  ;;  %v485_v2 = vld [vmem:[#allocation8 + $0x7d0] sm:$0xff]  ;;  %v571_v3 = vld [vmem:[%s4076_s5 + $0x280] sm:$0xff] }
  0xf4   : > { %1013 = vmatprep.mubr.f32.mxu1 %v406_v4  ;;  %1111 = vmatprep.subr.mxu0 %v3897_v0  ;;  %v240_v4 = vld [vmem:[#allocation8 + $0x28] sm:$0xff] }
  0xf5   : > { %1014 = vmatmul.mubr.f32.gmra.mxu1 %v405_v5  ;;  %1112 = vmatpush2.msra.mxu0 %v581_v6  ;;  %v603_v5 = vld [vmem:[%s4076_s5 + $0x380] sm:$0xff] }
  0xf6   : > { %1336 = vmatprep.subr.mxu1 %v3897_v0  ;;  %793 = vmatprep.mubr.f32.mxu0 %v412_v7  ;;  %v239_v6 = vld [vmem:[#allocation8 + $0x20] sm:$0xff]  ;;  %v242_v7 = vld [vmem:[#allocation8 + $0x38] sm:$0xff] }
  0xf7   : > { %1337 = vmatpush2.msra.mxu1 %v613_v8  ;;  %794 = vmatmul.mubr.f32.gmra.mxu0 %v411_v9  ;;  %v241_v8 = vld [vmem:[#allocation8 + $0x30] sm:$0xff]  ;;  %v1534_v9 = vld [vmem:[%s4083_s9 + $0x78] sm:$0xff] }
  0xf8   : > { %1018 = vmatprep.mubr.f32.mxu1 %v414_v10  ;;  %1113 = vmatprep.subr.mxu0 %v3897_v0  ;;  %v248_v10 = vld [vmem:[#allocation8 + $0x68] sm:$0xff] }
  0xf9   : > { %1019 = vmatmul.mubr.f32.gmra.mxu1 %v413_v11  ;;  %1114 = vmatpush2.msra.mxu0 %v580_v12  ;;  %v1566_v11 = vld [vmem:[%s4083_s9 + $0x178] sm:$0xff]  ;;  %v247_v12 = vld [vmem:[#allocation8 + $0x60] sm:$0xff] }
  0xfa   : > { %1338 = vmatprep.subr.mxu1 %v3897_v0  ;;  %798 = vmatprep.mubr.f32.mxu0 %v420_v13  ;;  %v250_v13 = vld [vmem:[#allocation8 + $0x78] sm:$0xff] }
  0xfb   : > { %1339 = vmatpush2.msra.mxu1 %v612_v14  ;;  %799 = vmatmul.mubr.f32.gmra.mxu0 %v419_v15  ;;  %v249_v14 = vld [vmem:[#allocation8 + $0x70] sm:$0xff] }
  0xfc   : > { %1023 = vmatprep.mubr.f32.mxu1 %v422_v16  ;;  %1115 = vmatprep.subr.mxu0 %v3897_v0  ;;  %v1533_v15 = vld [vmem:[%s4083_s9 + $0x70] sm:$0xff]  ;;  %v256_v16 = vld [vmem:[#allocation8 + $0xa8] sm:$0xff] }
  0xfd   : > { %1024 = vmatmul.mubr.f32.gmra.mxu1 %v421_v17  ;;  %1116 = vmatpush2.msra.mxu0 %v579_v18  ;;  %v1565_v17 = vld [vmem:[%s4083_s9 + $0x170] sm:$0xff]  ;;  %v255_v18 = vld [vmem:[#allocation8 + $0xa0] sm:$0xff] }
  0xfe   : > { %1340 = vmatprep.subr.mxu1 %v3897_v0  ;;  %803 = vmatprep.mubr.f32.mxu0 %v428_v19  ;;  %v258_v19 = vld [vmem:[#allocation8 + $0xb8] sm:$0xff] }
  0xff   : > { %1341 = vmatpush2.msra.mxu1 %v611_v20  ;;  %804 = vmatmul.mubr.f32.gmra.mxu0 %v427_v21  ;;  %v257_v20 = vld [vmem:[#allocation8 + $0xb0] sm:$0xff]  ;;  %v1532_v21 = vld [vmem:[%s4083_s9 + $0x68] sm:$0xff] }
 0x100   : > { %1028 = vmatprep.mubr.f32.mxu1 %v430_v22  ;;  %1117 = vmatprep.subr.mxu0 %v3897_v0  ;;  %v264_v22 = vld [vmem:[#allocation8 + $0xe8] sm:$0xff] }
 0x101   : > { %1029 = vmatmul.mubr.f32.gmra.mxu1 %v429_v23  ;;  %1118 = vmatpush2.msra.mxu0 %v578_v24  ;;  %v1564_v23 = vld [vmem:[%s4083_s9 + $0x168] sm:$0xff]  ;;  %v263_v24 = vld [vmem:[#allocation8 + $0xe0] sm:$0xff] }
 0x102   : > { %1342 = vmatprep.subr.mxu1 %v3897_v0  ;;  %808 = vmatprep.mubr.f32.mxu0 %v436_v25  ;;  %v266_v25 = vld [vmem:[#allocation8 + $0xf8] sm:$0xff] }
 0x103   : > { %1343 = vmatpush2.msra.mxu1 %v610_v26  ;;  %809 = vmatmul.mubr.f32.gmra.mxu0 %v435_v27  ;;  %v265_v26 = vld [vmem:[#allocation8 + $0xf0] sm:$0xff]  ;;  %v1531_v27 = vld [vmem:[%s4083_s9 + $0x60] sm:$0xff] }
 0x104   : > { %1033 = vmatprep.mubr.f32.mxu1 %v438_v28  ;;  %1119 = vmatprep.subr.mxu0 %v3897_v0  ;;  %v272_v28 = vld [vmem:[#allocation8 + $0x128] sm:$0xff] }
 0x105   : > { %1034 = vmatmul.mubr.f32.gmra.mxu1 %v437_v29  ;;  %1120 = vmatpush2.msra.mxu0 %v577_v30  ;;  %v1563_v29 = vld [vmem:[%s4083_s9 + $0x160] sm:$0xff] }
 0x106   : > { %1344 = vmatprep.subr.mxu1 %v3897_v0  ;;  %813 = vmatprep.mubr.f32.mxu0 %v444_v31  ;;  %v271_v30 = vld [vmem:[#allocation8 + $0x120] sm:$0xff]  ;;  %v274_v31 = vld [vmem:[#allocation8 + $0x138] sm:$0xff] }
 0x107   : > { %1345 = vmatpush2.msra.mxu1 %v609_v32  ;;  %814 = vmatmul.mubr.f32.gmra.mxu0 %v443_v33  ;;  %v273_v32 = vld [vmem:[#allocation8 + $0x130] sm:$0xff]  ;;  %v1530_v33 = vld [vmem:[%s4083_s9 + $0x58] sm:$0xff] }
 0x108   : > { %1038 = vmatprep.mubr.f32.mxu1 %v446_v34  ;;  %1121 = vmatprep.subr.mxu0 %v3897_v0  ;;  %v280_v34 = vld [vmem:[#allocation8 + $0x168] sm:$0xff] }
 0x109   : > { %1039 = vmatmul.mubr.f32.gmra.mxu1 %v445_v35  ;;  %1122 = vmatpush2.msra.mxu0 %v576_v36  ;;  %v1562_v35 = vld [vmem:[%s4083_s9 + $0x158] sm:$0xff]  ;;  %v279_v36 = vld [vmem:[#allocation8 + $0x160] sm:$0xff] }
 0x10a   : > { %1346 = vmatprep.subr.mxu1 %v3897_v0  ;;  %818 = vmatprep.mubr.f32.mxu0 %v452_v37  ;;  %v282_v37 = vld [vmem:[#allocation8 + $0x178] sm:$0xff] }
 0x10b   : > { %1347 = vmatpush2.msra.mxu1 %v608_v38  ;;  %819 = vmatmul.mubr.f32.gmra.mxu0 %v451_v39  ;;  %v281_v38 = vld [vmem:[#allocation8 + $0x170] sm:$0xff] }
 0x10c   : > { %1043 = vmatprep.mubr.f32.mxu1 %v454_v40  ;;  %1123 = vmatprep.subr.mxu0 %v3897_v0  ;;  %v1529_v39 = vld [vmem:[%s4083_s9 + $0x50] sm:$0xff]  ;;  %v288_v40 = vld [vmem:[#allocation8 + $0x1a8] sm:$0xff] }
 0x10d   : > { %1044 = vmatmul.mubr.f32.gmra.mxu1 %v453_v41  ;;  %1124 = vmatpush2.msra.mxu0 %v575_v42  ;;  %v1561_v41 = vld [vmem:[%s4083_s9 + $0x150] sm:$0xff]  ;;  %v287_v42 = vld [vmem:[#allocation8 + $0x1a0] sm:$0xff] }
 0x10e   : > { %1348 = vmatprep.subr.mxu1 %v3897_v0  ;;  %823 = vmatprep.mubr.f32.mxu0 %v460_v43  ;;  %v290_v43 = vld [vmem:[#allocation8 + $0x1b8] sm:$0xff] }
 0x10f   : > { %1349 = vmatpush2.msra.mxu1 %v607_v44  ;;  %824 = vmatmul.mubr.f32.gmra.mxu0 %v459_v45  ;;  %v289_v44 = vld [vmem:[#allocation8 + $0x1b0] sm:$0xff]  ;;  %v1528_v45 = vld [vmem:[%s4083_s9 + $0x48] sm:$0xff] }
 0x110   : > { %1048 = vmatprep.mubr.f32.mxu1 %v462_v46  ;;  %1125 = vmatprep.subr.mxu0 %v3897_v0  ;;  %v296_v46 = vld [vmem:[#allocation8 + $0x1e8] sm:$0xff] }
 0x111   : > { %1049 = vmatmul.mubr.f32.gmra.mxu1 %v461_v47  ;;  %1126 = vmatpush2.msra.mxu0 %v574_v48  ;;  %v1560_v47 = vld [vmem:[%s4083_s9 + $0x148] sm:$0xff]  ;;  %v295_v48 = vld [vmem:[#allocation8 + $0x1e0] sm:$0xff] }
 0x112   : > { %1350 = vmatprep.subr.mxu1 %v3897_v0  ;;  %828 = vmatprep.mubr.f32.mxu0 %v468_v49  ;;  %v298_v49 = vld [vmem:[#allocation8 + $0x1f8] sm:$0xff] }
 0x113   : > { %1351 = vmatpush2.msra.mxu1 %v606_v50  ;;  %829 = vmatmul.mubr.f32.gmra.mxu0 %v467_v51  ;;  %v297_v50 = vld [vmem:[#allocation8 + $0x1f0] sm:$0xff]  ;;  %v1527_v51 = vld [vmem:[%s4083_s9 + $0x40] sm:$0xff] }
 0x114   : > { %1053 = vmatprep.mubr.f32.mxu1 %v470_v52  ;;  %1127 = vmatprep.subr.mxu0 %v3897_v0  ;;  %v304_v52 = vld [vmem:[#allocation8 + $0x228] sm:$0xff] }
 0x115   : > { %1054 = vmatmul.mubr.f32.gmra.mxu1 %v469_v53  ;;  %1128 = vmatpush2.msra.mxu0 %v573_v54  ;;  %v1559_v53 = vld [vmem:[%s4083_s9 + $0x140] sm:$0xff] }
 0x116   : > { %1352 = vmatprep.subr.mxu1 %v3897_v0  ;;  %833 = vmatprep.mubr.f32.mxu0 %v476_v55  ;;  %v303_v54 = vld [vmem:[#allocation8 + $0x220] sm:$0xff]  ;;  %v306_v55 = vld [vmem:[#allocation8 + $0x238] sm:$0xff] }
 0x117   : > { %1353 = vmatpush2.msra.mxu1 %v605_v56  ;;  %834 = vmatmul.mubr.f32.gmra.mxu0 %v475_v57  ;;  %v305_v56 = vld [vmem:[#allocation8 + $0x230] sm:$0xff]  ;;  %v1526_v57 = vld [vmem:[%s4083_s9 + $0x38] sm:$0xff] }
 0x118   : > { %1058 = vmatprep.mubr.f32.mxu1 %v478_v58  ;;  %1129 = vmatprep.subr.mxu0 %v3897_v0  ;;  %v312_v58 = vld [vmem:[#allocation8 + $0x268] sm:$0xff] }
 0x119   : > { %1059 = vmatmul.mubr.f32.gmra.mxu1 %v477_v59  ;;  %1130 = vmatpush2.msra.mxu0 %v572_v60  ;;  %v1558_v59 = vld [vmem:[%s4083_s9 + $0x138] sm:$0xff]  ;;  %v311_v60 = vld [vmem:[#allocation8 + $0x260] sm:$0xff] }
 0x11a   : > { %1354 = vmatprep.subr.mxu1 %v3897_v0  ;;  %838 = vmatprep.mubr.f32.mxu0 %v484_v61  ;;  %v314_v61 = vld [vmem:[#allocation8 + $0x278] sm:$0xff] }
 0x11b   : > { %1355 = vmatpush2.msra.mxu1 %v604_v62  ;;  %839 = vmatmul.mubr.f32.gmra.mxu0 %v483_v63  ;;  %v313_v62 = vld [vmem:[#allocation8 + $0x270] sm:$0xff] }
 0x11c   : > { %1063 = vmatprep.mubr.f32.mxu1 %v486_v1  ;;  %1131 = vmatprep.subr.mxu0 %v3897_v0  ;;  %v1525_v63 = vld [vmem:[%s4083_s9 + $0x30] sm:$0xff]  ;;  %v320_v1 = vld [vmem:[#allocation8 + $0x2a8] sm:$0xff] }
 0x11d   : > { %1064 = vmatmul.mubr.f32.gmra.mxu1 %v485_v2  ;;  %1132 = vmatpush2.msra.mxu0 %v571_v3  ;;  %v1557_v2 = vld [vmem:[%s4083_s9 + $0x130] sm:$0xff]  ;;  %v319_v3 = vld [vmem:[#allocation8 + $0x2a0] sm:$0xff] }
 0x11e   : > { %1356 = vmatprep.subr.mxu1 %v3897_v0  ;;  %1133 = vmatprep.mubr.f32.mxu0 %v240_v4  ;;  %v322_v4 = vld [vmem:[#allocation8 + $0x2b8] sm:$0xff] }
 0x11f   : > { %1357 = vmatpush2.msra.mxu1 %v603_v5  ;;  %1134 = vmatmul.mubr.f32.vlgmr.msra.gmra.mxu0 %v239_v6  ;;  %v321_v5 = vld [vmem:[#allocation8 + $0x2b0] sm:$0xff]  ;;  %v1524_v6 = vld [vmem:[%s4083_s9 + $0x28] sm:$0xff] }
 0x120   : > { %1358 = vmatprep.mubr.f32.mxu1 %v242_v7  ;;  %1647 = vmatprep.subr.mxu0 %v3897_v0  ;;  %v328_v7 = vld [vmem:[#allocation8 + $0x2e8] sm:$0xff] }
 0x121   : > { %1359 = vmatmul.mubr.f32.vlgmr.msra.gmra.mxu1 %v241_v8  ;;  %1648 = vmatpush1.msra.mxu0 %v1534_v9  ;;  %v1556_v8 = vld [vmem:[%s4083_s9 + $0x128] sm:$0xff]  ;;  %v327_v9 = vld [vmem:[#allocation8 + $0x2e0] sm:$0xff] }
 0x122   : > { %1872 = vmatprep.subr.mxu1 %v3897_v0  ;;  %1138 = vmatprep.mubr.f32.mxu0 %v248_v10  ;;  %v330_v10 = vld [vmem:[#allocation8 + $0x2f8] sm:$0xff] }
 0x123   : > { %1873 = vmatpush1.msra.mxu1 %v1566_v11  ;;  %1139 = vmatmul.mubr.f32.gmra.mxu0 %v247_v12  ;;  %v329_v11 = vld [vmem:[#allocation8 + $0x2f0] sm:$0xff]  ;;  %v1523_v12 = vld [vmem:[%s4083_s9 + $0x20] sm:$0xff] }
 0x124   : > { %1363 = vmatprep.mubr.f32.mxu1 %v250_v13  ;;  %1649 = vmatprep.subr.mxu0 %v3897_v0  ;;  %v336_v13 = vld [vmem:[#allocation8 + $0x328] sm:$0xff] }
 0x125   : > { %1364 = vmatmul.mubr.f32.gmra.mxu1 %v249_v14  ;;  %1650 = vmatpush1.msra.mxu0 %v1533_v15  ;;  %v1555_v14 = vld [vmem:[%s4083_s9 + $0x120] sm:$0xff] }
 0x126   : > { %1874 = vmatprep.subr.mxu1 %v3897_v0  ;;  %1143 = vmatprep.mubr.f32.mxu0 %v256_v16  ;;  %v335_v15 = vld [vmem:[#allocation8 + $0x320] sm:$0xff]  ;;  %v338_v16 = vld [vmem:[#allocation8 + $0x338] sm:$0xff] }
 0x127   : > { %1875 = vmatpush1.msra.mxu1 %v1565_v17  ;;  %1144 = vmatmul.mubr.f32.gmra.mxu0 %v255_v18  ;;  %v337_v17 = vld [vmem:[#allocation8 + $0x330] sm:$0xff]  ;;  %v1522_v18 = vld [vmem:[%s4083_s9 + $0x18] sm:$0xff] }
 0x128   : > { %1368 = vmatprep.mubr.f32.mxu1 %v258_v19  ;;  %1651 = vmatprep.subr.mxu0 %v3897_v0  ;;  %v344_v19 = vld [vmem:[#allocation8 + $0x368] sm:$0xff] }
 0x129   : > { %1369 = vmatmul.mubr.f32.gmra.mxu1 %v257_v20  ;;  %1652 = vmatpush1.msra.mxu0 %v1532_v21  ;;  %v1554_v20 = vld [vmem:[%s4083_s9 + $0x118] sm:$0xff]  ;;  %v343_v21 = vld [vmem:[#allocation8 + $0x360] sm:$0xff] }
 0x12a   : > { %1876 = vmatprep.subr.mxu1 %v3897_v0  ;;  %1148 = vmatprep.mubr.f32.mxu0 %v264_v22  ;;  %v346_v22 = vld [vmem:[#allocation8 + $0x378] sm:$0xff] }
 0x12b   : > { %1877 = vmatpush1.msra.mxu1 %v1564_v23  ;;  %1149 = vmatmul.mubr.f32.gmra.mxu0 %v263_v24  ;;  %v345_v23 = vld [vmem:[#allocation8 + $0x370] sm:$0xff] }
 0x12c   : > { %1373 = vmatprep.mubr.f32.mxu1 %v266_v25  ;;  %1653 = vmatprep.subr.mxu0 %v3897_v0  ;;  %v1521_v24 = vld [vmem:[%s4083_s9 + $0x10] sm:$0xff]  ;;  %v352_v25 = vld [vmem:[#allocation8 + $0x3a8] sm:$0xff] }
 0x12d   : > { %1374 = vmatmul.mubr.f32.gmra.mxu1 %v265_v26  ;;  %1654 = vmatpush1.msra.mxu0 %v1531_v27  ;;  %v1553_v26 = vld [vmem:[%s4083_s9 + $0x110] sm:$0xff]  ;;  %v351_v27 = vld [vmem:[#allocation8 + $0x3a0] sm:$0xff] }
 0x12e   : > { %1878 = vmatprep.subr.mxu1 %v3897_v0  ;;  %1153 = vmatprep.mubr.f32.mxu0 %v272_v28  ;;  %v354_v28 = vld [vmem:[#allocation8 + $0x3b8] sm:$0xff] }
 0x12f   : > { %1879 = vmatpush1.msra.mxu1 %v1563_v29  ;;  %1154 = vmatmul.mubr.f32.gmra.mxu0 %v271_v30  ;;  %v353_v29 = vld [vmem:[#allocation8 + $0x3b0] sm:$0xff]  ;;  %v1520_v30 = vld [vmem:[%s4083_s9 + $0x8] sm:$0xff] }
 0x130   : > { %1378 = vmatprep.mubr.f32.mxu1 %v274_v31  ;;  %1655 = vmatprep.subr.mxu0 %v3897_v0  ;;  %v360_v31 = vld [vmem:[#allocation8 + $0x3e8] sm:$0xff] }
 0x131   : > { %1379 = vmatmul.mubr.f32.gmra.mxu1 %v273_v32  ;;  %1656 = vmatpush1.msra.mxu0 %v1530_v33  ;;  %v1552_v32 = vld [vmem:[%s4083_s9 + $0x108] sm:$0xff]  ;;  %v359_v33 = vld [vmem:[#allocation8 + $0x3e0] sm:$0xff] }
 0x132   : > { %1880 = vmatprep.subr.mxu1 %v3897_v0  ;;  %1158 = vmatprep.mubr.f32.mxu0 %v280_v34  ;;  %v362_v34 = vld [vmem:[#allocation8 + $0x3f8] sm:$0xff] }
 0x133   : > { %1881 = vmatpush1.msra.mxu1 %v1562_v35  ;;  %1159 = vmatmul.mubr.f32.gmra.mxu0 %v279_v36  ;;  %v361_v35 = vld [vmem:[#allocation8 + $0x3f0] sm:$0xff]  ;;  %v1519_v36 = vld [vmem:[%s4083_s9] sm:$0xff] }
 0x134   : > { %1383 = vmatprep.mubr.f32.mxu1 %v282_v37  ;;  %1657 = vmatprep.subr.mxu0 %v3897_v0  ;;  %v368_v37 = vld [vmem:[#allocation8 + $0x428] sm:$0xff] }
 0x135   : > { %1384 = vmatmul.mubr.f32.gmra.mxu1 %v281_v38  ;;  %1658 = vmatpush1.msra.mxu0 %v1529_v39  ;;  %v1551_v38 = vld [vmem:[%s4083_s9 + $0x100] sm:$0xff] }
 0x136   : > { %1882 = vmatprep.subr.mxu1 %v3897_v0  ;;  %1163 = vmatprep.mubr.f32.mxu0 %v288_v40  ;;  %v367_v39 = vld [vmem:[#allocation8 + $0x420] sm:$0xff]  ;;  %v370_v40 = vld [vmem:[#allocation8 + $0x438] sm:$0xff] }
 0x137   : > { %1883 = vmatpush1.msra.mxu1 %v1561_v41  ;;  %1164 = vmatmul.mubr.f32.gmra.mxu0 %v287_v42  ;;  %v369_v41 = vld [vmem:[#allocation8 + $0x430] sm:$0xff]  ;;  %v1550_v42 = vld [vmem:[%s4083_s9 + $0xf8] sm:$0xff] }
 0x138   : > { %1388 = vmatprep.mubr.f32.mxu1 %v290_v43  ;;  %1659 = vmatprep.subr.mxu0 %v3897_v0 }
 0x139   : > { %1389 = vmatmul.mubr.f32.gmra.mxu1 %v289_v44  ;;  %1660 = vmatpush1.msra.mxu0 %v1528_v45  ;;  %v376_v44 = vld [vmem:[#allocation8 + $0x468] sm:$0xff]  ;;  %v1582_v45 = vld [vmem:[%s4083_s9 + $0x1f8] sm:$0xff] }
 0x13a   : > { %1884 = vmatprep.subr.mxu1 %v3897_v0  ;;  %1168 = vmatprep.mubr.f32.mxu0 %v296_v46  ;;  %v375_v46 = vld [vmem:[#allocation8 + $0x460] sm:$0xff] }
 0x13b   : > { %1885 = vmatpush1.msra.mxu1 %v1560_v47  ;;  %1169 = vmatmul.mubr.f32.gmra.mxu0 %v295_v48 }
 0x13c   : > { %1393 = vmatprep.mubr.f32.mxu1 %v298_v49  ;;  %1661 = vmatprep.subr.mxu0 %v3897_v0  ;;  %v378_v49 = vld [vmem:[#allocation8 + $0x478] sm:$0xff] }
 0x13d   : > { %1394 = vmatmul.mubr.f32.gmra.mxu1 %v297_v50  ;;  %1662 = vmatpush1.msra.mxu0 %v1527_v51  ;;  %v377_v51 = vld [vmem:[#allocation8 + $0x470] sm:$0xff] }
 0x13e   : > { %1886 = vmatprep.subr.mxu1 %v3897_v0  ;;  %1173 = vmatprep.mubr.f32.mxu0 %v304_v52  ;;  %v1549_v52 = vld [vmem:[%s4083_s9 + $0xf0] sm:$0xff] }
 0x13f   : > { %1887 = vmatpush1.msra.mxu1 %v1559_v53  ;;  %1174 = vmatmul.mubr.f32.gmra.mxu0 %v303_v54 }
 0x140   : > { %1398 = vmatprep.mubr.f32.mxu1 %v306_v55  ;;  %1663 = vmatprep.subr.mxu0 %v3897_v0  ;;  %v384_v55 = vld [vmem:[#allocation8 + $0x4a8] sm:$0xff] }
 0x141   : > { %1399 = vmatmul.mubr.f32.gmra.mxu1 %v305_v56  ;;  %1664 = vmatpush1.msra.mxu0 %v1526_v57  ;;  %v1581_v56 = vld [vmem:[%s4083_s9 + $0x1f0] sm:$0xff]  ;;  %v383_v57 = vld [vmem:[#allocation8 + $0x4a0] sm:$0xff] }
 0x142   : > { %1888 = vmatprep.subr.mxu1 %v3897_v0  ;;  %1178 = vmatprep.mubr.f32.mxu0 %v312_v58 }
 0x143   : > { %1889 = vmatpush1.msra.mxu1 %v1558_v59  ;;  %1179 = vmatmul.mubr.f32.gmra.mxu0 %v311_v60  ;;  %v386_v60 = vld [vmem:[#allocation8 + $0x4b8] sm:$0xff] }
 0x144   : > { %1403 = vmatprep.mubr.f32.mxu1 %v314_v61  ;;  %1665 = vmatprep.subr.mxu0 %v3897_v0 }
 0x145   : > { %1404 = vmatmul.mubr.f32.gmra.mxu1 %v313_v62  ;;  %1666 = vmatpush1.msra.mxu0 %v1525_v63  ;;  %v385_v62 = vld [vmem:[#allocation8 + $0x4b0] sm:$0xff]  ;;  %v1548_v63 = vld [vmem:[%s4083_s9 + $0xe8] sm:$0xff] }
 0x146   : > { %1890 = vmatprep.subr.mxu1 %v3897_v0  ;;  %1183 = vmatprep.mubr.f32.mxu0 %v320_v1 }
 0x147   : > { %1891 = vmatpush1.msra.mxu1 %v1557_v2  ;;  %1184 = vmatmul.mubr.f32.gmra.mxu0 %v319_v3  ;;  %v392_v3 = vld [vmem:[#allocation8 + $0x4e8] sm:$0xff] }
 0x148   : > { %1408 = vmatprep.mubr.f32.mxu1 %v322_v4  ;;  %1667 = vmatprep.subr.mxu0 %v3897_v0  ;;  %v1580_v4 = vld [vmem:[%s4083_s9 + $0x1e8] sm:$0xff] }
 0x149   : > { %1409 = vmatmul.mubr.f32.gmra.mxu1 %v321_v5  ;;  %1668 = vmatpush1.msra.mxu0 %v1524_v6  ;;  %v391_v5 = vld [vmem:[#allocation8 + $0x4e0] sm:$0xff] }
 0x14a   : > { %1892 = vmatprep.subr.mxu1 %v3897_v0  ;;  %1188 = vmatprep.mubr.f32.mxu0 %v328_v7 }
 0x14b   : > { %1893 = vmatpush1.msra.mxu1 %v1556_v8  ;;  %1189 = vmatmul.mubr.f32.gmra.mxu0 %v327_v9  ;;  %v394_v8 = vld [vmem:[#allocation8 + $0x4f8] sm:$0xff] }
 0x14c   : > { %1413 = vmatprep.mubr.f32.mxu1 %v330_v10  ;;  %1669 = vmatprep.subr.mxu0 %v3897_v0  ;;  %v393_v10 = vld [vmem:[#allocation8 + $0x4f0] sm:$0xff] }
 0x14d   : > { %1414 = vmatmul.mubr.f32.gmra.mxu1 %v329_v11  ;;  %1670 = vmatpush1.msra.mxu0 %v1523_v12  ;;  %v1547_v11 = vld [vmem:[%s4083_s9 + $0xe0] sm:$0xff] }
 0x14e   : > { %1894 = vmatprep.subr.mxu1 %v3897_v0  ;;  %1193 = vmatprep.mubr.f32.mxu0 %v336_v13 }
 0x14f   : > { %1895 = vmatpush1.msra.mxu1 %v1555_v14  ;;  %1194 = vmatmul.mubr.f32.gmra.mxu0 %v335_v15  ;;  %v400_v14 = vld [vmem:[#allocation8 + $0x528] sm:$0xff]  ;;  %v1579_v15 = vld [vmem:[%s4083_s9 + $0x1e0] sm:$0xff] }
 0x150   : > { %1418 = vmatprep.mubr.f32.mxu1 %v338_v16  ;;  %1671 = vmatprep.subr.mxu0 %v3897_v0  ;;  %v399_v16 = vld [vmem:[#allocation8 + $0x520] sm:$0xff] }
 0x151   : > { %1419 = vmatmul.mubr.f32.gmra.mxu1 %v337_v17  ;;  %1672 = vmatpush1.msra.mxu0 %v1522_v18 }
 0x152   : > { %1896 = vmatprep.subr.mxu1 %v3897_v0  ;;  %1198 = vmatprep.mubr.f32.mxu0 %v344_v19  ;;  %v402_v19 = vld [vmem:[#allocation8 + $0x538] sm:$0xff] }
 0x153   : > { %1897 = vmatpush1.msra.mxu1 %v1554_v20  ;;  %1199 = vmatmul.mubr.f32.gmra.mxu0 %v343_v21  ;;  %v401_v21 = vld [vmem:[#allocation8 + $0x530] sm:$0xff] }
 0x154   : > { %1423 = vmatprep.mubr.f32.mxu1 %v346_v22  ;;  %1673 = vmatprep.subr.mxu0 %v3897_v0  ;;  %v1546_v22 = vld [vmem:[%s4083_s9 + $0xd8] sm:$0xff] }
 0x155   : > { %1424 = vmatmul.mubr.f32.gmra.mxu1 %v345_v23  ;;  %1674 = vmatpush1.msra.mxu0 %v1521_v24 }
 0x156   : > { %1898 = vmatprep.subr.mxu1 %v3897_v0  ;;  %1203 = vmatprep.mubr.f32.mxu0 %v352_v25  ;;  %v408_v25 = vld [vmem:[#allocation8 + $0x568] sm:$0xff] }
 0x157   : > { %1899 = vmatpush1.msra.mxu1 %v1553_v26  ;;  %1204 = vmatmul.mubr.f32.gmra.mxu0 %v351_v27  ;;  %v1578_v26 = vld [vmem:[%s4083_s9 + $0x1d8] sm:$0xff]  ;;  %v407_v27 = vld [vmem:[#allocation8 + $0x560] sm:$0xff] }
 0x158   : > { %1428 = vmatprep.mubr.f32.mxu1 %v354_v28  ;;  %1675 = vmatprep.subr.mxu0 %v3897_v0 }
 0x159   : > { %1429 = vmatmul.mubr.f32.gmra.mxu1 %v353_v29  ;;  %1676 = vmatpush1.msra.mxu0 %v1520_v30  ;;  %v410_v30 = vld [vmem:[#allocation8 + $0x578] sm:$0xff] }
 0x15a   : > { %1900 = vmatprep.subr.mxu1 %v3897_v0  ;;  %1208 = vmatprep.mubr.f32.mxu0 %v360_v31 }
 0x15b   : > { %1901 = vmatpush1.msra.mxu1 %v1552_v32  ;;  %1209 = vmatmul.mubr.f32.gmra.mxu0 %v359_v33  ;;  %v409_v32 = vld [vmem:[#allocation8 + $0x570] sm:$0xff] }
 0x15c   : > { %1433 = vmatprep.mubr.f32.mxu1 %v362_v34  ;;  %1677 = vmatprep.subr.mxu0 %v3897_v0  ;;  %v1545_v33 = vld [vmem:[%s4083_s9 + $0xd0] sm:$0xff] }
 0x15d   : > { %1434 = vmatmul.mubr.f32.gmra.mxu1 %v361_v35  ;;  %1678 = vmatpush1.msra.mxu0 %v1519_v36  ;;  %v416_v36 = vld [vmem:[#allocation8 + $0x5a8] sm:$0xff] }
 0x15e   : > { %1902 = vmatprep.subr.mxu1 %v3897_v0  ;;  %1213 = vmatprep.mubr.f32.mxu0 %v368_v37  ;;  %v1577_v37 = vld [vmem:[%s4083_s9 + $0x1d0] sm:$0xff] }
 0x15f   : > { %1903 = vmatpush1.msra.mxu1 %v1551_v38  ;;  %v685_v43 = vpop.f32.mrf.mxu0  ;;  %1214 = vmatmul.mubr.f32.gmra.mxu0 %v367_v39  ;;  %v415_v38 = vld [vmem:[#allocation8 + $0x5a0] sm:$0xff] }
 0x160   : > { %1438 = vmatprep.mubr.f32.mxu1 %v370_v40  ;;  %1679 = vmatprep.subr.mxu0 %v3897_v0 }
 0x161   : > { %v910_v47 = vpop.f32.mrf.mxu1  ;;  %1439 = vmatmul.mubr.f32.gmra.mxu1 %v369_v41  ;;  %1680 = vmatpush2.msra.mxu0 %v1550_v42  ;;  %v687_v48 = vpop.f32.mrf.mxu0  ;;  %v418_v41 = vld [vmem:[#allocation8 + $0x5b8] sm:$0xff] }
 0x162   : > { %v4416_v50 = vadd.f32 %v910_v47, %v685_v43  ;;  %1904 = vmatprep.subr.mxu1 %v3897_v0  ;;  %1218 = vmatprep.mubr.f32.mxu0 %v376_v44  ;;  %v417_v43 = vld [vmem:[#allocation8 + $0x5b0] sm:$0xff]  ;;  %v1544_v44 = vld [vmem:[%s4083_s9 + $0xc8] sm:$0xff] }
 0x163   : > { %v912_v53 = vpop.f32.mrf.mxu1  ;;  %1905 = vmatpush2.msra.mxu1 %v1582_v45  ;;  %v690_v54 = vpop.f32.mrf.mxu0  ;;  %1219 = vmatmul.mubr.f32.gmra.mxu0 %v375_v46  ;;  %v424_v47 = vld [vmem:[#allocation8 + $0x5e8] sm:$0xff] }
 0x164   : > { %1443 = vmatprep.mubr.f32.mxu1 %v378_v49  ;;  %1681 = vmatprep.subr.mxu0 %v3897_v0  ;;  %v1576_v48 = vld [vmem:[%s4083_s9 + $0x1c8] sm:$0xff]  ;;  %v423_v49 = vld [vmem:[#allocation8 + $0x5e0] sm:$0xff]  ;;  %v426_v53 = vld [vmem:[#allocation8 + $0x5f8] sm:$0xff] }
 0x165   : > { %v915_v58 = vpop.f32.mrf.mxu1  ;;  %1444 = vmatmul.mubr.f32.gmra.mxu1 %v377_v51  ;;  %1682 = vmatpush2.msra.mxu0 %v1549_v52  ;;  %v692_v59 = vpop.f32.mrf.mxu0 }
 0x166   : > { %v4422_v61 = vadd.f32 %v915_v58, %v690_v54  ;;  %1906 = vmatprep.subr.mxu1 %v3897_v0  ;;  %1223 = vmatprep.mubr.f32.mxu0 %v384_v55  ;;  %v425_v55 = vld [vmem:[#allocation8 + $0x5f0] sm:$0xff]  ;;  %v432_v59 = vld [vmem:[#allocation8 + $0x628] sm:$0xff] }
 0x167   : > { %v917_v1 = vpop.f32.mrf.mxu1  ;;  %1907 = vmatpush2.msra.mxu1 %v1581_v56  ;;  %v695_v2 = vpop.f32.mrf.mxu0  ;;  %1224 = vmatmul.mubr.f32.gmra.mxu0 %v383_v57  ;;  %v1543_v56 = vld [vmem:[%s4083_s9 + $0xc0] sm:$0xff] }
 0x168   : > { %1448 = vmatprep.mubr.f32.mxu1 %v386_v60  ;;  %1683 = vmatprep.subr.mxu0 %v3897_v0  ;;  %v1575_v60 = vld [vmem:[%s4083_s9 + $0x1c0] sm:$0xff] }
 0x169   : > { %v920_v6 = vpop.f32.mrf.mxu1  ;;  %1449 = vmatmul.mubr.f32.gmra.mxu1 %v385_v62  ;;  %1684 = vmatpush2.msra.mxu0 %v1548_v63  ;;  %v697_v7 = vpop.f32.mrf.mxu0  ;;  %v431_v62 = vld [vmem:[#allocation8 + $0x620] sm:$0xff] }
 0x16a   : > { %v4428_v9 = vadd.f32 %v920_v6, %v695_v2  ;;  %1908 = vmatprep.subr.mxu1 %v3897_v0  ;;  %1228 = vmatprep.mubr.f32.mxu0 %v392_v3  ;;  %v434_v2 = vld [vmem:[#allocation8 + $0x638] sm:$0xff] }
 0x16b   : > { %v922_v12 = vpop.f32.mrf.mxu1  ;;  %1909 = vmatpush2.msra.mxu1 %v1580_v4  ;;  %v700_v13 = vpop.f32.mrf.mxu0  ;;  %1229 = vmatmul.mubr.f32.gmra.mxu0 %v391_v5  ;;  %v433_v4 = vld [vmem:[#allocation8 + $0x630] sm:$0xff]  ;;  %v1542_v5 = vld [vmem:[%s4083_s9 + $0xb8] sm:$0xff] }
 0x16c   : > { %1453 = vmatprep.mubr.f32.mxu1 %v394_v8  ;;  %1685 = vmatprep.subr.mxu0 %v3897_v0  ;;  %v440_v8 = vld [vmem:[#allocation8 + $0x668] sm:$0xff] }
 0x16d   : > { %v925_v17 = vpop.f32.mrf.mxu1  ;;  %1454 = vmatmul.mubr.f32.gmra.mxu1 %v393_v10  ;;  %1686 = vmatpush2.msra.mxu0 %v1547_v11  ;;  %v702_v18 = vpop.f32.mrf.mxu0  ;;  %v1574_v10 = vld [vmem:[%s4083_s9 + $0x1b8] sm:$0xff]  ;;  %v439_v11 = vld [vmem:[#allocation8 + $0x660] sm:$0xff] }
 0x16e   : > { %v4434_v20 = vadd.f32 %v925_v17, %v700_v13  ;;  %1910 = vmatprep.subr.mxu1 %v3897_v0  ;;  %1233 = vmatprep.mubr.f32.mxu0 %v400_v14  ;;  %v442_v14 = vld [vmem:[#allocation8 + $0x678] sm:$0xff]  ;;  %v1541_v17 = vld [vmem:[%s4083_s9 + $0xb0] sm:$0xff] }
 0x16f   : > { %v927_v23 = vpop.f32.mrf.mxu1  ;;  %1911 = vmatpush2.msra.mxu1 %v1579_v15  ;;  %v705_v24 = vpop.f32.mrf.mxu0  ;;  %1234 = vmatmul.mubr.f32.gmra.mxu0 %v399_v16  ;;  %v441_v16 = vld [vmem:[#allocation8 + $0x670] sm:$0xff] }
 0x170   : > { %1458 = vmatprep.mubr.f32.mxu1 %v402_v19  ;;  %1687 = vmatprep.subr.mxu0 %v3897_v0  ;;  %v447_v23 = vld [vmem:[#allocation8 + $0x6a0] sm:$0xff] }
 0x171   : > { %v930_v28 = vpop.f32.mrf.mxu1  ;;  %1459 = vmatmul.mubr.f32.gmra.mxu1 %v401_v21  ;;  %1688 = vmatpush2.msra.mxu0 %v1546_v22  ;;  %v707_v29 = vpop.f32.mrf.mxu0  ;;  %v448_v21 = vld [vmem:[#allocation8 + $0x6a8] sm:$0xff]  ;;  %v1573_v22 = vld [vmem:[%s4083_s9 + $0x1b0] sm:$0xff] }
 0x172   : > { %v4440_v31 = vadd.f32 %v930_v28, %v705_v24  ;;  %1912 = vmatprep.subr.mxu1 %v3897_v0  ;;  %1238 = vmatprep.mubr.f32.mxu0 %v408_v25  ;;  %v449_v28 = vld [vmem:[#allocation8 + $0x6b0] sm:$0xff]  ;;  %v1540_v29 = vld [vmem:[%s4083_s9 + $0xa8] sm:$0xff] }
 0x173   : > { %v932_v34 = vpop.f32.mrf.mxu1  ;;  %1913 = vmatpush2.msra.mxu1 %v1578_v26  ;;  %v710_v35 = vpop.f32.mrf.mxu0  ;;  %1239 = vmatmul.mubr.f32.gmra.mxu0 %v407_v27  ;;  %v450_v26 = vld [vmem:[#allocation8 + $0x6b8] sm:$0xff] }
 0x174   : > { %1463 = vmatprep.mubr.f32.mxu1 %v410_v30  ;;  %1689 = vmatprep.subr.mxu0 %v3897_v0  ;;  %v1572_v34 = vld [vmem:[%s4083_s9 + $0x1a8] sm:$0xff] }
 0x175   : > { %v935_v39 = vpop.f32.mrf.mxu1  ;;  %1464 = vmatmul.mubr.f32.gmra.mxu1 %v409_v32  ;;  %1690 = vmatpush2.msra.mxu0 %v1545_v33  ;;  %v712_v40 = vpop.f32.mrf.mxu0  ;;  %v456_v33 = vld [vmem:[#allocation8 + $0x6e8] sm:$0xff] }
 0x176   : > { %v4446_v42 = vadd.f32 %v935_v39, %v710_v35  ;;  %1914 = vmatprep.subr.mxu1 %v3897_v0  ;;  %1243 = vmatprep.mubr.f32.mxu0 %v416_v36  ;;  %v455_v35 = vld [vmem:[#allocation8 + $0x6e0] sm:$0xff]  ;;  %v457_v40 = vld [vmem:[#allocation8 + $0x6f0] sm:$0xff] }
 0x177   : > { %v937_v45 = vpop.f32.mrf.mxu1  ;;  %1915 = vmatpush2.msra.mxu1 %v1577_v37  ;;  %v715_v46 = vpop.f32.mrf.mxu0  ;;  %1244 = vmatmul.mubr.f32.gmra.mxu0 %v415_v38  ;;  %v458_v38 = vld [vmem:[#allocation8 + $0x6f8] sm:$0xff] }
 0x178   : > { %1468 = vmatprep.mubr.f32.mxu1 %v418_v41  ;;  %1691 = vmatprep.subr.mxu0 %v3897_v0  ;;  %v1539_v41 = vld [vmem:[%s4083_s9 + $0xa0] sm:$0xff]  ;;  %v464_v45 = vld [vmem:[#allocation8 + $0x728] sm:$0xff] }
 0x179   : > { %v940_v51 = vpop.f32.mrf.mxu1  ;;  %1469 = vmatmul.mubr.f32.gmra.mxu1 %v417_v43  ;;  %1692 = vmatpush2.msra.mxu0 %v1544_v44  ;;  %v717_v52 = vpop.f32.mrf.mxu0 }
 0x17a   : > { %v4452_v54 = vadd.f32 %v940_v51, %v715_v46  ;;  %1916 = vmatprep.subr.mxu1 %v3897_v0  ;;  %1248 = vmatprep.mubr.f32.mxu0 %v424_v47  ;;  %v1571_v46 = vld [vmem:[%s4083_s9 + $0x1a0] sm:$0xff]  ;;  %v466_v51 = vld [vmem:[#allocation8 + $0x738] sm:$0xff] }
 0x17b   : > { %v942_v57 = vpop.f32.mrf.mxu1  ;;  %1917 = vmatpush2.msra.mxu1 %v1576_v48  ;;  %v720_v58 = vpop.f32.mrf.mxu0  ;;  %1249 = vmatmul.mubr.f32.gmra.mxu0 %v423_v49  ;;  %v463_v47 = vld [vmem:[#allocation8 + $0x720] sm:$0xff] }
 0x17c   : > { %1473 = vmatprep.mubr.f32.mxu1 %v426_v53  ;;  %1693 = vmatprep.subr.mxu0 %v3897_v0  ;;  %v465_v53 = vld [vmem:[#allocation8 + $0x730] sm:$0xff] }
 0x17d   : > { %v945_v63 = vpop.f32.mrf.mxu1  ;;  %1474 = vmatmul.mubr.f32.gmra.mxu1 %v425_v55  ;;  %1694 = vmatpush2.msra.mxu0 %v1543_v56  ;;  %v722_v1 = vpop.f32.mrf.mxu0  ;;  %v1538_v55 = vld [vmem:[%s4083_s9 + $0x98] sm:$0xff] }
 0x17e   : > { %v4458_v3 = vadd.f32 %v945_v63, %v720_v58  ;;  %1918 = vmatprep.subr.mxu1 %v3897_v0  ;;  %1253 = vmatprep.mubr.f32.mxu0 %v432_v59  ;;  %v472_v58 = vld [vmem:[#allocation8 + $0x768] sm:$0xff]  ;;  %v1570_v59 = vld [vmem:[%s4083_s9 + $0x198] sm:$0xff] }
 0x17f   : > { %v947_v6 = vpop.f32.mrf.mxu1  ;;  %1919 = vmatpush2.msra.mxu1 %v1575_v60  ;;  %v725_v7 = vpop.f32.mrf.mxu0  ;;  %1254 = vmatmul.mubr.f32.gmra.mxu0 %v431_v62  ;;  %v471_v60 = vld [vmem:[#allocation8 + $0x760] sm:$0xff]  ;;  %v474_v1 = vld [vmem:[#allocation8 + $0x778] sm:$0xff] }
 0x180   : > { %1478 = vmatprep.mubr.f32.mxu1 %v434_v2  ;;  %1695 = vmatprep.subr.mxu0 %v3897_v0 }
 0x181   : > { %v950_v12 = vpop.f32.mrf.mxu1  ;;  %1479 = vmatmul.mubr.f32.gmra.mxu1 %v433_v4  ;;  %1696 = vmatpush2.msra.mxu0 %v1542_v5  ;;  %v727_v13 = vpop.f32.mrf.mxu0  ;;  %v473_v4 = vld [vmem:[#allocation8 + $0x770] sm:$0xff] }
 0x182   : > { %v4464_v15 = vadd.f32 %v950_v12, %v725_v7  ;;  %1920 = vmatprep.subr.mxu1 %v3897_v0  ;;  %1258 = vmatprep.mubr.f32.mxu0 %v440_v8  ;;  %v1537_v5 = vld [vmem:[%s4083_s9 + $0x90] sm:$0xff]  ;;  %v480_v8 = vld [vmem:[#allocation8 + $0x7a8] sm:$0xff] }
 0x183   : > { %v952_v18 = vpop.f32.mrf.mxu1  ;;  %1921 = vmatpush2.msra.mxu1 %v1574_v10  ;;  %v730_v19 = vpop.f32.mrf.mxu0  ;;  %1259 = vmatmul.mubr.f32.gmra.mxu0 %v439_v11  ;;  %v1569_v10 = vld [vmem:[%s4083_s9 + $0x190] sm:$0xff]  ;;  %v479_v11 = vld [vmem:[#allocation8 + $0x7a0] sm:$0xff] }
 0x184   : > { %1483 = vmatprep.mubr.f32.mxu1 %v442_v14  ;;  %1697 = vmatprep.subr.mxu0 %v3897_v0  ;;  %v482_v14 = vld [vmem:[#allocation8 + $0x7b8] sm:$0xff]  ;;  %v1536_v18 = vld [vmem:[%s4083_s9 + $0x88] sm:$0xff] }
 0x185   : > { %v955_v24 = vpop.f32.mrf.mxu1  ;;  %1484 = vmatmul.mubr.f32.gmra.mxu1 %v441_v16  ;;  %1698 = vmatpush2.msra.mxu0 %v1541_v17  ;;  %v732_v25 = vpop.f32.mrf.mxu0  ;;  %v481_v17 = vld [vmem:[#allocation8 + $0x7b0] sm:$0xff] }
 0x186   : > { %v4470_v27 = vadd.f32 %v955_v24, %v730_v19  ;;  %1922 = vmatprep.subr.mxu1 %v3897_v0  ;;  %1263 = vmatprep.mubr.f32.mxu0 %v448_v21  ;;  %v487_v24 = vld [vmem:[#allocation8 + $0x7e0] sm:$0xff] }
 0x187   : > { %v957_v30 = vpop.f32.mrf.mxu1  ;;  %1923 = vmatpush2.msra.mxu1 %v1573_v22  ;;  %v735_v32 = vpop.f32.mrf.mxu0  ;;  %1264 = vmatmul.mubr.f32.gmra.mxu0 %v447_v23  ;;  %v488_v22 = vld [vmem:[#allocation8 + $0x7e8] sm:$0xff] }
 0x188   : > { %1488 = vmatprep.mubr.f32.mxu1 %v450_v26  ;;  %1699 = vmatprep.subr.mxu0 %v3897_v0  ;;  %v1568_v23 = vld [vmem:[%s4083_s9 + $0x188] sm:$0xff]  ;;  %v489_v30 = vld [vmem:[#allocation8 + $0x7f0] sm:$0xff] }
 0x189   : > { %v960_v36 = vpop.f32.mrf.mxu1  ;;  %1489 = vmatmul.mubr.f32.gmra.mxu1 %v449_v28  ;;  %1700 = vmatpush2.msra.mxu0 %v1540_v29  ;;  %v737_v37 = vpop.f32.mrf.mxu0  ;;  %v490_v28 = vld [vmem:[#allocation8 + $0x7f8] sm:$0xff] }
 0x18a   : > { %v4476_v39 = vadd.f32 %v960_v36, %v735_v32  ;;  %1924 = vmatprep.subr.mxu1 %v3897_v0  ;;  %1268 = vmatprep.mubr.f32.mxu0 %v456_v33  ;;  %v1535_v32 = vld [vmem:[%s4083_s9 + $0x80] sm:$0xff] }
 0x18b   : > { %v962_v43 = vpop.f32.mrf.mxu1  ;;  %1925 = vmatpush2.msra.mxu1 %v1572_v34  ;;  %v740_v44 = vpop.f32.mrf.mxu0  ;;  %1269 = vmatmul.mubr.f32.gmra.mxu0 %v455_v35  ;;  %v1567_v35 = vld [vmem:[%s4083_s9 + $0x180] sm:$0xff] }
 0x18c   : > { %1493 = vmatprep.mubr.f32.mxu1 %v458_v38  ;;  %1701 = vmatprep.subr.mxu0 %v3897_v0 }
 0x18d   : > { %v965_v48 = vpop.f32.mrf.mxu1  ;;  %1494 = vmatmul.mubr.f32.gmra.mxu1 %v457_v40  ;;  %1702 = vmatpush2.msra.mxu0 %v1539_v41  ;;  %v742_v49 = vpop.f32.mrf.mxu0  ;;  %v3493_v40 = vld [vmem:[#allocation8 + $0x8] sm:$0xff]  ;;  %v1598_v41 = vld [vmem:[%s4083_s9 + $0x278] sm:$0xff] }
 0x18e   : > { %v4482_v52 = vadd.f32 %v965_v48, %v740_v44  ;;  %1926 = vmatprep.subr.mxu1 %v3897_v0  ;;  %1273 = vmatprep.mubr.f32.mxu0 %v464_v45  ;;  %v3494_v45 = vld [vmem:[#allocation8] sm:$0xff]  ;;  %v3496_v49 = vld [vmem:[#allocation8 + $0x10] sm:$0xff] }
 0x18f   : > { %v967_v56 = vpop.f32.mrf.mxu1  ;;  %1927 = vmatpush2.msra.mxu1 %v1571_v46  ;;  %v745_v57 = vpop.f32.mrf.mxu0  ;;  %1274 = vmatmul.mubr.f32.gmra.mxu0 %v463_v47  ;;  %v3495_v46 = vld [vmem:[#allocation8 + $0x18] sm:$0xff] }
 0x190   : > { %1498 = vmatprep.mubr.f32.mxu1 %v466_v51  ;;  %1703 = vmatprep.subr.mxu0 %v3897_v0  ;;  %v1630_v47 = vld [vmem:[%s4083_s9 + $0x378] sm:$0xff]  ;;  %v1597_v56 = vld [vmem:[%s4083_s9 + $0x270] sm:$0xff] }
 0x191   : > { %v970_v62 = vpop.f32.mrf.mxu1  ;;  %1499 = vmatmul.mubr.f32.gmra.mxu1 %v465_v53  ;;  %1704 = vmatpush2.msra.mxu0 %v1538_v55  ;;  %v747_v63 = vpop.f32.mrf.mxu0  ;;  %v3497_v55 = vld [vmem:[#allocation8 + $0x48] sm:$0xff] }
 0x192   : > { %v4488_v2 = vadd.f32 %v970_v62, %v745_v57  ;;  %1928 = vmatprep.subr.mxu1 %v3897_v0  ;;  %1278 = vmatprep.mubr.f32.mxu0 %v472_v58  ;;  %v1629_v62 = vld [vmem:[%s4083_s9 + $0x370] sm:$0xff] }
 0x193   : > { %v972_v6 = vpop.f32.mrf.mxu1  ;;  %1929 = vmatpush2.msra.mxu1 %v1570_v59  ;;  %v750_v7 = vpop.f32.mrf.mxu0  ;;  %1279 = vmatmul.mubr.f32.gmra.mxu0 %v471_v60  ;;  %v3498_v59 = vld [vmem:[#allocation8 + $0x40] sm:$0xff]  ;;  %v3499_v60 = vld [vmem:[#allocation8 + $0x58] sm:$0xff] }
 0x194   : > { %1503 = vmatprep.mubr.f32.mxu1 %v474_v1  ;;  %1705 = vmatprep.subr.mxu0 %v3897_v0  ;;  %v3500_v1 = vld [vmem:[#allocation8 + $0x50] sm:$0xff]  ;;  %v3501_v6 = vld [vmem:[#allocation8 + $0x88] sm:$0xff] }
 0x195   : > { %v975_v12 = vpop.f32.mrf.mxu1  ;;  %1504 = vmatmul.mubr.f32.gmra.mxu1 %v473_v4  ;;  %1706 = vmatpush2.msra.mxu0 %v1537_v5  ;;  %v752_v13 = vpop.f32.mrf.mxu0 }
 0x196   : > { %v4494_v16 = vadd.f32 %v975_v12, %v750_v7  ;;  %1930 = vmatprep.subr.mxu1 %v3897_v0  ;;  %1283 = vmatprep.mubr.f32.mxu0 %v480_v8  ;;  %v1596_v7 = vld [vmem:[%s4083_s9 + $0x268] sm:$0xff]  ;;  %v3503_v12 = vld [vmem:[#allocation8 + $0x98] sm:$0xff] }
 0x197   : > { %v977_v19 = vpop.f32.mrf.mxu1  ;;  %1931 = vmatpush2.msra.mxu1 %v1569_v10  ;;  %v755_v21 = vpop.f32.mrf.mxu0  ;;  %1284 = vmatmul.mubr.f32.gmra.mxu0 %v479_v11  ;;  %v3502_v11 = vld [vmem:[#allocation8 + $0x80] sm:$0xff]  ;;  %v1628_v13 = vld [vmem:[%s4083_s9 + $0x368] sm:$0xff] }
 0x198   : > { %1508 = vmatprep.mubr.f32.mxu1 %v482_v14  ;;  %1707 = vmatprep.subr.mxu0 %v3897_v0 }
 0x199   : > { %v980_v25 = vpop.f32.mrf.mxu1  ;;  %1509 = vmatmul.mubr.f32.gmra.mxu1 %v481_v17  ;;  %1708 = vmatpush2.msra.mxu0 %v1536_v18  ;;  %v757_v26 = vpop.f32.mrf.mxu0  ;;  %v3504_v17 = vld [vmem:[#allocation8 + $0x90] sm:$0xff] }
 0x19a   : > { %v4500_v29 = vadd.f32 %v980_v25, %v755_v21  ;;  %1932 = vmatprep.subr.mxu1 %v3897_v0  ;;  %1288 = vmatprep.mubr.f32.mxu0 %v488_v22  ;;  %v3505_v21 = vld [vmem:[#allocation8 + $0xc8] sm:$0xff]  ;;  %v1595_v22 = vld [vmem:[%s4083_s9 + $0x260] sm:$0xff]  ;;  %v3507_v26 = vld [vmem:[#allocation8 + $0xd8] sm:$0xff] }
 0x19b   : > { %v982_v33 = vpop.f32.mrf.mxu1  ;;  %1933 = vmatpush2.msra.mxu1 %v1568_v23  ;;  %v760_v34 = vpop.f32.mrf.mxu0  ;;  %1289 = vmatmul.mubr.f32.gmra.mxu0 %v487_v24  ;;  %v3506_v25 = vld [vmem:[#allocation8 + $0xc0] sm:$0xff] }
 0x19c   : > { %1513 = vmatprep.mubr.f32.mxu1 %v490_v28  ;;  %1709 = vmatprep.subr.mxu0 %v3897_v0  ;;  %v1627_v28 = vld [vmem:[%s4083_s9 + $0x360] sm:$0xff] }
 0x19d   : > { %v985_v36 = vpop.f32.mrf.mxu1  ;;  %1514 = vmatmul.mubr.f32.gmra.mxu1 %v489_v30  ;;  %1710 = vmatpush2.msra.mxu0 %v1535_v32  ;;  %v762_v37 = vpop.f32.mrf.mxu0  ;;  %v3508_v32 = vld [vmem:[#allocation8 + $0xd0] sm:$0xff] }
 0x19e   : > { %v4506_v38 = vadd.f32 %v985_v36, %v760_v34  ;;  %1934 = vmatprep.subr.mxu1 %v3897_v0  ;;  %1711 = vmatprep.mubr.f32.mxu0 %v3493_v40  ;;  %v1594_v36 = vld [vmem:[%s4083_s9 + $0x258] sm:$0xff] }
 0x19f   : > { %v987_v43 = vpop.f32.mrf.mxu1  ;;  %1935 = vmatpush2.msra.mxu1 %v1567_v35  ;;  %v765_v44 = vpop.f32.mrf.mxu0  ;;  %1712 = vmatmul.mubr.f32.vlgmr.msra.gmra.mxu0 %v3494_v45  ;;  %v3509_v35 = vld [vmem:[#allocation8 + $0x108] sm:$0xff] }
 0x1a0   : > { %1936 = vmatprep.mubr.f32.mxu1 %v3495_v46  ;;  %2097 = vmatprep.subr.mxu0 %v3897_v0  ;;  %v3511_v43 = vld [vmem:[#allocation8 + $0x118] sm:$0xff]  ;;  %v3512_v46 = vld [vmem:[#allocation8 + $0x110] sm:$0xff] }
 0x1a1   : > { %v990_v48 = vpop.f32.mrf.mxu1  ;;  %1937 = vmatmul.mubr.f32.vlgmr.msra.gmra.mxu1 %v3496_v49  ;;  %2098 = vmatpush1.msra.mxu0 %v1598_v41  ;;  %v767_v51 = vpop.f32.mrf.mxu0  ;;  %v3510_v41 = vld [vmem:[#allocation8 + $0x100] sm:$0xff]  ;;  %v3513_v49 = vld [vmem:[#allocation8 + $0x148] sm:$0xff] }
 0x1a2   : > { %v4512_v53 = vadd.f32 %v990_v48, %v765_v44  ;;  %2322 = vmatprep.subr.mxu1 %v3897_v0  ;;  %1716 = vmatprep.mubr.f32.mxu0 %v3497_v55  ;;  %v1626_v44 = vld [vmem:[%s4083_s9 + $0x358] sm:$0xff]  ;;  %v1593_v51 = vld [vmem:[%s4083_s9 + $0x250] sm:$0xff] }
 0x1a3   : > { %v992_v57 = vpop.f32.mrf.mxu1  ;;  %2323 = vmatpush1.msra.mxu1 %v1630_v47  ;;  %v770_v58 = vpop.f32.mrf.mxu0  ;;  %1717 = vmatmul.mubr.f32.gmra.mxu0 %v3498_v59  ;;  %v1625_v59 = vld [vmem:[%s4083_s9 + $0x350] sm:$0xff] }
 0x1a4   : > { %1941 = vmatprep.mubr.f32.mxu1 %v3499_v60  ;;  %2099 = vmatprep.subr.mxu0 %v3897_v0  ;;  %v3514_v57 = vld [vmem:[#allocation8 + $0x140] sm:$0xff] }
 0x1a5   : > { %v995_v63 = vpop.f32.mrf.mxu1  ;;  %1942 = vmatmul.mubr.f32.gmra.mxu1 %v3500_v1  ;;  %2100 = vmatpush1.msra.mxu0 %v1597_v56  ;;  %v772_v4 = vpop.f32.mrf.mxu0 }
 0x1a6   : > { %v4518_v5 = vadd.f32 %v995_v63, %v770_v58  ;;  %2324 = vmatprep.subr.mxu1 %v3897_v0  ;;  %1721 = vmatprep.mubr.f32.mxu0 %v3501_v6  ;;  %v3515_v58 = vld [vmem:[#allocation8 + $0x158] sm:$0xff]  ;;  %v3517_v4 = vld [vmem:[#allocation8 + $0x188] sm:$0xff] }
 0x1a7   : > { %v997_v8 = vpop.f32.mrf.mxu1  ;;  %2325 = vmatpush1.msra.mxu1 %v1629_v62  ;;  %v775_v10 = vpop.f32.mrf.mxu0  ;;  %1722 = vmatmul.mubr.f32.gmra.mxu0 %v3502_v11  ;;  %v3516_v62 = vld [vmem:[#allocation8 + $0x150] sm:$0xff]  ;;  %v1592_v6 = vld [vmem:[%s4083_s9 + $0x248] sm:$0xff]  ;;  %v3519_v11 = vld [vmem:[#allocation8 + $0x198] sm:$0xff] }
 0x1a8   : > { %1946 = vmatprep.mubr.f32.mxu1 %v3503_v12  ;;  %2101 = vmatprep.subr.mxu0 %v3897_v0  ;;  %v1624_v12 = vld [vmem:[%s4083_s9 + $0x348] sm:$0xff] }
 0x1a9   : > { %v1000_v14 = vpop.f32.mrf.mxu1  ;;  %1947 = vmatmul.mubr.f32.gmra.mxu1 %v3504_v17  ;;  %2102 = vmatpush1.msra.mxu0 %v1596_v7  ;;  %v777_v18 = vpop.f32.mrf.mxu0 }
 0x1aa   : > { %v4524_v19 = vadd.f32 %v1000_v14, %v775_v10  ;;  %2326 = vmatprep.subr.mxu1 %v3897_v0  ;;  %1726 = vmatprep.mubr.f32.mxu0 %v3505_v21  ;;  %v3518_v10 = vld [vmem:[#allocation8 + $0x180] sm:$0xff]  ;;  %v3520_v14 = vld [vmem:[#allocation8 + $0x190] sm:$0xff]  ;;  %v3521_v21 = vld [vmem:[#allocation8 + $0x1c8] sm:$0xff] }
 0x1ab   : > { %v1002_v23 = vpop.f32.mrf.mxu1  ;;  %2327 = vmatpush1.msra.mxu1 %v1628_v13  ;;  %v780_v24 = vpop.f32.mrf.mxu0  ;;  %1727 = vmatmul.mubr.f32.gmra.mxu0 %v3506_v25  ;;  %v3522_v25 = vld [vmem:[#allocation8 + $0x1c0] sm:$0xff] }
 0x1ac   : > { %1951 = vmatprep.mubr.f32.mxu1 %v3507_v26  ;;  %2103 = vmatprep.subr.mxu0 %v3897_v0  ;;  %v3523_v26 = vld [vmem:[#allocation8 + $0x1d8] sm:$0xff] }
 0x1ad   : > { %v1005_v30 = vpop.f32.mrf.mxu1  ;;  %1952 = vmatmul.mubr.f32.gmra.mxu1 %v3508_v32  ;;  %2104 = vmatpush1.msra.mxu0 %v1595_v22  ;;  %v782_v33 = vpop.f32.mrf.mxu0  ;;  %v1591_v22 = vld [vmem:[%s4083_s9 + $0x240] sm:$0xff]  ;;  %v3524_v32 = vld [vmem:[#allocation8 + $0x1d0] sm:$0xff] }
 0x1ae   : > { %v4530_v34 = vadd.f32 %v1005_v30, %v780_v24  ;;  %2328 = vmatprep.subr.mxu1 %v3897_v0  ;;  %1731 = vmatprep.mubr.f32.mxu0 %v3509_v35 }
 0x1af   : > { %v1007_v37 = vpop.f32.mrf.mxu1  ;;  %2329 = vmatpush1.msra.mxu1 %v1627_v28  ;;  %v785_v40 = vpop.f32.mrf.mxu0  ;;  %1732 = vmatmul.mubr.f32.gmra.mxu0 %v3510_v41  ;;  %v1623_v28 = vld [vmem:[%s4083_s9 + $0x340] sm:$0xff] }
 0x1b0   : > { %1956 = vmatprep.mubr.f32.mxu1 %v3511_v43  ;;  %2105 = vmatprep.subr.mxu0 %v3897_v0  ;;  %v1590_v37 = vld [vmem:[%s4083_s9 + $0x238] sm:$0xff]  ;;  %v3526_v43 = vld [vmem:[#allocation8 + $0x200] sm:$0xff] }
 0x1b1   : > { %v1010_v45 = vpop.f32.mrf.mxu1  ;;  %1957 = vmatmul.mubr.f32.gmra.mxu1 %v3512_v46  ;;  %2106 = vmatpush1.msra.mxu0 %v1594_v36  ;;  %v787_v47 = vpop.f32.mrf.mxu0  ;;  %v3525_v36 = vld [vmem:[#allocation8 + $0x208] sm:$0xff] }
 0x1b2   : > { %v4536_v48 = vadd.f32 %v1010_v45, %v785_v40  ;;  %2330 = vmatprep.subr.mxu1 %v3897_v0  ;;  %1736 = vmatprep.mubr.f32.mxu0 %v3513_v49  ;;  %v1622_v45 = vld [vmem:[%s4083_s9 + $0x338] sm:$0xff]  ;;  %v3528_v47 = vld [vmem:[#allocation8 + $0x210] sm:$0xff] }
 0x1b3   : > { %v1012_v55 = vpop.f32.mrf.mxu1  ;;  %2331 = vmatpush1.msra.mxu1 %v1626_v44  ;;  %v790_v56 = vpop.f32.mrf.mxu0  ;;  %1737 = vmatmul.mubr.f32.gmra.mxu0 %v3514_v57  ;;  %v3527_v44 = vld [vmem:[#allocation8 + $0x218] sm:$0xff] }
 0x1b4   : > { %1961 = vmatprep.mubr.f32.mxu1 %v3515_v58  ;;  %2107 = vmatprep.subr.mxu0 %v3897_v0  ;;  %v3529_v55 = vld [vmem:[#allocation8 + $0x248] sm:$0xff] }
 0x1b5   : > { %v1015_v60 = vpop.f32.mrf.mxu1  ;;  %1962 = vmatmul.mubr.f32.gmra.mxu1 %v3516_v62  ;;  %2108 = vmatpush1.msra.mxu0 %v1593_v51  ;;  %v792_v63 = vpop.f32.mrf.mxu0  ;;  %v1621_v62 = vld [vmem:[%s4083_s9 + $0x330] sm:$0xff] }
 0x1b6   : > { %v4542_v1 = vadd.f32 %v1015_v60, %v790_v56  ;;  %2332 = vmatprep.subr.mxu1 %v3897_v0  ;;  %1741 = vmatprep.mubr.f32.mxu0 %v3517_v4  ;;  %v1589_v56 = vld [vmem:[%s4083_s9 + $0x230] sm:$0xff]  ;;  %v3531_v60 = vld [vmem:[#allocation8 + $0x258] sm:$0xff] }
 0x1b7   : > { %v1017_v7 = vpop.f32.mrf.mxu1  ;;  %2333 = vmatpush1.msra.mxu1 %v1625_v59  ;;  %v795_v8 = vpop.f32.mrf.mxu0  ;;  %1742 = vmatmul.mubr.f32.gmra.mxu0 %v3518_v10  ;;  %v3530_v59 = vld [vmem:[#allocation8 + $0x240] sm:$0xff]  ;;  %v3532_v4 = vld [vmem:[#allocation8 + $0x250] sm:$0xff]  ;;  %v1588_v10 = vld [vmem:[%s4083_s9 + $0x228] sm:$0xff] }
 0x1b8   : > { %1966 = vmatprep.mubr.f32.mxu1 %v3519_v11  ;;  %2109 = vmatprep.subr.mxu0 %v3897_v0 }
 0x1b9   : > { %v1020_v13 = vpop.f32.mrf.mxu1  ;;  %1967 = vmatmul.mubr.f32.gmra.mxu1 %v3520_v14  ;;  %2110 = vmatpush1.msra.mxu0 %v1592_v6  ;;  %v797_v17 = vpop.f32.mrf.mxu0  ;;  %v3535_v14 = vld [vmem:[#allocation8 + $0x298] sm:$0xff] }
 0x1ba   : > { %v4548_v18 = vadd.f32 %v1020_v13, %v795_v8  ;;  %2334 = vmatprep.subr.mxu1 %v3897_v0  ;;  %1746 = vmatprep.mubr.f32.mxu0 %v3521_v21  ;;  %v3533_v8 = vld [vmem:[#allocation8 + $0x288] sm:$0xff]  ;;  %v3534_v13 = vld [vmem:[#allocation8 + $0x280] sm:$0xff] }
 0x1bb   : > { %v1022_v23 = vpop.f32.mrf.mxu1  ;;  %2335 = vmatpush1.msra.mxu1 %v1624_v12  ;;  %v800_v24 = vpop.f32.mrf.mxu0  ;;  %1747 = vmatmul.mubr.f32.gmra.mxu0 %v3522_v25  ;;  %v1620_v17 = vld [vmem:[%s4083_s9 + $0x328] sm:$0xff] }
 0x1bc   : > { %1971 = vmatprep.mubr.f32.mxu1 %v3523_v26  ;;  %2111 = vmatprep.subr.mxu0 %v3897_v0  ;;  %v3537_v25 = vld [vmem:[#allocation8 + $0x2c8] sm:$0xff]  ;;  %v1587_v26 = vld [vmem:[%s4083_s9 + $0x220] sm:$0xff] }
 0x1bd   : > { %v1025_v30 = vpop.f32.mrf.mxu1  ;;  %1972 = vmatmul.mubr.f32.gmra.mxu1 %v3524_v32  ;;  %2112 = vmatpush1.msra.mxu0 %v1591_v22  ;;  %v802_v33 = vpop.f32.mrf.mxu0  ;;  %v3536_v22 = vld [vmem:[#allocation8 + $0x290] sm:$0xff]  ;;  %v3538_v32 = vld [vmem:[#allocation8 + $0x2c0] sm:$0xff] }
 0x1be   : > { %v4554_v35 = vadd.f32 %v1025_v30, %v800_v24  ;;  %2336 = vmatprep.subr.mxu1 %v3897_v0  ;;  %1751 = vmatprep.mubr.f32.mxu0 %v3525_v36  ;;  %v3539_v33 = vld [vmem:[#allocation8 + $0x2d8] sm:$0xff]  ;;  %v1619_v36 = vld [vmem:[%s4083_s9 + $0x320] sm:$0xff] }
 0x1bf   : > { %v1027_v40 = vpop.f32.mrf.mxu1  ;;  %2337 = vmatpush1.msra.mxu1 %v1623_v28  ;;  %v805_v41 = vpop.f32.mrf.mxu0  ;;  %1752 = vmatmul.mubr.f32.gmra.mxu0 %v3526_v43 }
 0x1c0   : > { %1976 = vmatprep.mubr.f32.mxu1 %v3527_v44  ;;  %2113 = vmatprep.subr.mxu0 %v3897_v0  ;;  %v3540_v40 = vld [vmem:[#allocation8 + $0x2d0] sm:$0xff]  ;;  %v3541_v44 = vld [vmem:[#allocation8 + $0x308] sm:$0xff] }
 0x1c1   : > { %v1030_v46 = vpop.f32.mrf.mxu1  ;;  %1977 = vmatmul.mubr.f32.gmra.mxu1 %v3528_v47  ;;  %2114 = vmatpush1.msra.mxu0 %v1590_v37  ;;  %v807_v49 = vpop.f32.mrf.mxu0 }
 0x1c2   : > { %v4560_v51 = vadd.f32 %v1030_v46, %v805_v41  ;;  %2338 = vmatprep.subr.mxu1 %v3897_v0  ;;  %1756 = vmatprep.mubr.f32.mxu0 %v3529_v55  ;;  %v3542_v49 = vld [vmem:[#allocation8 + $0x300] sm:$0xff]  ;;  %v3543_v55 = vld [vmem:[#allocation8 + $0x318] sm:$0xff] }
 0x1c3   : > { %v1032_v57 = vpop.f32.mrf.mxu1  ;;  %2339 = vmatpush1.msra.mxu1 %v1622_v45  ;;  %v810_v58 = vpop.f32.mrf.mxu0  ;;  %1757 = vmatmul.mubr.f32.gmra.mxu0 %v3530_v59  ;;  %v1586_v45 = vld [vmem:[%s4083_s9 + $0x218] sm:$0xff] }
 0x1c4   : > { %1981 = vmatprep.mubr.f32.mxu1 %v3531_v60  ;;  %2115 = vmatprep.subr.mxu0 %v3897_v0 }
 0x1c5   : > { %v1035_v63 = vpop.f32.mrf.mxu1  ;;  %1982 = vmatmul.mubr.f32.gmra.mxu1 %v3532_v4  ;;  %2116 = vmatpush1.msra.mxu0 %v1589_v56  ;;  %v812_v6 = vpop.f32.mrf.mxu0  ;;  %v1618_v56 = vld [vmem:[%s4083_s9 + $0x318] sm:$0xff] }
 0x1c6   : > { %v4566_v7 = vadd.f32 %v1035_v63, %v810_v58  ;;  %2340 = vmatprep.subr.mxu1 %v3897_v0  ;;  %1761 = vmatprep.mubr.f32.mxu0 %v3533_v8  ;;  %v3544_v58 = vld [vmem:[#allocation8 + $0x310] sm:$0xff]  ;;  %v3546_v8 = vld [vmem:[#allocation8 + $0x340] sm:$0xff] }
 0x1c7   : > { %v1037_v11 = vpop.f32.mrf.mxu1  ;;  %2341 = vmatpush1.msra.mxu1 %v1621_v62  ;;  %v815_v12 = vpop.f32.mrf.mxu0  ;;  %1762 = vmatmul.mubr.f32.gmra.mxu0 %v3534_v13  ;;  %v3545_v62 = vld [vmem:[#allocation8 + $0x348] sm:$0xff]  ;;  %v1585_v63 = vld [vmem:[%s4083_s9 + $0x210] sm:$0xff] }
 0x1c8   : > { %1986 = vmatprep.mubr.f32.mxu1 %v3535_v14  ;;  %2117 = vmatprep.subr.mxu0 %v3897_v0  ;;  %v1617_v11 = vld [vmem:[%s4083_s9 + $0x310] sm:$0xff] }
 0x1c9   : > { %v1040_v21 = vpop.f32.mrf.mxu1  ;;  %1987 = vmatmul.mubr.f32.gmra.mxu1 %v3536_v22  ;;  %2118 = vmatpush1.msra.mxu0 %v1588_v10  ;;  %v817_v23 = vpop.f32.mrf.mxu0  ;;  %v3547_v10 = vld [vmem:[#allocation8 + $0x358] sm:$0xff]  ;;  %v3548_v13 = vld [vmem:[#allocation8 + $0x350] sm:$0xff]  ;;  %v1584_v22 = vld [vmem:[%s4083_s9 + $0x208] sm:$0xff] }
 0x1ca   : > { %v4572_v24 = vadd.f32 %v1040_v21, %v815_v12  ;;  %2342 = vmatprep.subr.mxu1 %v3897_v0  ;;  %1766 = vmatprep.mubr.f32.mxu0 %v3537_v25  ;;  %v3549_v21 = vld [vmem:[#allocation8 + $0x388] sm:$0xff] }
 0x1cb   : > { %v1042_v28 = vpop.f32.mrf.mxu1  ;;  %2343 = vmatpush1.msra.mxu1 %v1620_v17  ;;  %v820_v30 = vpop.f32.mrf.mxu0  ;;  %1767 = vmatmul.mubr.f32.gmra.mxu0 %v3538_v32 }
 0x1cc   : > { %1991 = vmatprep.mubr.f32.mxu1 %v3539_v33  ;;  %2119 = vmatprep.subr.mxu0 %v3897_v0  ;;  %v3551_v28 = vld [vmem:[#allocation8 + $0x398] sm:$0xff]  ;;  %v3552_v33 = vld [vmem:[#allocation8 + $0x390] sm:$0xff] }
 0x1cd   : > { %v1045_v37 = vpop.f32.mrf.mxu1  ;;  %1992 = vmatmul.mubr.f32.gmra.mxu1 %v3540_v40  ;;  %2120 = vmatpush1.msra.mxu0 %v1587_v26  ;;  %v822_v41 = vpop.f32.mrf.mxu0  ;;  %v3550_v26 = vld [vmem:[#allocation8 + $0x380] sm:$0xff]  ;;  %v3553_v40 = vld [vmem:[#allocation8 + $0x3c8] sm:$0xff] }
 0x1ce   : > { %v4578_v43 = vadd.f32 %v1045_v37, %v820_v30  ;;  %2344 = vmatprep.subr.mxu1 %v3897_v0  ;;  %1771 = vmatprep.mubr.f32.mxu0 %v3541_v44  ;;  %v1616_v30 = vld [vmem:[%s4083_s9 + $0x308] sm:$0xff]  ;;  %v1583_v41 = vld [vmem:[%s4083_s9 + $0x200] sm:$0xff] }
 0x1cf   : > { %v1047_v46 = vpop.f32.mrf.mxu1  ;;  %2345 = vmatpush1.msra.mxu1 %v1619_v36  ;;  %v825_v47 = vpop.f32.mrf.mxu0  ;;  %1772 = vmatmul.mubr.f32.gmra.mxu0 %v3542_v49  ;;  %v1615_v49 = vld [vmem:[%s4083_s9 + $0x300] sm:$0xff] }
 0x1d0   : > { %1996 = vmatprep.mubr.f32.mxu1 %v3543_v55  ;;  %2121 = vmatprep.subr.mxu0 %v3897_v0  ;;  %v3554_v46 = vld [vmem:[#allocation8 + $0x3c0] sm:$0xff] }
 0x1d1   : > { %v1050_v57 = vpop.f32.mrf.mxu1  ;;  %1997 = vmatmul.mubr.f32.gmra.mxu1 %v3544_v58  ;;  %2122 = vmatpush1.msra.mxu0 %v1586_v45  ;;  %v827_v59 = vpop.f32.mrf.mxu0 }
 0x1d2   : > { %v4584_v60 = vadd.f32 %v1050_v57, %v825_v47  ;;  %2346 = vmatprep.subr.mxu1 %v3897_v0  ;;  %1776 = vmatprep.mubr.f32.mxu0 %v3545_v62  ;;  %v3555_v47 = vld [vmem:[#allocation8 + $0x3d8] sm:$0xff]  ;;  %v3557_v59 = vld [vmem:[#allocation8 + $0x408] sm:$0xff] }
 0x1d3   : > { %v1052_v4 = vpop.f32.mrf.mxu1  ;;  %2347 = vmatpush1.msra.mxu1 %v1618_v56  ;;  %v830_v6 = vpop.f32.mrf.mxu0  ;;  %1777 = vmatmul.mubr.f32.gmra.mxu0 %v3546_v8  ;;  %v3556_v56 = vld [vmem:[#allocation8 + $0x3d0] sm:$0xff]  ;;  %v1614_v62 = vld [vmem:[%s4083_s9 + $0x2f8] sm:$0xff] }
 0x1d4   : > { %2001 = vmatprep.mubr.f32.mxu1 %v3547_v10  ;;  %2123 = vmatprep.subr.mxu0 %v3897_v0  ;;  %v3559_v10 = vld [vmem:[#allocation8 + $0x418] sm:$0xff] }
 0x1d5   : > { %v1055_v12 = vpop.f32.mrf.mxu1  ;;  %2002 = vmatmul.mubr.f32.gmra.mxu1 %v3548_v13  ;;  %2124 = vmatpush1.msra.mxu0 %v1585_v63  ;;  %v832_v14 = vpop.f32.mrf.mxu0  ;;  %v3560_v13 = vld [vmem:[#allocation8 + $0x410] sm:$0xff] }
 0x1d6   : > { %v4590_v17 = vadd.f32 %v1055_v12, %v830_v6  ;;  %2348 = vmatprep.subr.mxu1 %v3897_v0  ;;  %1781 = vmatprep.mubr.f32.mxu0 %v3549_v21  ;;  %v3558_v6 = vld [vmem:[#allocation8 + $0x400] sm:$0xff] }
 0x1d7   : > { %v1057_v23 = vpop.f32.mrf.mxu1  ;;  %2349 = vmatpush1.msra.mxu1 %v1617_v11  ;;  %v835_v25 = vpop.f32.mrf.mxu0  ;;  %1782 = vmatmul.mubr.f32.gmra.mxu0 %v3550_v26  ;;  %v1646_v11 = vld [vmem:[%s4083_s9 + $0x3f8] sm:$0xff]  ;;  %v3562_v26 = vld [vmem:[#allocation8 + $0x440] sm:$0xff] }
 0x1d8   : > { %2006 = vmatprep.mubr.f32.mxu1 %v3551_v28  ;;  %2125 = vmatprep.subr.mxu0 %v3897_v0  ;;  %v1613_v23 = vld [vmem:[%s4083_s9 + $0x2f0] sm:$0xff] }
 0x1d9   : > { %v1060_v32 = vpop.f32.mrf.mxu1  ;;  %2007 = vmatmul.mubr.f32.gmra.mxu1 %v3552_v33  ;;  %2126 = vmatpush1.msra.mxu0 %v1584_v22  ;;  %v837_v36 = vpop.f32.mrf.mxu0  ;;  %v3561_v22 = vld [vmem:[#allocation8 + $0x448] sm:$0xff] }
 0x1da   : > { %v4596_v37 = vadd.f32 %v1060_v32, %v835_v25  ;;  %2350 = vmatprep.subr.mxu1 %v3897_v0  ;;  %1786 = vmatprep.mubr.f32.mxu0 %v3553_v40  ;;  %v1645_v32 = vld [vmem:[%s4083_s9 + $0x3f0] sm:$0xff] }
 0x1db   : > { %v1062_v44 = vpop.f32.mrf.mxu1  ;;  %2351 = vmatpush1.msra.mxu1 %v1616_v30  ;;  %v840_v45 = vpop.f32.mrf.mxu0  ;;  %1787 = vmatmul.mubr.f32.gmra.mxu0 %v3554_v46  ;;  %v3563_v30 = vld [vmem:[#allocation8 + $0x458] sm:$0xff]  ;;  %v3564_v36 = vld [vmem:[#allocation8 + $0x450] sm:$0xff] }
 0x1dc   : > { %2011 = vmatprep.mubr.f32.mxu1 %v3555_v47  ;;  %2127 = vmatprep.subr.mxu0 %v3897_v0  ;;  %v3565_v44 = vld [vmem:[#allocation8 + $0x488] sm:$0xff]  ;;  %v3566_v47 = vld [vmem:[#allocation8 + $0x480] sm:$0xff] }
 0x1dd   : > { %v1065_v55 = vpop.f32.mrf.mxu1  ;;  %2012 = vmatmul.mubr.f32.gmra.mxu1 %v3556_v56  ;;  %2128 = vmatpush1.msra.mxu0 %v1583_v41  ;;  %v842_v57 = vpop.f32.mrf.mxu0  ;;  %v1644_v56 = vld [vmem:[%s4083_s9 + $0x3e8] sm:$0xff] }
 0x1de   : > { %v4602_v58 = vadd.f32 %v1065_v55, %v840_v45  ;;  %2352 = vmatprep.subr.mxu1 %v3897_v0  ;;  %1791 = vmatprep.mubr.f32.mxu0 %v3557_v59  ;;  %v1612_v45 = vld [vmem:[%s4083_s9 + $0x2e8] sm:$0xff]  ;;  %v3567_v55 = vld [vmem:[#allocation8 + $0x498] sm:$0xff]  ;;  %v3568_v59 = vld [vmem:[#allocation8 + $0x490] sm:$0xff] }
 0x1df   : > { %v1067_v63 = vpop.f32.mrf.mxu1  ;;  %2353 = vmatpush1.msra.mxu1 %v1615_v49  ;;  %v1135_v4 = vpop.f32.mrf.mxu0  ;;  %1792 = vmatmul.mubr.f32.gmra.mxu0 %v3558_v6  ;;  %v1611_v6 = vld [vmem:[%s4083_s9 + $0x2e0] sm:$0xff] }
 0x1e0   : > { %v1136_v8 = vadd.f32 %v1135_v4, %v4416_v50  ;;  %2016 = vmatprep.mubr.f32.mxu1 %v3559_v10  ;;  %2129 = vmatprep.subr.mxu0 %v3897_v0  ;;  %v3569_v4 = vld [vmem:[#allocation8 + $0x4c8] sm:$0xff]  ;;  %v3570_v10 = vld [vmem:[#allocation8 + $0x4c0] sm:$0xff] }
 0x1e1   : > { %v1360_v12 = vpop.f32.mrf.mxu1  ;;  %2017 = vmatmul.mubr.f32.gmra.mxu1 %v3560_v13  ;;  %2130 = vmatpush2.msra.mxu0 %v1614_v62  ;;  %v1137_v14 = vpop.f32.mrf.mxu0  ;;  %v1643_v13 = vld [vmem:[%s4083_s9 + $0x3e0] sm:$0xff] }
 0x1e2   : > { %v4609_v21 = vadd.f32 %v1360_v12, %v1136_v8  ;;  %2354 = vmatprep.subr.mxu1 %v3897_v0  ;;  %1796 = vmatprep.mubr.f32.mxu0 %v3561_v22  ;;  %v3571_v12 = vld [vmem:[#allocation8 + $0x4d8] sm:$0xff]  ;;  %v3572_v22 = vld [vmem:[#allocation8 + $0x4d0] sm:$0xff] }
 0x1e3   : > { %v1362_v25 = vpop.f32.mrf.mxu1  ;;  %2355 = vmatpush2.msra.mxu1 %v1646_v11  ;;  %v1140_v50 = vpop.f32.mrf.mxu0  ;;  %1797 = vmatmul.mubr.f32.gmra.mxu0 %v3562_v26  ;;  %v1610_v26 = vld [vmem:[%s4083_s9 + $0x2d8] sm:$0xff] }
 0x1e4   : > { %v1141_v28 = vadd.f32 %v1140_v50, %v4422_v61  ;;  %2021 = vmatprep.mubr.f32.mxu1 %v3563_v30  ;;  %2131 = vmatprep.subr.mxu0 %v3897_v0  ;;  %v3573_v50 = vld [vmem:[#allocation8 + $0x508] sm:$0xff]  ;;  %v3574_v30 = vld [vmem:[#allocation8 + $0x500] sm:$0xff] }
 0x1e5   : > { %v1365_v33 = vpop.f32.mrf.mxu1  ;;  %2022 = vmatmul.mubr.f32.gmra.mxu1 %v3564_v36  ;;  %2132 = vmatpush2.msra.mxu0 %v1613_v23  ;;  %v1142_v40 = vpop.f32.mrf.mxu0  ;;  %v1642_v36 = vld [vmem:[%s4083_s9 + $0x3d8] sm:$0xff] }
 0x1e6   : > { %v4616_v41 = vadd.f32 %v1365_v33, %v1141_v28  ;;  %2356 = vmatprep.subr.mxu1 %v3897_v0  ;;  %1801 = vmatprep.mubr.f32.mxu0 %v3565_v44  ;;  %v3575_v33 = vld [vmem:[#allocation8 + $0x518] sm:$0xff]  ;;  %v3576_v44 = vld [vmem:[#allocation8 + $0x510] sm:$0xff] }
 0x1e7   : > { %v1367_v46 = vpop.f32.mrf.mxu1  ;;  %2357 = vmatpush2.msra.mxu1 %v1645_v32  ;;  %v1145_v61 = vpop.f32.mrf.mxu0  ;;  %1802 = vmatmul.mubr.f32.gmra.mxu0 %v3566_v47  ;;  %v1609_v47 = vld [vmem:[%s4083_s9 + $0x2d0] sm:$0xff] }
 0x1e8   : > { %v1146_v49 = vadd.f32 %v1145_v61, %v4428_v9  ;;  %2026 = vmatprep.mubr.f32.mxu1 %v3567_v55  ;;  %2133 = vmatprep.subr.mxu0 %v3897_v0  ;;  %v3577_v61 = vld [vmem:[#allocation8 + $0x548] sm:$0xff]  ;;  %v3578_v55 = vld [vmem:[#allocation8 + $0x540] sm:$0xff] }
 0x1e9   : > { %v1370_v57 = vpop.f32.mrf.mxu1  ;;  %2027 = vmatmul.mubr.f32.gmra.mxu1 %v3568_v59  ;;  %2134 = vmatpush2.msra.mxu0 %v1612_v45  ;;  %v1147_v62 = vpop.f32.mrf.mxu0  ;;  %v1641_v59 = vld [vmem:[%s4083_s9 + $0x3d0] sm:$0xff] }
 0x1ea   : > { %v4623_v63 = vadd.f32 %v1370_v57, %v1146_v49  ;;  %2358 = vmatprep.subr.mxu1 %v3897_v0  ;;  %1806 = vmatprep.mubr.f32.mxu0 %v3569_v4  ;;  %v3579_v57 = vld [vmem:[#allocation8 + $0x558] sm:$0xff]  ;;  %v3580_v4 = vld [vmem:[#allocation8 + $0x550] sm:$0xff] }
 0x1eb   : > { %v1372_v8 = vpop.f32.mrf.mxu1  ;;  %2359 = vmatpush2.msra.mxu1 %v1644_v56  ;;  %v1150_v9 = vpop.f32.mrf.mxu0  ;;  %1807 = vmatmul.mubr.f32.gmra.mxu0 %v3570_v10  ;;  %v1608_v10 = vld [vmem:[%s4083_s9 + $0x2c8] sm:$0xff] }
 0x1ec   : > { %v1151_v11 = vadd.f32 %v1150_v9, %v4434_v20  ;;  %2031 = vmatprep.mubr.f32.mxu1 %v3571_v12  ;;  %2135 = vmatprep.subr.mxu0 %v3897_v0  ;;  %v3581_v9 = vld [vmem:[#allocation8 + $0x588] sm:$0xff]  ;;  %v3582_v12 = vld [vmem:[#allocation8 + $0x580] sm:$0xff] }
 0x1ed   : > { %v1375_v14 = vpop.f32.mrf.mxu1  ;;  %2032 = vmatmul.mubr.f32.gmra.mxu1 %v3572_v22  ;;  %2136 = vmatpush2.msra.mxu0 %v1611_v6  ;;  %v1152_v23 = vpop.f32.mrf.mxu0  ;;  %v1640_v22 = vld [vmem:[%s4083_s9 + $0x3c8] sm:$0xff] }
 0x1ee   : > { %v4630_v25 = vadd.f32 %v1375_v14, %v1151_v11  ;;  %2360 = vmatprep.subr.mxu1 %v3897_v0  ;;  %1811 = vmatprep.mubr.f32.mxu0 %v3573_v50  ;;  %v3583_v14 = vld [vmem:[#allocation8 + $0x598] sm:$0xff]  ;;  %v3584_v50 = vld [vmem:[#allocation8 + $0x590] sm:$0xff] }
 0x1ef   : > { %v1377_v28 = vpop.f32.mrf.mxu1  ;;  %2361 = vmatpush2.msra.mxu1 %v1643_v13  ;;  %v1155_v20 = vpop.f32.mrf.mxu0  ;;  %1812 = vmatmul.mubr.f32.gmra.mxu0 %v3574_v30  ;;  %v1607_v30 = vld [vmem:[%s4083_s9 + $0x2c0] sm:$0xff] }
 0x1f0   : > { %v1156_v32 = vadd.f32 %v1155_v20, %v4440_v31  ;;  %2036 = vmatprep.mubr.f32.mxu1 %v3575_v33  ;;  %2137 = vmatprep.subr.mxu0 %v3897_v0  ;;  %v3585_v20 = vld [vmem:[#allocation8 + $0x5c8] sm:$0xff]  ;;  %v3586_v33 = vld [vmem:[#allocation8 + $0x5c0] sm:$0xff] }
 0x1f1   : > { %v1380_v40 = vpop.f32.mrf.mxu1  ;;  %2037 = vmatmul.mubr.f32.gmra.mxu1 %v3576_v44  ;;  %2138 = vmatpush2.msra.mxu0 %v1610_v26  ;;  %v1157_v45 = vpop.f32.mrf.mxu0  ;;  %v1639_v44 = vld [vmem:[%s4083_s9 + $0x3c0] sm:$0xff] }
 0x1f2   : > { %v4637_v46 = vadd.f32 %v1380_v40, %v1156_v32  ;;  %2362 = vmatprep.subr.mxu1 %v3897_v0  ;;  %1816 = vmatprep.mubr.f32.mxu0 %v3577_v61  ;;  %v3587_v40 = vld [vmem:[#allocation8 + $0x5d8] sm:$0xff]  ;;  %v3588_v61 = vld [vmem:[#allocation8 + $0x5d0] sm:$0xff] }
 0x1f3   : > { %v1382_v49 = vpop.f32.mrf.mxu1  ;;  %2363 = vmatpush2.msra.mxu1 %v1642_v36  ;;  %v1160_v31 = vpop.f32.mrf.mxu0  ;;  %1817 = vmatmul.mubr.f32.gmra.mxu0 %v3578_v55  ;;  %v1606_v55 = vld [vmem:[%s4083_s9 + $0x2b8] sm:$0xff] }
 0x1f4   : > { %v1161_v56 = vadd.f32 %v1160_v31, %v4446_v42  ;;  %2041 = vmatprep.mubr.f32.mxu1 %v3579_v57  ;;  %2139 = vmatprep.subr.mxu0 %v3897_v0  ;;  %v3589_v31 = vld [vmem:[#allocation8 + $0x608] sm:$0xff]  ;;  %v3590_v57 = vld [vmem:[#allocation8 + $0x600] sm:$0xff] }
 0x1f5   : > { %v1385_v62 = vpop.f32.mrf.mxu1  ;;  %2042 = vmatmul.mubr.f32.gmra.mxu1 %v3580_v4  ;;  %2140 = vmatpush2.msra.mxu0 %v1609_v47  ;;  %v1162_v6 = vpop.f32.mrf.mxu0  ;;  %v1638_v4 = vld [vmem:[%s4083_s9 + $0x3b8] sm:$0xff] }
 0x1f6   : > { %v4644_v8 = vadd.f32 %v1385_v62, %v1161_v56  ;;  %2364 = vmatprep.subr.mxu1 %v3897_v0  ;;  %1821 = vmatprep.mubr.f32.mxu0 %v3581_v9  ;;  %v3591_v62 = vld [vmem:[#allocation8 + $0x618] sm:$0xff]  ;;  %v3592_v9 = vld [vmem:[#allocation8 + $0x610] sm:$0xff] }
 0x1f7   : > { %v1387_v11 = vpop.f32.mrf.mxu1  ;;  %2365 = vmatpush2.msra.mxu1 %v1641_v59  ;;  %v1165_v42 = vpop.f32.mrf.mxu0  ;;  %1822 = vmatmul.mubr.f32.gmra.mxu0 %v3582_v12  ;;  %v1605_v12 = vld [vmem:[%s4083_s9 + $0x2b0] sm:$0xff] }
 0x1f8   : > { %v1166_v13 = vadd.f32 %v1165_v42, %v4452_v54  ;;  %2046 = vmatprep.mubr.f32.mxu1 %v3583_v14  ;;  %2141 = vmatprep.subr.mxu0 %v3897_v0  ;;  %v3593_v42 = vld [vmem:[#allocation8 + $0x648] sm:$0xff]  ;;  %v3594_v14 = vld [vmem:[#allocation8 + $0x640] sm:$0xff] }
 0x1f9   : > { %v1390_v23 = vpop.f32.mrf.mxu1  ;;  %2047 = vmatmul.mubr.f32.gmra.mxu1 %v3584_v50  ;;  %2142 = vmatpush2.msra.mxu0 %v1608_v10  ;;  %v1167_v26 = vpop.f32.mrf.mxu0  ;;  %v1637_v50 = vld [vmem:[%s4083_s9 + $0x3b0] sm:$0xff] }
 0x1fa   : > { %v4651_v28 = vadd.f32 %v1390_v23, %v1166_v13  ;;  %2366 = vmatprep.subr.mxu1 %v3897_v0  ;;  %1826 = vmatprep.mubr.f32.mxu0 %v3585_v20  ;;  %v3595_v23 = vld [vmem:[#allocation8 + $0x658] sm:$0xff]  ;;  %v3596_v20 = vld [vmem:[#allocation8 + $0x650] sm:$0xff] }
 0x1fb   : > { %v1392_v32 = vpop.f32.mrf.mxu1  ;;  %2367 = vmatpush2.msra.mxu1 %v1640_v22  ;;  %v1170_v54 = vpop.f32.mrf.mxu0  ;;  %1827 = vmatmul.mubr.f32.gmra.mxu0 %v3586_v33  ;;  %v1604_v33 = vld [vmem:[%s4083_s9 + $0x2a8] sm:$0xff] }
 0x1fc   : > { %v1171_v36 = vadd.f32 %v1170_v54, %v4458_v3  ;;  %2051 = vmatprep.mubr.f32.mxu1 %v3587_v40  ;;  %2143 = vmatprep.subr.mxu0 %v3897_v0  ;;  %v3597_v54 = vld [vmem:[#allocation8 + $0x688] sm:$0xff]  ;;  %v3598_v40 = vld [vmem:[#allocation8 + $0x680] sm:$0xff] }
 0x1fd   : > { %v1395_v45 = vpop.f32.mrf.mxu1  ;;  %2052 = vmatmul.mubr.f32.gmra.mxu1 %v3588_v61  ;;  %2144 = vmatpush2.msra.mxu0 %v1607_v30  ;;  %v1172_v47 = vpop.f32.mrf.mxu0  ;;  %v1636_v61 = vld [vmem:[%s4083_s9 + $0x3a8] sm:$0xff] }
 0x1fe   : > { %v4658_v49 = vadd.f32 %v1395_v45, %v1171_v36  ;;  %2368 = vmatprep.subr.mxu1 %v3897_v0  ;;  %1831 = vmatprep.mubr.f32.mxu0 %v3589_v31  ;;  %v3599_v45 = vld [vmem:[#allocation8 + $0x698] sm:$0xff]  ;;  %v3600_v31 = vld [vmem:[#allocation8 + $0x690] sm:$0xff] }
 0x1ff   : > { %v1397_v56 = vpop.f32.mrf.mxu1  ;;  %2369 = vmatpush2.msra.mxu1 %v1639_v44  ;;  %v1175_v3 = vpop.f32.mrf.mxu0  ;;  %1832 = vmatmul.mubr.f32.gmra.mxu0 %v3590_v57  ;;  %v1603_v57 = vld [vmem:[%s4083_s9 + $0x2a0] sm:$0xff] }
 0x200   : > { %v1176_v59 = vadd.f32 %v1175_v3, %v4464_v15  ;;  %2056 = vmatprep.mubr.f32.mxu1 %v3591_v62  ;;  %2145 = vmatprep.subr.mxu0 %v3897_v0  ;;  %v3601_v3 = vld [vmem:[#allocation8 + $0x6c8] sm:$0xff]  ;;  %v3602_v62 = vld [vmem:[#allocation8 + $0x6c0] sm:$0xff] }
 0x201   : > { %v1400_v6 = vpop.f32.mrf.mxu1  ;;  %2057 = vmatmul.mubr.f32.gmra.mxu1 %v3592_v9  ;;  %2146 = vmatpush2.msra.mxu0 %v1606_v55  ;;  %v1177_v10 = vpop.f32.mrf.mxu0  ;;  %v1635_v9 = vld [vmem:[%s4083_s9 + $0x3a0] sm:$0xff] }
 0x202   : > { %v4665_v11 = vadd.f32 %v1400_v6, %v1176_v59  ;;  %2370 = vmatprep.subr.mxu1 %v3897_v0  ;;  %1836 = vmatprep.mubr.f32.mxu0 %v3593_v42  ;;  %v3603_v6 = vld [vmem:[#allocation8 + $0x6d8] sm:$0xff]  ;;  %v3604_v42 = vld [vmem:[#allocation8 + $0x6d0] sm:$0xff] }
 0x203   : > { %v1402_v13 = vpop.f32.mrf.mxu1  ;;  %2371 = vmatpush2.msra.mxu1 %v1638_v4  ;;  %v1180_v15 = vpop.f32.mrf.mxu0  ;;  %1837 = vmatmul.mubr.f32.gmra.mxu0 %v3594_v14  ;;  %v1602_v14 = vld [vmem:[%s4083_s9 + $0x298] sm:$0xff] }
 0x204   : > { %v1181_v22 = vadd.f32 %v1180_v15, %v4470_v27  ;;  %2061 = vmatprep.mubr.f32.mxu1 %v3595_v23  ;;  %2147 = vmatprep.subr.mxu0 %v3897_v0  ;;  %v3605_v15 = vld [vmem:[#allocation8 + $0x708] sm:$0xff]  ;;  %v3606_v23 = vld [vmem:[#allocation8 + $0x700] sm:$0xff] }
 0x205   : > { %v1405_v26 = vpop.f32.mrf.mxu1  ;;  %2062 = vmatmul.mubr.f32.gmra.mxu1 %v3596_v20  ;;  %2148 = vmatpush2.msra.mxu0 %v1605_v12  ;;  %v1182_v30 = vpop.f32.mrf.mxu0  ;;  %v1634_v20 = vld [vmem:[%s4083_s9 + $0x398] sm:$0xff] }
 0x206   : > { %v4672_v32 = vadd.f32 %v1405_v26, %v1181_v22  ;;  %2372 = vmatprep.subr.mxu1 %v3897_v0  ;;  %1841 = vmatprep.mubr.f32.mxu0 %v3597_v54  ;;  %v3607_v26 = vld [vmem:[#allocation8 + $0x718] sm:$0xff]  ;;  %v3608_v54 = vld [vmem:[#allocation8 + $0x710] sm:$0xff] }
 0x207   : > { %v1407_v36 = vpop.f32.mrf.mxu1  ;;  %2373 = vmatpush2.msra.mxu1 %v1637_v50  ;;  %v1185_v27 = vpop.f32.mrf.mxu0  ;;  %1842 = vmatmul.mubr.f32.gmra.mxu0 %v3598_v40  ;;  %v1601_v40 = vld [vmem:[%s4083_s9 + $0x290] sm:$0xff] }
 0x208   : > { %v1186_v44 = vadd.f32 %v1185_v27, %v4476_v39  ;;  %2066 = vmatprep.mubr.f32.mxu1 %v3599_v45  ;;  %2149 = vmatprep.subr.mxu0 %v3897_v0  ;;  %v3609_v27 = vld [vmem:[#allocation8 + $0x748] sm:$0xff]  ;;  %v3610_v45 = vld [vmem:[#allocation8 + $0x740] sm:$0xff] }
 0x209   : > { %v1410_v47 = vpop.f32.mrf.mxu1  ;;  %2067 = vmatmul.mubr.f32.gmra.mxu1 %v3600_v31  ;;  %2150 = vmatpush2.msra.mxu0 %v1604_v33  ;;  %v1187_v55 = vpop.f32.mrf.mxu0  ;;  %v1633_v31 = vld [vmem:[%s4083_s9 + $0x390] sm:$0xff] }
 0x20a   : > { %v4679_v56 = vadd.f32 %v1410_v47, %v1186_v44  ;;  %2374 = vmatprep.subr.mxu1 %v3897_v0  ;;  %1846 = vmatprep.mubr.f32.mxu0 %v3601_v3  ;;  %v3611_v47 = vld [vmem:[#allocation8 + $0x758] sm:$0xff]  ;;  %v3612_v3 = vld [vmem:[#allocation8 + $0x750] sm:$0xff] }
 0x20b   : > { %v1412_v59 = vpop.f32.mrf.mxu1  ;;  %2375 = vmatpush2.msra.mxu1 %v1636_v61  ;;  %v1190_v39 = vpop.f32.mrf.mxu0  ;;  %1847 = vmatmul.mubr.f32.gmra.mxu0 %v3602_v62  ;;  %v1600_v62 = vld [vmem:[%s4083_s9 + $0x288] sm:$0xff] }
 0x20c   : > { %v1191_v4 = vadd.f32 %v1190_v39, %v4482_v52  ;;  %2071 = vmatprep.mubr.f32.mxu1 %v3603_v6  ;;  %2151 = vmatprep.subr.mxu0 %v3897_v0  ;;  %v3613_v39 = vld [vmem:[#allocation8 + $0x788] sm:$0xff]  ;;  %v3614_v6 = vld [vmem:[#allocation8 + $0x780] sm:$0xff] }
 0x20d   : > { %v1415_v10 = vpop.f32.mrf.mxu1  ;;  %2072 = vmatmul.mubr.f32.gmra.mxu1 %v3604_v42  ;;  %2152 = vmatpush2.msra.mxu0 %v1603_v57  ;;  %v1192_v12 = vpop.f32.mrf.mxu0  ;;  %v1632_v42 = vld [vmem:[%s4083_s9 + $0x388] sm:$0xff] }
 0x20e   : > { %v4686_v13 = vadd.f32 %v1415_v10, %v1191_v4  ;;  %2376 = vmatprep.subr.mxu1 %v3897_v0  ;;  %1851 = vmatprep.mubr.f32.mxu0 %v3605_v15  ;;  %v3615_v10 = vld [vmem:[#allocation8 + $0x798] sm:$0xff]  ;;  %v3616_v15 = vld [vmem:[#allocation8 + $0x790] sm:$0xff] }
 0x20f   : > { %v1417_v22 = vpop.f32.mrf.mxu1  ;;  %2377 = vmatpush2.msra.mxu1 %v1635_v9  ;;  %v1195_v52 = vpop.f32.mrf.mxu0  ;;  %1852 = vmatmul.mubr.f32.gmra.mxu0 %v3606_v23  ;;  %v1599_v23 = vld [vmem:[%s4083_s9 + $0x280] sm:$0xff] }
 0x210   : > { %v1196_v50 = vadd.f32 %v1195_v52, %v4488_v2  ;;  %2076 = vmatprep.mubr.f32.mxu1 %v3607_v26  ;;  %2153 = vmatprep.subr.mxu0 %v3897_v0  ;;  %v3617_v52 = vld [vmem:[#allocation8 + $0x7c8] sm:$0xff]  ;;  %v3618_v26 = vld [vmem:[#allocation8 + $0x7c0] sm:$0xff] }
 0x211   : > { %v1420_v30 = vpop.f32.mrf.mxu1  ;;  %2077 = vmatmul.mubr.f32.gmra.mxu1 %v3608_v54  ;;  %2154 = vmatpush2.msra.mxu0 %v1602_v14  ;;  %v1197_v33 = vpop.f32.mrf.mxu0  ;;  %v1631_v54 = vld [vmem:[%s4083_s9 + $0x380] sm:$0xff] }
 0x212   : > { %v4693_v36 = vadd.f32 %v1420_v30, %v1196_v50  ;;  %2378 = vmatprep.subr.mxu1 %v3897_v0  ;;  %1856 = vmatprep.mubr.f32.mxu0 %v3609_v27  ;;  %v3619_v30 = vld [vmem:[#allocation8 + $0x7d8] sm:$0xff]  ;;  %v3620_v27 = vld [vmem:[#allocation8 + $0x7d0] sm:$0xff] }
 0x213   : > { %v1422_v44 = vpop.f32.mrf.mxu1  ;;  %2379 = vmatpush2.msra.mxu1 %v1634_v20  ;;  %v1200_v2 = vpop.f32.mrf.mxu0  ;;  %1857 = vmatmul.mubr.f32.gmra.mxu0 %v3610_v45 }
 0x214   : > { %v1201_v61 = vadd.f32 %v1200_v2, %v4494_v16  ;;  %2081 = vmatprep.mubr.f32.mxu1 %v3611_v47  ;;  %2155 = vmatprep.subr.mxu0 %v3897_v0  ;;  %v3621_v2 = vld [vmem:[#allocation8 + $0x28] sm:$0xff] }
 0x215   : > { %v1425_v55 = vpop.f32.mrf.mxu1  ;;  %2082 = vmatmul.mubr.f32.gmra.mxu1 %v3612_v3  ;;  %2156 = vmatpush2.msra.mxu0 %v1601_v40  ;;  %v1202_v57 = vpop.f32.mrf.mxu0 }
 0x216   : > { %v4700_v59 = vadd.f32 %v1425_v55, %v1201_v61  ;;  %2380 = vmatprep.subr.mxu1 %v3897_v0  ;;  %1861 = vmatprep.mubr.f32.mxu0 %v3613_v39  ;;  %v3624_v55 = vld [vmem:[#allocation8 + $0x68] sm:$0xff]  ;;  %v3625_v57 = vld [vmem:[#allocation8 + $0x30] sm:$0xff] }
 0x217   : > { %v1427_v4 = vpop.f32.mrf.mxu1  ;;  %2381 = vmatpush2.msra.mxu1 %v1633_v31  ;;  %v1205_v16 = vpop.f32.mrf.mxu0  ;;  %1862 = vmatmul.mubr.f32.gmra.mxu0 %v3614_v6  ;;  %v3623_v31 = vld [vmem:[#allocation8 + $0x38] sm:$0xff]  ;;  %v3627_v6 = vld [vmem:[#allocation8 + $0x60] sm:$0xff] }
 0x218   : > { %v1206_v9 = vadd.f32 %v1205_v16, %v4500_v29  ;;  %2086 = vmatprep.mubr.f32.mxu1 %v3615_v10  ;;  %2157 = vmatprep.subr.mxu0 %v3897_v0 }
 0x219   : > { %v1430_v12 = vpop.f32.mrf.mxu1  ;;  %2087 = vmatmul.mubr.f32.gmra.mxu1 %v3616_v15  ;;  %2158 = vmatpush2.msra.mxu0 %v1600_v62  ;;  %v1207_v14 = vpop.f32.mrf.mxu0  ;;  %v3629_v15 = vld [vmem:[#allocation8 + $0x70] sm:$0xff] }
 0x21a   : > { %v4707_v22 = vadd.f32 %v1430_v12, %v1206_v9  ;;  %2382 = vmatprep.subr.mxu1 %v3897_v0  ;;  %1866 = vmatprep.mubr.f32.mxu0 %v3617_v52  ;;  %v2579_v9 = vmul.f32 %v4609_v21, %v4609_v21 }
 0x21b   : > { %v1432_v50 = vpop.f32.mrf.mxu1  ;;  %2383 = vmatpush2.msra.mxu1 %v1632_v42  ;;  %v1210_v29 = vpop.f32.mrf.mxu0  ;;  %1867 = vmatmul.mubr.f32.gmra.mxu0 %v3618_v26  ;;  %v3628_v42 = vld [vmem:[#allocation8 + $0xa8] sm:$0xff] }
 0x21c   : > { %6043 = vst [vmem:[#allocation14_spill] sm:$0xff] %v4707_v22  ;;  %v1211_v20 = vadd.f32 %v1210_v29, %v4506_v38  ;;  %2091 = vmatprep.mubr.f32.mxu1 %v3619_v30  ;;  %2159 = vmatprep.subr.mxu0 %v3897_v0  ;;  %v3622_v38 = vld [vmem:[#allocation8 + $0x20] sm:$0xff]  ;;  %v3630_v50 = vld [vmem:[#allocation8 + $0xb8] sm:$0xff] }
 0x21d   : > { %v1435_v33 = vpop.f32.mrf.mxu1  ;;  %2092 = vmatmul.mubr.f32.gmra.mxu1 %v3620_v27  ;;  %2160 = vmatpush2.msra.mxu0 %v1599_v23  ;;  %v1212_v40 = vpop.f32.mrf.mxu0 }
 0x21e   : > { %v4714_v44 = vadd.f32 %v1435_v33, %v1211_v20  ;;  %2384 = vmatprep.subr.mxu1 %v3897_v0  ;;  %2161 = vmatprep.mubr.f32.mxu0 %v3621_v2  ;;  %v3626_v0 = vld [vmem:[#allocation8 + $0x78] sm:$0xff]  ;;  %v3631_v20 = vld [vmem:[#allocation8 + $0xa0] sm:$0xff]  ;;  %v2580_v33 = vmul.f32 %v4616_v41, %v4616_v41  ;;  %v3633_v40 = vld [vmem:[#allocation8 + $0xb0] sm:$0xff] }
 0x21f   : > { %v1437_v45 = vpop.f32.mrf.mxu1  ;;  %2385 = vmatpush2.msra.mxu1 %v1631_v54  ;;  %v1215_v61 = vpop.f32.mrf.mxu0  ;;  %2162 = vmatmul.mubr.f32.vlgmr.msra.gmra.mxu0 %v3622_v38  ;;  %v3632_v54 = vld [vmem:[#allocation8 + $0xe8] sm:$0xff] }
 0x220   : > { %6044 = vst [vmem:[#allocation15_spill] sm:$0xff] %v4714_v44  ;;  %v1216_v47 = vadd.f32 %v1215_v61, %v4512_v53  ;;  %2386 = vmatprep.mubr.f32.mxu1 %v3623_v31  ;;  %2166 = vmatprep.mubr.f32.mxu0 %v3624_v55  ;;  %v3634_v45 = vld [vmem:[#allocation8 + $0xf8] sm:$0xff]  ;;  %v3635_v55 = vld [vmem:[#allocation8 + $0xe0] sm:$0xff] }
 0x221   : > { %v1440_v3 = vpop.f32.mrf.mxu1  ;;  %2387 = vmatmul.mubr.f32.vlgmr.msra.gmra.mxu1 %v3625_v57  ;;  %v1217_v39 = vpop.f32.mrf.mxu0 }
 0x222   : > { %v4718_v62 = vadd.f32 %v1440_v3, %v1216_v47  ;;  %2391 = vmatprep.mubr.f32.mxu1 %v3626_v0  ;;  %v3636_v3 = vld [vmem:[#allocation8 + $0x128] sm:$0xff]  ;;  %v3637_v0 = vld [vmem:[#allocation8 + $0xf0] sm:$0xff] }
 0x223   : > { %v1442_v4 = vpop.f32.mrf.mxu1  ;;  %v1220_v16 = vpop.f32.mrf.mxu0  ;;  %2167 = vmatmul.mubr.f32.gmra.mxu0 %v3627_v6 }
 0x224   : > { %6045 = vst [vmem:[#allocation16_spill] sm:$0xff] %v4718_v62  ;;  %v2595_v53 = vmul.f32 %v4718_v62, %v4718_v62  ;;  %v1221_v10 = vadd.f32 %v1220_v16, %v4518_v5  ;;  %2171 = vmatprep.mubr.f32.mxu0 %v3628_v42  ;;  %v2581_v16 = vmul.f32 %v4623_v63, %v4623_v63  ;;  %v3639_v42 = vld [vmem:[#allocation8 + $0x120] sm:$0xff] }
 0x225   : > { %v1445_v12 = vpop.f32.mrf.mxu1  ;;  %2392 = vmatmul.mubr.f32.gmra.mxu1 %v3629_v15  ;;  %v1222_v14 = vpop.f32.mrf.mxu0 }
 0x226   : > { %v4725_v52 = vadd.f32 %v2595_v53, %v2579_v9  ;;  %v4727_v23 = vadd.f32 %v1445_v12, %v1221_v10  ;;  %2396 = vmatprep.mubr.f32.mxu1 %v3630_v50  ;;  %v3638_v9 = vld [vmem:[#allocation8 + $0x138] sm:$0xff]  ;;  %v3640_v50 = vld [vmem:[#allocation8 + $0x168] sm:$0xff] }
 0x227   : > { %v1447_v29 = vpop.f32.mrf.mxu1  ;;  %v1225_v26 = vpop.f32.mrf.mxu0  ;;  %2172 = vmatmul.mubr.f32.gmra.mxu0 %v3631_v20 }
 0x228   : > { %6046 = vst [vmem:[#allocation17_spill] sm:$0xff] %v4727_v23  ;;  %v2596_v30 = vmul.f32 %v4727_v23, %v4727_v23  ;;  %v1226_v5 = vadd.f32 %v1225_v26, %v4524_v19  ;;  %2176 = vmatprep.mubr.f32.mxu0 %v3632_v54  ;;  %v3641_v26 = vld [vmem:[#allocation8 + $0x130] sm:$0xff]  ;;  %v3642_v54 = vld [vmem:[#allocation8 + $0x178] sm:$0xff] }
 0x229   : > { %v1450_v27 = vpop.f32.mrf.mxu1  ;;  %2397 = vmatmul.mubr.f32.gmra.mxu1 %v3633_v40  ;;  %v1227_v2 = vpop.f32.mrf.mxu0  ;;  %v3643_v40 = vld [vmem:[#allocation8 + $0x160] sm:$0xff] }
 0x22a   : > { %2401 = vmatprep.mubr.f32.mxu1 %v3634_v45  ;;  %v4734_v61 = vadd.f32 %v2596_v30, %v2580_v33  ;;  %v4736_v38 = vadd.f32 %v1450_v27, %v1226_v5  ;;  %v3644_v2 = vld [vmem:[#allocation8 + $0x1a8] sm:$0xff] }
 0x22b   : > { %v1452_v47 = vpop.f32.mrf.mxu1  ;;  %v1230_v31 = vpop.f32.mrf.mxu0  ;;  %2177 = vmatmul.mubr.f32.gmra.mxu0 %v3635_v55 }
 0x22c   : > { %6047 = vst [vmem:[#allocation18_spill] sm:$0xff] %v4736_v38  ;;  %v1231_v19 = vadd.f32 %v1230_v31, %v4530_v34  ;;  %2181 = vmatprep.mubr.f32.mxu0 %v3636_v3  ;;  %v2597_v57 = vmul.f32 %v4736_v38, %v4736_v38  ;;  %v2582_v34 = vmul.f32 %v4630_v25, %v4630_v25  ;;  %v3645_v31 = vld [vmem:[#allocation8 + $0x170] sm:$0xff]  ;;  %v3646_v3 = vld [vmem:[#allocation8 + $0x1b8] sm:$0xff] }
 0x22d   : > { %v1455_v39 = vpop.f32.mrf.mxu1  ;;  %2402 = vmatmul.mubr.f32.gmra.mxu1 %v3637_v0  ;;  %v1232_v4 = vpop.f32.mrf.mxu0  ;;  %v3647_v0 = vld [vmem:[#allocation8 + $0x1a0] sm:$0xff] }
 0x22e   : > { %v4743_v6 = vadd.f32 %v1455_v39, %v1231_v19  ;;  %2406 = vmatprep.mubr.f32.mxu1 %v3638_v9  ;;  %v4747_v12 = vadd.f32 %v2597_v57, %v2581_v16  ;;  %v2583_v19 = vmul.f32 %v4637_v46, %v4637_v46 }
 0x22f   : > { %v1457_v53 = vpop.f32.mrf.mxu1  ;;  %v1235_v10 = vpop.f32.mrf.mxu0  ;;  %2182 = vmatmul.mubr.f32.gmra.mxu0 %v3639_v42 }
 0x230   : > { %6048 = vst [vmem:[#allocation19_spill] sm:$0xff] %v4743_v6  ;;  %v2598_v15 = vmul.f32 %v4743_v6, %v4743_v6  ;;  %v1236_v14 = vadd.f32 %v1235_v10, %v4536_v48  ;;  %2186 = vmatprep.mubr.f32.mxu0 %v3640_v50  ;;  %v3649_v10 = vld [vmem:[#allocation8 + $0x1b0] sm:$0xff]  ;;  %v2584_v50 = vmul.f32 %v4644_v8, %v4644_v8 }
 0x231   : > { %v1460_v29 = vpop.f32.mrf.mxu1  ;;  %2407 = vmatmul.mubr.f32.gmra.mxu1 %v3641_v26  ;;  %v1237_v20 = vpop.f32.mrf.mxu0 }
 0x232   : > { %v4752_v30 = vadd.f32 %v2598_v15, %v2582_v34  ;;  %v4754_v5 = vadd.f32 %v1460_v29, %v1236_v14  ;;  %2411 = vmatprep.mubr.f32.mxu1 %v3642_v54  ;;  %v3650_v14 = vld [vmem:[#allocation8 + $0x1f8] sm:$0xff]  ;;  %v3651_v20 = vld [vmem:[#allocation8 + $0x1e0] sm:$0xff]  ;;  %v2585_v54 = vmul.f32 %v4651_v28, %v4651_v28 }
 0x233   : > { %v1462_v33 = vpop.f32.mrf.mxu1  ;;  %v1240_v27 = vpop.f32.mrf.mxu0  ;;  %2187 = vmatmul.mubr.f32.gmra.mxu0 %v3643_v40 }
 0x234   : > { %6049 = vst [vmem:[#allocation20_spill] sm:$0xff] %v4754_v5  ;;  %2191 = vmatprep.mubr.f32.mxu0 %v3644_v2  ;;  %v2599_v48 = vmul.f32 %v4754_v5, %v4754_v5  ;;  %v1241_v45 = vadd.f32 %v1240_v27, %v4542_v1  ;;  %v3648_v1 = vld [vmem:[#allocation8 + $0x1e8] sm:$0xff] }
 0x235   : > { %v1465_v47 = vpop.f32.mrf.mxu1  ;;  %2412 = vmatmul.mubr.f32.gmra.mxu1 %v3645_v31  ;;  %v1242_v55 = vpop.f32.mrf.mxu0 }
 0x236   : > { %2416 = vmatprep.mubr.f32.mxu1 %v3646_v3  ;;  %v4761_v4 = vadd.f32 %v2599_v48, %v2583_v19  ;;  %v4763_v16 = vadd.f32 %v1465_v47, %v1241_v45  ;;  %v3653_v48 = vld [vmem:[#allocation8 + $0x1f0] sm:$0xff]  ;;  %v3654_v47 = vld [vmem:[#allocation8 + $0x238] sm:$0xff] }
 0x237   : > { %v1467_v57 = vpop.f32.mrf.mxu1  ;;  %v1245_v39 = vpop.f32.mrf.mxu0  ;;  %2192 = vmatmul.mubr.f32.gmra.mxu0 %v3647_v0  ;;  %v3656_v0 = vld [vmem:[#allocation8 + $0x268] sm:$0xff] }
 0x238   : > { %6050 = vst [vmem:[#allocation21_spill] sm:$0xff] %v4763_v16  ;;  %v1246_v9 = vadd.f32 %v1245_v39, %v4548_v18  ;;  %2196 = vmatprep.mubr.f32.mxu0 %v3648_v1  ;;  %v2600_v34 = vmul.f32 %v4763_v16, %v4763_v16  ;;  %v3652_v18 = vld [vmem:[#allocation8 + $0x228] sm:$0xff]  ;;  %v3655_v57 = vld [vmem:[#allocation8 + $0x220] sm:$0xff] }
 0x239   : > { %v1470_v53 = vpop.f32.mrf.mxu1  ;;  %2417 = vmatmul.mubr.f32.gmra.mxu1 %v3649_v10  ;;  %v1247_v42 = vpop.f32.mrf.mxu0 }
 0x23a   : > { %v4768_v15 = vadd.f32 %v1470_v53, %v1246_v9  ;;  %2421 = vmatprep.mubr.f32.mxu1 %v3650_v14  ;;  %v4774_v33 = vadd.f32 %v2600_v34, %v2584_v50  ;;  %v3658_v42 = vld [vmem:[#allocation8 + $0x278] sm:$0xff]  ;;  %v2586_v34 = vmul.f32 %v4658_v49, %v4658_v49 }
 0x23b   : > { %v1472_v29 = vpop.f32.mrf.mxu1  ;;  %v1250_v26 = vpop.f32.mrf.mxu0  ;;  %2197 = vmatmul.mubr.f32.gmra.mxu0 %v3651_v20 }
 0x23c   : > { %6051 = vst [vmem:[#allocation22_spill] sm:$0xff] %v4768_v15  ;;  %2201 = vmatprep.mubr.f32.mxu0 %v3652_v18  ;;  %v2601_v27 = vmul.f32 %v4768_v15, %v4768_v15  ;;  %v1251_v40 = vadd.f32 %v1250_v26, %v4554_v35  ;;  %v3657_v35 = vld [vmem:[#allocation8 + $0x230] sm:$0xff]  ;;  %v3659_v29 = vld [vmem:[#allocation8 + $0x260] sm:$0xff] }
 0x23d   : > { %v1475_v2 = vpop.f32.mrf.mxu1  ;;  %2422 = vmatmul.mubr.f32.gmra.mxu1 %v3653_v48  ;;  %v1252_v45 = vpop.f32.mrf.mxu0  ;;  %v3661_v18 = vld [vmem:[#allocation8 + $0x270] sm:$0xff]  ;;  %v3662_v48 = vld [vmem:[#allocation8 + $0x2b8] sm:$0xff] }
 0x23e   : > { %2426 = vmatprep.mubr.f32.mxu1 %v3654_v47  ;;  %v4779_v31 = vadd.f32 %v2601_v27, %v2585_v54  ;;  %v4781_v55 = vadd.f32 %v1475_v2, %v1251_v40  ;;  %v2587_v27 = vmul.f32 %v4665_v11, %v4665_v11 }
 0x23f   : > { %v1477_v19 = vpop.f32.mrf.mxu1  ;;  %v1255_v3 = vpop.f32.mrf.mxu0  ;;  %2202 = vmatmul.mubr.f32.gmra.mxu0 %v3655_v57 }
 0x240   : > { %6052 = vst [vmem:[#allocation23_spill] sm:$0xff] %v4781_v55  ;;  %v1256_v39 = vadd.f32 %v1255_v3, %v4560_v51  ;;  %2206 = vmatprep.mubr.f32.mxu0 %v3656_v0  ;;  %v2602_v53 = vmul.f32 %v4781_v55, %v4781_v55  ;;  %v3660_v51 = vld [vmem:[#allocation8 + $0x2a8] sm:$0xff]  ;;  %v3663_v19 = vld [vmem:[#allocation8 + $0x2a0] sm:$0xff] }
 0x241   : > { %v1480_v9 = vpop.f32.mrf.mxu1  ;;  %2427 = vmatmul.mubr.f32.gmra.mxu1 %v3657_v35  ;;  %v1257_v1 = vpop.f32.mrf.mxu0  ;;  %v3664_v0 = vld [vmem:[#allocation8 + $0x2e8] sm:$0xff]  ;;  %v3665_v35 = vld [vmem:[#allocation8 + $0x2b0] sm:$0xff] }
 0x242   : > { %v4786_v10 = vadd.f32 %v1480_v9, %v1256_v39  ;;  %2431 = vmatprep.mubr.f32.mxu1 %v3658_v42  ;;  %v4790_v26 = vadd.f32 %v2602_v53, %v2586_v34  ;;  %v3666_v42 = vld [vmem:[#allocation8 + $0x2f8] sm:$0xff]  ;;  %v2588_v34 = vmul.f32 %v4672_v32, %v4672_v32 }
 0x243   : > { %v1482_v14 = vpop.f32.mrf.mxu1  ;;  %v1260_v50 = vpop.f32.mrf.mxu0  ;;  %2207 = vmatmul.mubr.f32.gmra.mxu0 %v3659_v29  ;;  %v3667_v29 = vld [vmem:[#allocation8 + $0x2e0] sm:$0xff] }
 0x244   : > { %6053 = vst [vmem:[#allocation24_spill] sm:$0xff] %v4786_v10  ;;  %2211 = vmatprep.mubr.f32.mxu0 %v3660_v51  ;;  %v2603_v40 = vmul.f32 %v4786_v10, %v4786_v10  ;;  %v1261_v2 = vadd.f32 %v1260_v50, %v4566_v7  ;;  %v2589_v51 = vmul.f32 %v4679_v56, %v4679_v56 }
 0x245   : > { %v1485_v20 = vpop.f32.mrf.mxu1  ;;  %2432 = vmatmul.mubr.f32.gmra.mxu1 %v3661_v18  ;;  %v1262_v54 = vpop.f32.mrf.mxu0 }
 0x246   : > { %2436 = vmatprep.mubr.f32.mxu1 %v3662_v48  ;;  %v4797_v3 = vadd.f32 %v2603_v40, %v2587_v27  ;;  %v4799_v57 = vadd.f32 %v1485_v20, %v1261_v2  ;;  %v3669_v27 = vld [vmem:[#allocation8 + $0x2f0] sm:$0xff]  ;;  %v3670_v48 = vld [vmem:[#allocation8 + $0x338] sm:$0xff] }
 0x247   : > { %v1487_v45 = vpop.f32.mrf.mxu1  ;;  %v1265_v47 = vpop.f32.mrf.mxu0  ;;  %2212 = vmatmul.mubr.f32.gmra.mxu0 %v3663_v19 }
 0x248   : > { %6054 = vst [vmem:[#allocation25_spill] sm:$0xff] %v4799_v57  ;;  %v1266_v39 = vadd.f32 %v1265_v47, %v4572_v24  ;;  %2216 = vmatprep.mubr.f32.mxu0 %v3664_v0  ;;  %v2604_v7 = vmul.f32 %v4799_v57, %v4799_v57  ;;  %v3668_v24 = vld [vmem:[#allocation8 + $0x328] sm:$0xff] }
 0x249   : > { %v1490_v9 = vpop.f32.mrf.mxu1  ;;  %2437 = vmatmul.mubr.f32.gmra.mxu1 %v3665_v35  ;;  %v1267_v1 = vpop.f32.mrf.mxu0  ;;  %v3672_v35 = vld [vmem:[#allocation8 + $0x368] sm:$0xff] }
 0x24a   : > { %v4804_v53 = vadd.f32 %v1490_v9, %v1266_v39  ;;  %2441 = vmatprep.mubr.f32.mxu1 %v3666_v42  ;;  %v4810_v20 = vadd.f32 %v2604_v7, %v2588_v34  ;;  %v3671_v39 = vld [vmem:[#allocation8 + $0x320] sm:$0xff]  ;;  %v3673_v7 = vld [vmem:[#allocation8 + $0x330] sm:$0xff] }
 0x24b   : > { %v1492_v14 = vpop.f32.mrf.mxu1  ;;  %v1270_v50 = vpop.f32.mrf.mxu0  ;;  %2217 = vmatmul.mubr.f32.gmra.mxu0 %v3667_v29 }
 0x24c   : > { %6055 = vst [vmem:[#allocation26_spill] sm:$0xff] %v4804_v53  ;;  %2221 = vmatprep.mubr.f32.mxu0 %v3668_v24  ;;  %v2605_v18 = vmul.f32 %v4804_v53, %v4804_v53  ;;  %v1271_v2 = vadd.f32 %v1270_v50, %v4578_v43  ;;  %v2590_v43 = vmul.f32 %v4686_v13, %v4686_v13  ;;  %v3674_v14 = vld [vmem:[#allocation8 + $0x378] sm:$0xff] }
 0x24d   : > { %v1495_v54 = vpop.f32.mrf.mxu1  ;;  %2442 = vmatmul.mubr.f32.gmra.mxu1 %v3669_v27  ;;  %v1272_v40 = vpop.f32.mrf.mxu0  ;;  %v2591_v27 = vmul.f32 %v4693_v36, %v4693_v36 }
 0x24e   : > { %2446 = vmatprep.mubr.f32.mxu1 %v3670_v48  ;;  %v4815_v45 = vadd.f32 %v2605_v18, %v2589_v51  ;;  %v4817_v0 = vadd.f32 %v1495_v54, %v1271_v2  ;;  %v3675_v51 = vld [vmem:[#allocation8 + $0x360] sm:$0xff]  ;;  %v3676_v54 = vld [vmem:[#allocation8 + $0x3a8] sm:$0xff]  ;;  %v3677_v48 = vld [vmem:[#allocation8 + $0x370] sm:$0xff] }
 0x24f   : > { %v1497_v47 = vpop.f32.mrf.mxu1  ;;  %v1275_v19 = vpop.f32.mrf.mxu0  ;;  %2222 = vmatmul.mubr.f32.gmra.mxu0 %v3671_v39  ;;  %v3678_v39 = vld [vmem:[#allocation8 + $0x3b8] sm:$0xff] }
 0x250   : > { %6056 = vst [vmem:[#allocation27_spill] sm:$0xff] %v4817_v0  ;;  %v1276_v9 = vadd.f32 %v1275_v19, %v4584_v60  ;;  %2226 = vmatprep.mubr.f32.mxu0 %v3672_v35  ;;  %v2606_v34 = vmul.f32 %v4817_v0, %v4817_v0 }
 0x251   : > { %v1500_v1 = vpop.f32.mrf.mxu1  ;;  %2447 = vmatmul.mubr.f32.gmra.mxu1 %v3673_v7  ;;  %v1277_v42 = vpop.f32.mrf.mxu0  ;;  %v2592_v7 = vmul.f32 %v4700_v59, %v4700_v59 }
 0x252   : > { %2451 = vmatprep.mubr.f32.mxu1 %v3674_v14  ;;  %v4824_v50 = vadd.f32 %v1500_v1, %v1276_v9  ;;  %v4826_v60 = vadd.f32 %v2606_v34, %v2590_v43  ;;  %v3679_v1 = vld [vmem:[#allocation8 + $0x3a0] sm:$0xff]  ;;  %v3680_v34 = vld [vmem:[#allocation8 + $0x3e8] sm:$0xff] }
 0x253   : > { %v1502_v29 = vpop.f32.mrf.mxu1  ;;  %v1280_v24 = vpop.f32.mrf.mxu0  ;;  %2227 = vmatmul.mubr.f32.gmra.mxu0 %v3675_v51 }
 0x254   : > { %6057 = vst [vmem:[#allocation28_spill] sm:$0xff] %v4824_v50  ;;  %v1281_v18 = vadd.f32 %v1280_v24, %v4590_v17  ;;  %2231 = vmatprep.mubr.f32.mxu0 %v3676_v54  ;;  %v2607_v40 = vmul.f32 %v4824_v50, %v4824_v50  ;;  %v3681_v29 = vld [vmem:[#allocation8 + $0x3b0] sm:$0xff]  ;;  %v3682_v54 = vld [vmem:[#allocation8 + $0x3f8] sm:$0xff] }
 0x255   : > { %v1505_v2 = vpop.f32.mrf.mxu1  ;;  %2452 = vmatmul.mubr.f32.gmra.mxu1 %v3677_v48  ;;  %v1282_v47 = vpop.f32.mrf.mxu0  ;;  %v2593_v48 = vmul.f32 %v4707_v22, %v4707_v22 }
 0x256   : > { %v4833_v19 = vadd.f32 %v1505_v2, %v1281_v18  ;;  %2456 = vmatprep.mubr.f32.mxu1 %v3678_v39  ;;  %v4835_v9 = vadd.f32 %v2607_v40, %v2591_v27  ;;  %v3683_v2 = vld [vmem:[#allocation8 + $0x3e0] sm:$0xff]  ;;  %v3684_v39 = vld [vmem:[#allocation8 + $0x428] sm:$0xff] }
 0x257   : > { %v1507_v35 = vpop.f32.mrf.mxu1  ;;  %v1285_v17 = vpop.f32.mrf.mxu0  ;;  %2232 = vmatmul.mubr.f32.gmra.mxu0 %v3679_v1 }
 0x258   : > { %6058 = vst [vmem:[#allocation29_spill] sm:$0xff] %v4833_v19  ;;  %v2608_v42 = vmul.f32 %v4833_v19, %v4833_v19  ;;  %v1286_v43 = vadd.f32 %v1285_v17, %v4596_v37  ;;  %2236 = vmatprep.mubr.f32.mxu0 %v3680_v34  ;;  %v3685_v17 = vld [vmem:[#allocation8 + $0x3f0] sm:$0xff] }
 0x259   : > { %v1510_v14 = vpop.f32.mrf.mxu1  ;;  %2457 = vmatmul.mubr.f32.gmra.mxu1 %v3681_v29  ;;  %v1287_v24 = vpop.f32.mrf.mxu0  ;;  %v3687_v29 = vld [vmem:[#allocation8 + $0x420] sm:$0xff] }
 0x25a   : > { %v4842_v51 = vadd.f32 %v2608_v42, %v2592_v7  ;;  %v4844_v18 = vadd.f32 %v1510_v14, %v1286_v43  ;;  %2461 = vmatprep.mubr.f32.mxu1 %v3682_v54  ;;  %v3686_v43 = vld [vmem:[#allocation8 + $0x438] sm:$0xff]  ;;  %v2594_v24 = vmul.f32 %v4714_v44, %v4714_v44  ;;  %v3688_v54 = vld [vmem:[#allocation8 + $0x468] sm:$0xff] }
 0x25b   : > { %v1512_v27 = vpop.f32.mrf.mxu1  ;;  %v1290_v40 = vpop.f32.mrf.mxu0  ;;  %2237 = vmatmul.mubr.f32.gmra.mxu0 %v3683_v2 }
 0x25c   : > { %6059 = vst [vmem:[#allocation30_spill] sm:$0xff] %v4844_v18  ;;  %v2609_v37 = vmul.f32 %v4844_v18, %v4844_v18  ;;  %v1291_v47 = vadd.f32 %v1290_v40, %v4602_v58  ;;  %2241 = vmatprep.mubr.f32.mxu0 %v3684_v39  ;;  %v3689_v40 = vld [vmem:[#allocation8 + $0x430] sm:$0xff] }
 0x25d   : > { %v1515_v35 = vpop.f32.mrf.mxu1  ;;  %2462 = vmatmul.mubr.f32.gmra.mxu1 %v3685_v17  ;;  %v1292_v1 = vpop.f32.mrf.mxu0  ;;  %v3691_v17 = vld [vmem:[#allocation8 + $0x460] sm:$0xff] }
 0x25e   : > { %v4851_v7 = vadd.f32 %v2609_v37, %v2593_v48  ;;  %v4853_v42 = vadd.f32 %v1515_v35, %v1291_v47  ;;  %2466 = vmatprep.mubr.f32.mxu1 %v3686_v43  ;;  %v3690_v47 = vld [vmem:[#allocation8 + $0x478] sm:$0xff]  ;;  %v3692_v1 = vld [vmem:[#allocation8 + $0x4a8] sm:$0xff] }
 0x25f   : > { %v1517_v34 = vpop.f32.mrf.mxu1  ;;  %v1713_v14 = vpop.f32.mrf.mxu0  ;;  %2242 = vmatmul.mubr.f32.gmra.mxu0 %v3687_v29 }
 0x260   : > { %6060 = vst [vmem:[#allocation31_spill] sm:$0xff] %v4853_v42  ;;  %v2610_v58 = vmul.f32 %v4853_v42, %v4853_v42  ;;  %2246 = vmatprep.mubr.f32.mxu0 %v3688_v54  ;;  %v3693_v34 = vld [vmem:[#allocation8 + $0x470] sm:$0xff] }
 0x261   : > { %v1938_v27 = vpop.f32.mrf.mxu1  ;;  %2467 = vmatmul.mubr.f32.gmra.mxu1 %v3689_v40  ;;  %v1715_v2 = vpop.f32.mrf.mxu0  ;;  %v3694_v40 = vld [vmem:[#allocation8 + $0x4b8] sm:$0xff] }
 0x262   : > { %v4859_v48 = vadd.f32 %v2610_v58, %v2594_v24  ;;  %v4861_v37 = vadd.f32 %v1938_v27, %v1713_v14  ;;  %2471 = vmatprep.mubr.f32.mxu1 %v3690_v47  ;;  %v3695_v14 = vld [vmem:[#allocation8 + $0x4a0] sm:$0xff]  ;;  %v3696_v27 = vld [vmem:[#allocation8 + $0x4e8] sm:$0xff]  ;;  %v3697_v47 = vld [vmem:[#allocation8 + $0x4b0] sm:$0xff] }
 0x263   : > { %v1940_v39 = vpop.f32.mrf.mxu1  ;;  %v1718_v35 = vpop.f32.mrf.mxu0  ;;  %2247 = vmatmul.mubr.f32.gmra.mxu0 %v3691_v17 }
 0x264   : > { %2251 = vmatprep.mubr.f32.mxu0 %v3692_v1  ;;  %v3698_v1 = vld [vmem:[#allocation8 + $0x4f8] sm:$0xff] }
 0x265   : > { %v1943_v43 = vpop.f32.mrf.mxu1  ;;  %2472 = vmatmul.mubr.f32.gmra.mxu1 %v3693_v34  ;;  %v1720_v29 = vpop.f32.mrf.mxu0 }
 0x266   : > { %v4863_v54 = vadd.f32 %v1943_v43, %v1718_v35  ;;  %2476 = vmatprep.mubr.f32.mxu1 %v3694_v40  ;;  %v3699_v35 = vld [vmem:[#allocation8 + $0x4e0] sm:$0xff]  ;;  %v3700_v43 = vld [vmem:[#allocation8 + $0x528] sm:$0xff] }
 0x267   : > { %v1945_v24 = vpop.f32.mrf.mxu1  ;;  %v1723_v58 = vpop.f32.mrf.mxu0  ;;  %2252 = vmatmul.mubr.f32.gmra.mxu0 %v3695_v14 }
 0x268   : > { %2256 = vmatprep.mubr.f32.mxu0 %v3696_v27  ;;  %v3701_v24 = vld [vmem:[#allocation8 + $0x4f0] sm:$0xff]  ;;  %v3702_v27 = vld [vmem:[#allocation8 + $0x538] sm:$0xff] }
 0x269   : > { %v1948_v2 = vpop.f32.mrf.mxu1  ;;  %2477 = vmatmul.mubr.f32.gmra.mxu1 %v3697_v47  ;;  %v1725_v39 = vpop.f32.mrf.mxu0 }
 0x26a   : > { %v4865_v17 = vadd.f32 %v1948_v2, %v1723_v58  ;;  %2481 = vmatprep.mubr.f32.mxu1 %v3698_v1  ;;  %v3703_v58 = vld [vmem:[#allocation8 + $0x520] sm:$0xff]  ;;  %v3704_v2 = vld [vmem:[#allocation8 + $0x568] sm:$0xff] }
 0x26b   : > { %v1950_v34 = vpop.f32.mrf.mxu1  ;;  %v1728_v29 = vpop.f32.mrf.mxu0  ;;  %2257 = vmatmul.mubr.f32.gmra.mxu0 %v3699_v35 }
 0x26c   : > { %2261 = vmatprep.mubr.f32.mxu0 %v3700_v43  ;;  %v3705_v34 = vld [vmem:[#allocation8 + $0x530] sm:$0xff]  ;;  %v3706_v43 = vld [vmem:[#allocation8 + $0x578] sm:$0xff] }
 0x26d   : > { %v1953_v40 = vpop.f32.mrf.mxu1  ;;  %2482 = vmatmul.mubr.f32.gmra.mxu1 %v3701_v24  ;;  %v1730_v14 = vpop.f32.mrf.mxu0 }
 0x26e   : > { %v4867_v42 = vadd.f32 %v1953_v40, %v1728_v29  ;;  %2486 = vmatprep.mubr.f32.mxu1 %v3702_v27  ;;  %v3707_v29 = vld [vmem:[#allocation8 + $0x560] sm:$0xff]  ;;  %v3708_v40 = vld [vmem:[#allocation8 + $0x5a8] sm:$0xff] }
 0x26f   : > { %v1955_v47 = vpop.f32.mrf.mxu1  ;;  %v1733_v39 = vpop.f32.mrf.mxu0  ;;  %2262 = vmatmul.mubr.f32.gmra.mxu0 %v3703_v58 }
 0x270   : > { %2266 = vmatprep.mubr.f32.mxu0 %v3704_v2  ;;  %v3709_v47 = vld [vmem:[#allocation8 + $0x570] sm:$0xff]  ;;  %v3710_v2 = vld [vmem:[#allocation8 + $0x5b8] sm:$0xff] }
 0x271   : > { %v1958_v1 = vpop.f32.mrf.mxu1  ;;  %2487 = vmatmul.mubr.f32.gmra.mxu1 %v3705_v34  ;;  %v1735_v35 = vpop.f32.mrf.mxu0 }
 0x272   : > { %v4869_v18 = vadd.f32 %v1958_v1, %v1733_v39  ;;  %2491 = vmatprep.mubr.f32.mxu1 %v3706_v43  ;;  %v3711_v39 = vld [vmem:[#allocation8 + $0x5a0] sm:$0xff]  ;;  %v3712_v1 = vld [vmem:[#allocation8 + $0x5e8] sm:$0xff] }
 0x273   : > { %v1960_v24 = vpop.f32.mrf.mxu1  ;;  %v1738_v14 = vpop.f32.mrf.mxu0  ;;  %2267 = vmatmul.mubr.f32.gmra.mxu0 %v3707_v29 }
 0x274   : > { %2271 = vmatprep.mubr.f32.mxu0 %v3708_v40  ;;  %v3713_v24 = vld [vmem:[#allocation8 + $0x5b0] sm:$0xff]  ;;  %v3714_v40 = vld [vmem:[#allocation8 + $0x5f8] sm:$0xff] }
 0x275   : > { %v1963_v27 = vpop.f32.mrf.mxu1  ;;  %2492 = vmatmul.mubr.f32.gmra.mxu1 %v3709_v47  ;;  %v1740_v58 = vpop.f32.mrf.mxu0 }
 0x276   : > { %v4871_v19 = vadd.f32 %v1963_v27, %v1738_v14  ;;  %2496 = vmatprep.mubr.f32.mxu1 %v3710_v2  ;;  %v3715_v14 = vld [vmem:[#allocation8 + $0x5e0] sm:$0xff]  ;;  %v3716_v27 = vld [vmem:[#allocation8 + $0x628] sm:$0xff] }
 0x277   : > { %v1965_v34 = vpop.f32.mrf.mxu1  ;;  %v1743_v35 = vpop.f32.mrf.mxu0  ;;  %2272 = vmatmul.mubr.f32.gmra.mxu0 %v3711_v39 }
 0x278   : > { %2276 = vmatprep.mubr.f32.mxu0 %v3712_v1  ;;  %v3717_v34 = vld [vmem:[#allocation8 + $0x5f0] sm:$0xff]  ;;  %v3718_v1 = vld [vmem:[#allocation8 + $0x638] sm:$0xff] }
 0x279   : > { %v1968_v43 = vpop.f32.mrf.mxu1  ;;  %2497 = vmatmul.mubr.f32.gmra.mxu1 %v3713_v24  ;;  %v1745_v29 = vpop.f32.mrf.mxu0 }
 0x27a   : > { %v4873_v50 = vadd.f32 %v1968_v43, %v1743_v35  ;;  %2501 = vmatprep.mubr.f32.mxu1 %v3714_v40  ;;  %v3719_v35 = vld [vmem:[#allocation8 + $0x620] sm:$0xff]  ;;  %v3720_v43 = vld [vmem:[#allocation8 + $0x668] sm:$0xff] }
 0x27b   : > { %v1970_v47 = vpop.f32.mrf.mxu1  ;;  %v1748_v58 = vpop.f32.mrf.mxu0  ;;  %2277 = vmatmul.mubr.f32.gmra.mxu0 %v3715_v14 }
 0x27c   : > { %2281 = vmatprep.mubr.f32.mxu0 %v3716_v27  ;;  %v3721_v47 = vld [vmem:[#allocation8 + $0x630] sm:$0xff]  ;;  %v3722_v27 = vld [vmem:[#allocation8 + $0x678] sm:$0xff] }
 0x27d   : > { %v1973_v2 = vpop.f32.mrf.mxu1  ;;  %2502 = vmatmul.mubr.f32.gmra.mxu1 %v3717_v34  ;;  %v1750_v39 = vpop.f32.mrf.mxu0 }
 0x27e   : > { %v4875_v0 = vadd.f32 %v1973_v2, %v1748_v58  ;;  %2506 = vmatprep.mubr.f32.mxu1 %v3718_v1  ;;  %v3723_v58 = vld [vmem:[#allocation8 + $0x660] sm:$0xff]  ;;  %v3724_v2 = vld [vmem:[#allocation8 + $0x6a8] sm:$0xff] }
 0x27f   : > { %v1975_v24 = vpop.f32.mrf.mxu1  ;;  %v1753_v29 = vpop.f32.mrf.mxu0  ;;  %2282 = vmatmul.mubr.f32.gmra.mxu0 %v3719_v35 }
 0x280   : > { %2286 = vmatprep.mubr.f32.mxu0 %v3720_v43  ;;  %v3725_v24 = vld [vmem:[#allocation8 + $0x670] sm:$0xff]  ;;  %v3726_v43 = vld [vmem:[#allocation8 + $0x6b8] sm:$0xff] }
 0x281   : > { %v1978_v40 = vpop.f32.mrf.mxu1  ;;  %2507 = vmatmul.mubr.f32.gmra.mxu1 %v3721_v47  ;;  %v1755_v14 = vpop.f32.mrf.mxu0 }
 0x282   : > { %v4877_v53 = vadd.f32 %v1978_v40, %v1753_v29  ;;  %2511 = vmatprep.mubr.f32.mxu1 %v3722_v27  ;;  %v3727_v29 = vld [vmem:[#allocation8 + $0x6a0] sm:$0xff]  ;;  %v3728_v40 = vld [vmem:[#allocation8 + $0x6e8] sm:$0xff] }
 0x283   : > { %v1980_v34 = vpop.f32.mrf.mxu1  ;;  %v1758_v39 = vpop.f32.mrf.mxu0  ;;  %2287 = vmatmul.mubr.f32.gmra.mxu0 %v3723_v58 }
 0x284   : > { %2291 = vmatprep.mubr.f32.mxu0 %v3724_v2  ;;  %v3729_v34 = vld [vmem:[#allocation8 + $0x6b0] sm:$0xff]  ;;  %v3730_v2 = vld [vmem:[#allocation8 + $0x6f8] sm:$0xff] }
 0x285   : > { %v1983_v1 = vpop.f32.mrf.mxu1  ;;  %2512 = vmatmul.mubr.f32.gmra.mxu1 %v3725_v24  ;;  %v1760_v35 = vpop.f32.mrf.mxu0 }
 0x286   : > { %v4879_v57 = vadd.f32 %v1983_v1, %v1758_v39  ;;  %2516 = vmatprep.mubr.f32.mxu1 %v3726_v43  ;;  %v3731_v39 = vld [vmem:[#allocation8 + $0x6e0] sm:$0xff]  ;;  %v3732_v1 = vld [vmem:[#allocation8 + $0x728] sm:$0xff] }
 0x287   : > { %v1985_v47 = vpop.f32.mrf.mxu1  ;;  %v1763_v14 = vpop.f32.mrf.mxu0  ;;  %2292 = vmatmul.mubr.f32.gmra.mxu0 %v3727_v29 }
 0x288   : > { %2296 = vmatprep.mubr.f32.mxu0 %v3728_v40  ;;  %v3733_v47 = vld [vmem:[#allocation8 + $0x6f0] sm:$0xff]  ;;  %v3734_v40 = vld [vmem:[#allocation8 + $0x738] sm:$0xff] }
 0x289   : > { %v1988_v27 = vpop.f32.mrf.mxu1  ;;  %2517 = vmatmul.mubr.f32.gmra.mxu1 %v3729_v34  ;;  %v1765_v58 = vpop.f32.mrf.mxu0 }
 0x28a   : > { %v4881_v10 = vadd.f32 %v1988_v27, %v1763_v14  ;;  %2521 = vmatprep.mubr.f32.mxu1 %v3730_v2  ;;  %v3735_v14 = vld [vmem:[#allocation8 + $0x720] sm:$0xff]  ;;  %v3736_v27 = vld [vmem:[#allocation8 + $0x768] sm:$0xff] }
 0x28b   : > { %v1990_v24 = vpop.f32.mrf.mxu1  ;;  %v1768_v35 = vpop.f32.mrf.mxu0  ;;  %2297 = vmatmul.mubr.f32.gmra.mxu0 %v3731_v39 }
 0x28c   : > { %2301 = vmatprep.mubr.f32.mxu0 %v3732_v1  ;;  %v3737_v24 = vld [vmem:[#allocation8 + $0x730] sm:$0xff]  ;;  %v3738_v1 = vld [vmem:[#allocation8 + $0x778] sm:$0xff] }
 0x28d   : > { %v1993_v43 = vpop.f32.mrf.mxu1  ;;  %2522 = vmatmul.mubr.f32.gmra.mxu1 %v3733_v47  ;;  %v1770_v29 = vpop.f32.mrf.mxu0 }
 0x28e   : > { %v4883_v55 = vadd.f32 %v1993_v43, %v1768_v35  ;;  %2526 = vmatprep.mubr.f32.mxu1 %v3734_v40  ;;  %v3739_v35 = vld [vmem:[#allocation8 + $0x760] sm:$0xff]  ;;  %v3740_v43 = vld [vmem:[#allocation8 + $0x7a8] sm:$0xff] }
 0x28f   : > { %v1995_v34 = vpop.f32.mrf.mxu1  ;;  %v1773_v58 = vpop.f32.mrf.mxu0  ;;  %2302 = vmatmul.mubr.f32.gmra.mxu0 %v3735_v14 }
 0x290   : > { %2306 = vmatprep.mubr.f32.mxu0 %v3736_v27  ;;  %v3741_v34 = vld [vmem:[#allocation8 + $0x770] sm:$0xff]  ;;  %v3742_v27 = vld [vmem:[#allocation8 + $0x7b8] sm:$0xff] }
 0x291   : > { %v1998_v2 = vpop.f32.mrf.mxu1  ;;  %2527 = vmatmul.mubr.f32.gmra.mxu1 %v3737_v24  ;;  %v1775_v39 = vpop.f32.mrf.mxu0 }
 0x292   : > { %v4885_v15 = vadd.f32 %v1998_v2, %v1773_v58  ;;  %2531 = vmatprep.mubr.f32.mxu1 %v3738_v1  ;;  %v3743_v58 = vld [vmem:[#allocation8 + $0x7a0] sm:$0xff]  ;;  %v3744_v2 = vld [vmem:[#allocation8 + $0x7e8] sm:$0xff] }
 0x293   : > { %v2000_v47 = vpop.f32.mrf.mxu1  ;;  %v1778_v29 = vpop.f32.mrf.mxu0  ;;  %2307 = vmatmul.mubr.f32.gmra.mxu0 %v3739_v35 }
 0x294   : > { %2311 = vmatprep.mubr.f32.mxu0 %v3740_v43  ;;  %v3745_v47 = vld [vmem:[#allocation8 + $0x7b0] sm:$0xff]  ;;  %v3746_v43 = vld [vmem:[#allocation8 + $0x7f8] sm:$0xff] }
 0x295   : > { %v2003_v40 = vpop.f32.mrf.mxu1  ;;  %2532 = vmatmul.mubr.f32.gmra.mxu1 %v3741_v34  ;;  %v1780_v14 = vpop.f32.mrf.mxu0 }
 0x296   : > { %v4887_v16 = vadd.f32 %v2003_v40, %v1778_v29  ;;  %2536 = vmatprep.mubr.f32.mxu1 %v3742_v27  ;;  %v3747_v29 = vld [vmem:[#allocation8 + $0x7e0] sm:$0xff]  ;;  %v3748_v27 = vld [vmem:[#allocation8 + $0x7f0] sm:$0xff] }
 0x297   : > { %v2005_v24 = vpop.f32.mrf.mxu1  ;;  %v1783_v39 = vpop.f32.mrf.mxu0  ;;  %2312 = vmatmul.mubr.f32.gmra.mxu0 %v3743_v58 }
 0x298   : > { %2316 = vmatprep.mubr.f32.mxu0 %v3744_v2 }
 0x299   : > { %v2008_v1 = vpop.f32.mrf.mxu1  ;;  %2537 = vmatmul.mubr.f32.gmra.mxu1 %v3745_v47  ;;  %v1785_v35 = vpop.f32.mrf.mxu0 }
 0x29a   : > { %v4889_v5 = vadd.f32 %v2008_v1, %v1783_v39  ;;  %2541 = vmatprep.mubr.f32.mxu1 %v3746_v43 }
 0x29b   : > { %v2010_v34 = vpop.f32.mrf.mxu1  ;;  %v1788_v14 = vpop.f32.mrf.mxu0  ;;  %2317 = vmatmul.mubr.f32.gmra.mxu0 %v3747_v29 }
 0x29d   : > { %v2013_v40 = vpop.f32.mrf.mxu1  ;;  %2542 = vmatmul.mubr.f32.gmra.mxu1 %v3748_v27  ;;  %v1790_v24 = vpop.f32.mrf.mxu0 }
 0x29e   : > { %v4891_v6 = vadd.f32 %v2013_v40, %v1788_v14 }
 0x29f   : > { %v2015_v58 = vpop.f32.mrf.mxu1  ;;  %v1793_v2 = vpop.f32.mrf.mxu0 }
 0x2a0   : > { %6061 = vst [vmem:[#allocation32_spill] sm:$0xff] %v4891_v6 }
 0x2a1   : > { %v2018_v38 = vpop.f32.mrf.mxu1  ;;  %v1795_v23 = vpop.f32.mrf.mxu0 }
 0x2a2   : > { %v4893_v47 = vadd.f32 %v2018_v38, %v1793_v2 }
 0x2a3   : > { %v2020_v39 = vpop.f32.mrf.mxu1  ;;  %v1798_v1 = vpop.f32.mrf.mxu0 }
 0x2a4   : > { %6062 = vst [vmem:[#allocation33_spill] sm:$0xff] %v4893_v47 }
 0x2a5   : > { %v2023_v35 = vpop.f32.mrf.mxu1  ;;  %v1800_v43 = vpop.f32.mrf.mxu0 }
 0x2a6   : > { %v4895_v34 = vadd.f32 %v2023_v35, %v1798_v1 }
 0x2a7   : > { %v2025_v62 = vpop.f32.mrf.mxu1  ;;  %v1803_v29 = vpop.f32.mrf.mxu0 }
 0x2a8   : > { %6063 = vst [vmem:[#allocation34_spill] sm:$0xff] %v4895_v34 }
 0x2a9   : > { %v2028_v44 = vpop.f32.mrf.mxu1  ;;  %v1805_v22 = vpop.f32.mrf.mxu0 }
 0x2aa   : > { %v4897_v27 = vadd.f32 %v2028_v44, %v1803_v29 }
 0x2ab   : > { %v2030_v14 = vpop.f32.mrf.mxu1  ;;  %v1808_v40 = vpop.f32.mrf.mxu0 }
 0x2ac   : > { %6064 = vst [vmem:[#allocation35_spill] sm:$0xff] %v4897_v27 }
 0x2ad   : > { %v2033_v24 = vpop.f32.mrf.mxu1  ;;  %v1810_v58 = vpop.f32.mrf.mxu0 }
 0x2ae   : > { %v4899_v6 = vadd.f32 %v2033_v24, %v1808_v40 }
 0x2af   : > { %v2035_v23 = vpop.f32.mrf.mxu1  ;;  %v1813_v38 = vpop.f32.mrf.mxu0 }
 0x2b0   : > { %6065 = vst [vmem:[#allocation36_spill] sm:$0xff] %v4899_v6 }
 0x2b1   : > { %v2038_v2 = vpop.f32.mrf.mxu1  ;;  %v1815_v39 = vpop.f32.mrf.mxu0 }
 0x2b2   : > { %v4901_v47 = vadd.f32 %v2038_v2, %v1813_v38 }
 0x2b3   : > { %v2040_v1 = vpop.f32.mrf.mxu1  ;;  %v1818_v35 = vpop.f32.mrf.mxu0 }
 0x2b4   : > { %6066 = vst [vmem:[#allocation37_spill] sm:$0xff] %v4901_v47 }
 0x2b5   : > { %v2043_v62 = vpop.f32.mrf.mxu1  ;;  %v1820_v43 = vpop.f32.mrf.mxu0 }
 0x2b6   : > { %v4903_v34 = vadd.f32 %v2043_v62, %v1818_v35 }
 0x2b7   : > { %v2045_v22 = vpop.f32.mrf.mxu1  ;;  %v1823_v44 = vpop.f32.mrf.mxu0 }
 0x2b8   : > { %6067 = vst [vmem:[#allocation38_spill] sm:$0xff] %v4903_v34 }
 0x2b9   : > { %v2048_v29 = vpop.f32.mrf.mxu1  ;;  %v1825_v14 = vpop.f32.mrf.mxu0 }
 0x2ba   : > { %v4905_v27 = vadd.f32 %v2048_v29, %v1823_v44 }
 0x2bb   : > { %v2050_v40 = vpop.f32.mrf.mxu1  ;;  %v1828_v24 = vpop.f32.mrf.mxu0 }
 0x2bc   : > { %6068 = vst [vmem:[#allocation39_spill] sm:$0xff] %v4905_v27 }
 0x2bd   : > { %v2053_v58 = vpop.f32.mrf.mxu1  ;;  %v1830_v23 = vpop.f32.mrf.mxu0 }
 0x2be   : > { %v4907_v6 = vadd.f32 %v2053_v58, %v1828_v24 }
 0x2bf   : > { %v2055_v38 = vpop.f32.mrf.mxu1  ;;  %v1833_v2 = vpop.f32.mrf.mxu0 }
 0x2c0   : > { %6069 = vst [vmem:[#allocation40_spill] sm:$0xff] %v4907_v6 }
 0x2c1   : > { %v2058_v39 = vpop.f32.mrf.mxu1  ;;  %v1835_v1 = vpop.f32.mrf.mxu0 }
 0x2c2   : > { %v4909_v47 = vadd.f32 %v2058_v39, %v1833_v2 }
 0x2c3   : > { %v2060_v35 = vpop.f32.mrf.mxu1  ;;  %v1838_v62 = vpop.f32.mrf.mxu0 }
 0x2c4   : > { %6070 = vst [vmem:[#allocation41_spill] sm:$0xff] %v4909_v47 }
 0x2c5   : > { %v2063_v43 = vpop.f32.mrf.mxu1  ;;  %v1840_v22 = vpop.f32.mrf.mxu0 }
 0x2c6   : > { %v4911_v34 = vadd.f32 %v2063_v43, %v1838_v62 }
 0x2c7   : > { %v2065_v44 = vpop.f32.mrf.mxu1  ;;  %v1843_v29 = vpop.f32.mrf.mxu0 }
 0x2c8   : > { %6071 = vst [vmem:[#allocation42_spill] sm:$0xff] %v4911_v34 }
 0x2c9   : > { %v2068_v14 = vpop.f32.mrf.mxu1  ;;  %v1845_v40 = vpop.f32.mrf.mxu0 }
 0x2ca   : > { %v4913_v27 = vadd.f32 %v2068_v14, %v1843_v29 }
 0x2cb   : > { %v2070_v24 = vpop.f32.mrf.mxu1  ;;  %v1848_v58 = vpop.f32.mrf.mxu0 }
 0x2cc   : > { %6072 = vst [vmem:[#allocation43_spill] sm:$0xff] %v4913_v27 }
 0x2cd   : > { %v2073_v23 = vpop.f32.mrf.mxu1  ;;  %v1850_v38 = vpop.f32.mrf.mxu0 }
 0x2ce   : > { %v4915_v6 = vadd.f32 %v2073_v23, %v1848_v58 }
 0x2cf   : > { %v2075_v2 = vpop.f32.mrf.mxu1  ;;  %v1853_v39 = vpop.f32.mrf.mxu0 }
 0x2d0   : > { %6073 = vst [vmem:[#allocation44_spill] sm:$0xff] %v4915_v6 }
 0x2d1   : > { %v2078_v1 = vpop.f32.mrf.mxu1  ;;  %v1855_v35 = vpop.f32.mrf.mxu0 }
 0x2d2   : > { %v4917_v47 = vadd.f32 %v2078_v1, %v1853_v39 }
 0x2d3   : > { %v2080_v62 = vpop.f32.mrf.mxu1  ;;  %v1858_v43 = vpop.f32.mrf.mxu0 }
 0x2d4   : > { %6074 = vst [vmem:[#allocation45_spill] sm:$0xff] %v4917_v47 }
 0x2d5   : > { %v2083_v22 = vpop.f32.mrf.mxu1  ;;  %v1860_v44 = vpop.f32.mrf.mxu0 }
 0x2d6   : > { %v4919_v34 = vadd.f32 %v2083_v22, %v1858_v43 }
 0x2d7   : > { %v2085_v29 = vpop.f32.mrf.mxu1  ;;  %v1863_v14 = vpop.f32.mrf.mxu0 }
 0x2d8   : > { %6075 = vst [vmem:[#allocation46_spill] sm:$0xff] %v4919_v34 }
 0x2d9   : > { %v2088_v40 = vpop.f32.mrf.mxu1  ;;  %v1865_v24 = vpop.f32.mrf.mxu0 }
 0x2da   : > { %v4921_v27 = vadd.f32 %v2088_v40, %v1863_v14 }
 0x2db   : > { %v2090_v58 = vpop.f32.mrf.mxu1  ;;  %v1868_v23 = vpop.f32.mrf.mxu0 }
 0x2dc   : > { %6076 = vst [vmem:[#allocation47_spill] sm:$0xff] %v4921_v27 }
 0x2dd   : > { %v2093_v38 = vpop.f32.mrf.mxu1  ;;  %v1870_v2 = vpop.f32.mrf.mxu0 }
 0x2de   : > { %v4923_v6 = vadd.f32 %v2093_v38, %v1868_v23 }
 0x2df   : > { %v2095_v39 = vpop.f32.mrf.mxu1  ;;  %v2163_v1 = vpop.f32.mrf.mxu0 }
 0x2e0   : > { %6077 = vst [vmem:[#allocation48_spill] sm:$0xff] %v4923_v6  ;;  %v2164_v35 = vadd.f32 %v2163_v1, %v4861_v37 }
 0x2e1   : > { %v2388_v62 = vpop.f32.mrf.mxu1  ;;  %v2165_v44 = vpop.f32.mrf.mxu0 }
 0x2e2   : > { %v4926_v43 = vadd.f32 %v2388_v62, %v2164_v35 }
 0x2e3   : > { %v2390_v22 = vpop.f32.mrf.mxu1  ;;  %v2168_v29 = vpop.f32.mrf.mxu0 }
 0x2e4   : > { %v4930_v14 = vadd.f32 %v4926_v43, %v4609_v21  ;;  %v2169_v40 = vadd.f32 %v2168_v29, %v4863_v54 }
 0x2e5   : > { %v2393_v24 = vpop.f32.mrf.mxu1  ;;  %v2170_v58 = vpop.f32.mrf.mxu0 }
 0x2e6   : > { %v4933_v23 = vadd.f32 %v2393_v24, %v2169_v40 }
 0x2e7   : > { %v2395_v38 = vpop.f32.mrf.mxu1  ;;  %v2173_v2 = vpop.f32.mrf.mxu0 }
 0x2e8   : > { %v4937_v37 = vadd.f32 %v4933_v23, %v4616_v41  ;;  %v2174_v39 = vadd.f32 %v2173_v2, %v4865_v17 }
 0x2e9   : > { %v2398_v1 = vpop.f32.mrf.mxu1  ;;  %v2175_v35 = vpop.f32.mrf.mxu0 }
 0x2ea   : > { %v4940_v62 = vadd.f32 %v2398_v1, %v2174_v39  ;;  %v4955_v1 = vmax.f32 %v4725_v52, 1e-08  ;;  %v4971_v52 = vmax.f32 %v4747_v12, 1e-08 }
 0x2eb   : > { %v2400_v21 = vpop.f32.mrf.mxu1  ;;  %v2178_v44 = vpop.f32.mrf.mxu0 }
 0x2ec   : > { %v4944_v54 = vadd.f32 %v4940_v62, %v4623_v63  ;;  %v2179_v22 = vadd.f32 %v2178_v44, %v4867_v42  ;;  %v4960_v21 = vmax.f32 %v4734_v61, 1e-08  ;;  %3397 = vrsqrt.f32 %v4955_v1 }
 0x2ed   : > { %v2403_v29 = vpop.f32.mrf.mxu1  ;;  %v2180_v40 = vpop.f32.mrf.mxu0  ;;  %vm2645_vm0 = vcmp.eq.f32.partialorder %v4955_v1, inf  ;;  %vm2647_vm1 = vcmp.eq.f32.partialorder %v4955_v1, 0.0  ;;  %vm2659_vm4 = vcmp.eq.f32.partialorder %v4971_v52, inf  ;;  %vm2661_vm5 = vcmp.eq.f32.partialorder %v4971_v52, 0.0 }
 0x2ee   : > { %v4947_v24 = vadd.f32 %v2403_v29, %v2179_v22  ;;  %3399 = vrsqrt.f32 %v4960_v21  ;;  %vm2652_vm2 = vcmp.eq.f32.partialorder %v4960_v21, inf  ;;  %vm2654_vm3 = vcmp.eq.f32.partialorder %v4960_v21, 0.0 }
 0x2ef   : > { %v2405_v41 = vpop.f32.mrf.mxu1  ;;  %v2183_v58 = vpop.f32.mrf.mxu0  ;;  %3401 = vrsqrt.f32 %v4971_v52 }
 0x2f0   : > { %v4951_v17 = vadd.f32 %v4947_v24, %v4630_v25  ;;  %v2184_v38 = vadd.f32 %v2183_v58, %v4869_v18 }
 0x2f1   : > { %v2408_v2 = vpop.f32.mrf.mxu1  ;;  %v2185_v39 = vpop.f32.mrf.mxu0 }
 0x2f2   : > { %v4957_v63 = vadd.f32 %v2408_v2, %v2184_v38 }
 0x2f3   : > { %v2410_v42 = vpop.f32.mrf.mxu1  ;;  %v2188_v35 = vpop.f32.mrf.mxu0 }
 0x2f4   : > { %v4964_v44 = vadd.f32 %v4957_v63, %v4637_v46  ;;  %v2189_v25 = vadd.f32 %v2188_v35, %v4871_v19  ;;  %v4980_v19 = vmax.f32 %v4752_v30, 1e-08  ;;  %v4986_v42 = vmax.f32 %v4761_v4, 1e-08 }
 0x2f5   : > { %v2413_v22 = vpop.f32.mrf.mxu1  ;;  %v2190_v18 = vpop.f32.mrf.mxu0 }
 0x2f6   : > { %v4968_v29 = vadd.f32 %v2413_v22, %v2189_v25  ;;  %3403 = vrsqrt.f32 %v4980_v19  ;;  %v4995_v25 = vmax.f32 %v4774_v33, 1e-08  ;;  %v5000_v18 = vmax.f32 %v4779_v31, 1e-08 }
 0x2f7   : > { %v2415_v40 = vpop.f32.mrf.mxu1  ;;  %v2193_v41 = vpop.f32.mrf.mxu0  ;;  %3405 = vrsqrt.f32 %v4986_v42  ;;  %v5013_v31 = vmax.f32 %v4797_v3, 1e-08  ;;  %v5026_v3 = vmax.f32 %v4810_v20, 1e-08  ;;  %vm2666_vm6 = vcmp.eq.f32.partialorder %v4980_v19, inf }
 0x2f8   : > { %v4976_v61 = vadd.f32 %v4968_v29, %v4644_v8  ;;  %v2194_v46 = vadd.f32 %v2193_v41, %v4873_v50  ;;  %v5009_v41 = vmax.f32 %v4790_v26, 1e-08  ;;  %3407 = vrsqrt.f32 %v4995_v25 }
 0x2f9   : > { %v2418_v58 = vpop.f32.mrf.mxu1  ;;  %v2195_v38 = vpop.f32.mrf.mxu0  ;;  %3409 = vrsqrt.f32 %v5000_v18  ;;  %vm2668_vm7 = vcmp.eq.f32.partialorder %v4980_v19, 0.0  ;;  %vm2673_vm8 = vcmp.eq.f32.partialorder %v4986_v42, inf  ;;  %vm2675_vm9 = vcmp.eq.f32.partialorder %v4986_v42, 0.0 }
 0x2fa   : > { %v4982_v2 = vadd.f32 %v2418_v58, %v2194_v46  ;;  %v3398_v38 = vpop.eup %3397  ;;  %3411 = vrsqrt.f32 %v5009_v41  ;;  %vm2680_vm10 = vcmp.eq.f32.partialorder %v4995_v25, inf  ;;  %vm2682_vm11 = vcmp.eq.f32.partialorder %v4995_v25, 0.0 }
 0x2fb   : > { %v2420_v12 = vpop.f32.mrf.mxu1  ;;  %v2198_v39 = vpop.f32.mrf.mxu0  ;;  %3413 = vrsqrt.f32 %v5013_v31  ;;  %vm2687_vm12 = vcmp.eq.f32.partialorder %v5000_v18, inf  ;;  %vm2689_vm13 = vcmp.eq.f32.partialorder %v5000_v18, 0.0  ;;  %vm2694_vm14 = vcmp.eq.f32.partialorder %v5009_v41, inf }
 0x2fc   : > { %v4990_v8 = vadd.f32 %v4982_v2, %v4651_v28  ;;  %v2199_v50 = vadd.f32 %v2198_v39, %v4875_v0  ;;  %v3400_v39 = vpop.eup %3399  ;;  %3415 = vrsqrt.f32 %v5026_v3  ;;  %vm2696_vm15 = vcmp.eq.f32.partialorder %v5009_v41, 0.0 }
 0x2fd   : > { %v2423_v30 = vpop.f32.mrf.mxu1  ;;  %v2200_v35 = vpop.f32.mrf.mxu0 }
 0x2fe   : > { %v4997_v22 = vadd.f32 %v2423_v30, %v2199_v50  ;;  %v2644_v35 = vmul.f32 %v3398_v38, %v4955_v1 }
 0x2ff   : > { %v2425_v4 = vpop.f32.mrf.mxu1  ;;  %v2203_v40 = vpop.f32.mrf.mxu0 }
 0x300   : > { %v5005_v28 = vadd.f32 %v4997_v22, %v4658_v49  ;;  %v2204_v0 = vadd.f32 %v2203_v40, %v4877_v53  ;;  %v5037_v4 = vmax.f32 %v4815_v45, 1e-08  ;;  %v5050_v45 = vmax.f32 %v4826_v60, 1e-08 }
 0x301   : > { %v2428_v33 = vpop.f32.mrf.mxu1  ;;  %v2205_v46 = vpop.f32.mrf.mxu0  ;;  %v2669_v60 = vand.u32 2147483648, %v4980_v19 }
 0x302   : > { %v5015_v58 = vadd.f32 %v2428_v33, %v2204_v0  ;;  %v3402_v0 = vpop.eup %3401  ;;  %v2651_v33 = vmul.f32 %v3400_v39, %v4960_v21  ;;  %v2655_v46 = vand.u32 2147483648, %v4960_v21  ;;  %3417 = vrsqrt.f32 %v5037_v4 }
 0x303   : > { %v2430_v12 = vpop.f32.mrf.mxu1  ;;  %v2208_v49 = vpop.f32.mrf.mxu0  ;;  %3419 = vrsqrt.f32 %v5050_v45 }
 0x304   : > { %v5020_v53 = vadd.f32 %v5015_v58, %v4665_v11  ;;  %v2209_v26 = vadd.f32 %v2208_v49, %v4879_v57  ;;  %v2648_v57 = vand.u32 2147483648, %v4955_v1  ;;  %v2662_v49 = vand.u32 2147483648, %v4971_v52  ;;  %v3404_v39 = vpop.eup %3403 }
 0x305   : > { %v2433_v50 = vpop.f32.mrf.mxu1  ;;  %v2210_v30 = vpop.f32.mrf.mxu0 }
 0x306   : > { %v5031_v11 = vadd.f32 %v2433_v50, %v2209_v26  ;;  %v2646_v30 = vsel %vm2645_vm0, %v4955_v1, %v2644_v35  ;;  %v3406_v6 = vpop.eup %3405  ;;  %vm2701_vm0 = vcmp.eq.f32.partialorder %v5013_v31, inf }
 0x307   : > { %v2435_v20 = vpop.f32.mrf.mxu1  ;;  %v2213_v40 = vpop.f32.mrf.mxu0 }
 0x308   : > { %v5043_v38 = vadd.f32 %v5031_v11, %v4672_v32  ;;  %v2214_v12 = vadd.f32 %v2213_v40, %v4881_v10  ;;  %v5058_v32 = vmax.f32 %v4835_v9, 1e-08  ;;  %v2658_v20 = vmul.f32 %v3402_v0, %v4971_v52 }
 0x309   : > { %v2438_v26 = vpop.f32.mrf.mxu1  ;;  %v2215_v50 = vpop.f32.mrf.mxu0  ;;  %v5067_v40 = vmax.f32 %v4842_v51, 1e-08  ;;  %v2653_v9 = vsel %vm2652_vm2, %v4960_v21, %v2651_v33  ;;  %v5082_v51 = vsel %vm2647_vm1, %v2648_v57, %v2646_v30  ;;  %v5087_v33 = vmax.f32 %v4859_v48, 1e-08 }
 0x30a   : > { %v5060_v10 = vadd.f32 %v2438_v26, %v2214_v12  ;;  %v5073_v12 = vmax.f32 %v4851_v7, 1e-08  ;;  %3421 = vrsqrt.f32 %v5058_v32  ;;  %v5096_v1 = vsel %vm2654_vm3, %v2655_v46, %v2653_v9 }
 0x30b   : > { %v2440_v35 = vpop.f32.mrf.mxu1  ;;  %v2218_v50 = vpop.f32.mrf.mxu0  ;;  %v2660_v48 = vsel %vm2659_vm4, %v4971_v52, %v2658_v20  ;;  %v2676_v57 = vand.u32 2147483648, %v4986_v42  ;;  %3423 = vrsqrt.f32 %v5067_v40  ;;  %vm2703_vm1 = vcmp.eq.f32.partialorder %v5013_v31, 0.0 }
 0x30c   : > { %v5077_v0 = vadd.f32 %v5060_v10, %v4679_v56  ;;  %v2219_v26 = vadd.f32 %v2218_v50, %v4883_v55  ;;  %v2665_v35 = vmul.f32 %v3404_v39, %v4980_v19  ;;  %v3408_v55 = vpop.eup %3407  ;;  %v2672_v50 = vmul.f32 %v3406_v6, %v4986_v42 }
 0x30d   : > { %v2443_v7 = vpop.f32.mrf.mxu1  ;;  %v2220_v27 = vpop.f32.mrf.mxu0  ;;  %3425 = vrsqrt.f32 %v5073_v12  ;;  %vm2708_vm2 = vcmp.eq.f32.partialorder %v5026_v3, inf  ;;  %vm2710_vm3 = vcmp.eq.f32.partialorder %v5026_v3, 0.0  ;;  %vm2715_vm4 = vcmp.eq.f32.partialorder %v5037_v4, inf }
 0x30e   : > { %v5092_v56 = vadd.f32 %v2443_v7, %v2219_v26  ;;  %v3410_v30 = vpop.eup %3409  ;;  %v2667_v20 = vsel %vm2666_vm6, %v4980_v19, %v2665_v35  ;;  %3427 = vrsqrt.f32 %v5087_v33  ;;  %v2679_v7 = vmul.f32 %v3408_v55, %v4995_v25 }
 0x30f   : > { %v2445_v27 = vpop.f32.mrf.mxu1  ;;  %v2223_v39 = vpop.f32.mrf.mxu0  ;;  %v5123_v35 = vsel %vm2661_vm5, %v2662_v49, %v2660_v48  ;;  %v5130_v55 = vsel %vm2668_vm7, %v2669_v60, %v2667_v20  ;;  %vm2717_vm5 = vcmp.eq.f32.partialorder %v5037_v4, 0.0  ;;  %vm2722_vm6 = vcmp.eq.f32.partialorder %v5050_v45, inf }
 0x310   : > { %v5107_v21 = vadd.f32 %v5092_v56, %v4686_v13  ;;  %v2224_v46 = vadd.f32 %v2223_v39, %v4885_v15  ;;  %v3412_v26 = vpop.eup %3411  ;;  %v2683_v13 = vand.u32 2147483648, %v4995_v25  ;;  %v2686_v39 = vmul.f32 %v3410_v30, %v5000_v18 }
 0x311   : > { %v2448_v9 = vpop.f32.mrf.mxu1  ;;  %v2225_v6 = vpop.f32.mrf.mxu0  ;;  %v2693_v48 = vmul.f32 %v3412_v26, %v5009_v41  ;;  %vm2729_vm7 = vcmp.eq.f32.partialorder %v5058_v32, inf }
 0x312   : > { %v5119_v15 = vadd.f32 %v2448_v9, %v2224_v46  ;;  %v3414_v27 = vpop.eup %3413  ;;  %v2690_v6 = vand.u32 2147483648, %v5000_v18  ;;  %v2674_v46 = vsel %vm2673_vm8, %v4986_v42, %v2672_v50  ;;  %v2681_v50 = vsel %vm2680_vm10, %v4995_v25, %v2679_v7 }
 0x313   : > { %v2450_v34 = vpop.f32.mrf.mxu1  ;;  %v2228_v47 = vpop.f32.mrf.mxu0  ;;  %v2688_v20 = vsel %vm2687_vm12, %v5000_v18, %v2686_v39  ;;  %v2704_v9 = vand.u32 2147483648, %v5013_v31  ;;  %v5169_v39 = vsel %vm2682_vm11, %v2683_v13, %v2681_v50  ;;  %v6084_v18 = vld [vmem:[#allocation32_spill] sm:$0xff]  ;;  %vm2724_vm8 = vcmp.eq.f32.partialorder %v5050_v45, 0.0 }
 0x314   : > { %v5137_v52 = vadd.f32 %v5119_v15, %v4693_v36  ;;  %v2229_v49 = vadd.f32 %v2228_v47, %v4887_v16  ;;  %v2697_v34 = vand.u32 2147483648, %v5009_v41  ;;  %v3416_v30 = vpop.eup %3415  ;;  %v2700_v36 = vmul.f32 %v3414_v27, %v5013_v31  ;;  %6079 = vst [vmem:[#allocation50_spill] sm:$0xff] %v5169_v39 }
 0x315   : > { %v2453_v19 = vpop.f32.mrf.mxu1  ;;  %v2230_v60 = vpop.f32.mrf.mxu0  ;;  %v5153_v47 = vsel %vm2675_vm9, %v2676_v57, %v2674_v46  ;;  %v2711_v27 = vand.u32 2147483648, %v5026_v3  ;;  %v2695_v46 = vsel %vm2694_vm14, %v5009_v41, %v2693_v48  ;;  %v5183_v25 = vsel %vm2689_vm13, %v2690_v6, %v2688_v20 }
 0x316   : > { %v5149_v16 = vadd.f32 %v2453_v19, %v2229_v49  ;;  %6078 = vst [vmem:[#allocation49_spill] sm:$0xff] %v5153_v47  ;;  %v3418_v60 = vpop.eup %3417  ;;  %v2707_v49 = vmul.f32 %v3416_v30, %v5026_v3  ;;  %6081 = vst [vmem:[#allocation52_spill] sm:$0xff] %v5183_v25  ;;  %v5197_v20 = vsel %vm2696_vm15, %v2697_v34, %v2695_v46  ;;  %vm2731_vm9 = vcmp.eq.f32.partialorder %v5058_v32, 0.0 }
 0x317   : > { %v2455_v26 = vpop.f32.mrf.mxu1  ;;  %v2233_v7 = vpop.f32.mrf.mxu0  ;;  %v2714_v48 = vmul.f32 %v3418_v60, %v5037_v4  ;;  %6085 = vst [vmem:[#allocation32_spill] sm:$0xff] %v5197_v20  ;;  %v2725_v60 = vand.u32 2147483648, %v5050_v45  ;;  %vm2736_vm10 = vcmp.eq.f32.partialorder %v5067_v40, inf  ;;  %vm2738_vm11 = vcmp.eq.f32.partialorder %v5067_v40, 0.0 }
 0x318   : > { %v5164_v42 = vadd.f32 %v5149_v16, %v4700_v59  ;;  %v2234_v57 = vadd.f32 %v2233_v7, %v4889_v5  ;;  %v3420_v47 = vpop.eup %3419  ;;  %v2702_v59 = vsel %vm2701_vm0, %v5013_v31, %v2700_v36  ;;  %v2718_v7 = vand.u32 2147483648, %v5037_v4 }
 0x319   : > { %v2458_v19 = vpop.f32.mrf.mxu1  ;;  %v2235_v26 = vpop.f32.mrf.mxu0  ;;  %v5202_v39 = vsel %vm2703_vm1, %v2704_v9, %v2702_v59  ;;  %v2739_v31 = vand.u32 2147483648, %v5067_v40  ;;  %v2721_v59 = vmul.f32 %v3420_v47, %v5050_v45  ;;  %vm2743_vm12 = vcmp.eq.f32.partialorder %v5073_v12, inf }
 0x31a   : > { %v5179_v5 = vadd.f32 %v2458_v19, %v2234_v57  ;;  %v3422_v13 = vpop.eup %3421  ;;  %v6082_v57 = vld [vmem:[#allocation14_spill] sm:$0xff]  ;;  %6086 = vst [vmem:[#allocation53_spill] sm:$0xff] %v5202_v39  ;;  %v6089_v39 = vld [vmem:[#allocation33_spill] sm:$0xff]  ;;  %vm2745_vm13 = vcmp.eq.f32.partialorder %v5073_v12, 0.0  ;;  %vm2750_vm14 = vcmp.eq.f32.partialorder %v5087_v33, inf  ;;  %vm2752_vm15 = vcmp.eq.f32.partialorder %v5087_v33, 0.0 }
 0x31b   : > { %v2460_v30 = vpop.f32.mrf.mxu1  ;;  %v2238_v50 = vpop.f32.mrf.mxu0 }
 0x31c   : > { %6080 = vst [vmem:[#allocation51_spill] sm:$0xff] %v5179_v5  ;;  %v3424_v36 = vpop.eup %3423  ;;  %v5192_v19 = vadd.f32 %v5179_v5, %v6082_v57  ;;  %v2239_v6 = vadd.f32 %v2238_v50, %v6084_v18  ;;  %v2709_v57 = vsel %vm2708_vm2, %v5026_v3, %v2707_v49  ;;  %v2732_v50 = vand.u32 2147483648, %v5058_v32 }
 0x31d   : > { %v3426_v26 = vpop.eup %3425  ;;  %v2463_v30 = vpop.f32.mrf.mxu1  ;;  %v2716_v49 = vsel %vm2715_vm4, %v5037_v4, %v2714_v48  ;;  %v2735_v18 = vmul.f32 %v3424_v36, %v5067_v40  ;;  %v3139_v48 = vlaneseq  ;;  %v2746_v3 = vand.u32 2147483648, %v5073_v12 }
 0x31e   : > { %6083 = vst [vmem:[#allocation14_spill] sm:$0xff] %v5192_v19  ;;  %v2240_v25 = vpop.f32.mrf.mxu0  ;;  %v3428_v41 = vpop.eup %3427  ;;  %v5209_v34 = vadd.f32 %v2463_v30, %v2239_v6  ;;  %v6087_v6 = vld [vmem:[#allocation15_spill] sm:$0xff]  ;;  %v2742_v47 = vmul.f32 %v3426_v26, %v5073_v12 }
 0x31f   : > { %v2465_v9 = vpop.f32.mrf.mxu1  ;;  %v2728_v25 = vmul.f32 %v3422_v13, %v5058_v32  ;;  %v2749_v13 = vmul.f32 %v3428_v41, %v5087_v33  ;;  %v2737_v4 = vsel %vm2736_vm10, %v5067_v40, %v2735_v18 }
 0x320   : > { %v2243_v46 = vpop.f32.mrf.mxu0  ;;  %v5224_v30 = vadd.f32 %v5209_v34, %v6087_v6  ;;  %v5229_v9 = vsel %vm2710_vm3, %v2711_v27, %v2709_v57 }
 0x321   : > { %v2244_v20 = vadd.f32 %v2243_v46, %v6089_v39  ;;  %6090 = vst [vmem:[#allocation33_spill] sm:$0xff] %v5229_v9  ;;  %v2468_v19 = vpop.f32.mrf.mxu1  ;;  %v5237_v39 = vsel %vm2717_vm5, %v2718_v7, %v2716_v49  ;;  %v2730_v26 = vsel %vm2729_vm7, %v5058_v32, %v2728_v25  ;;  %v2755_v7 = vmul.f32 %v4926_v43, %v4926_v43  ;;  %v6093_v46 = vld [vmem:[#allocation34_spill] sm:$0xff] }
 0x322   : > { %6088 = vst [vmem:[#allocation15_spill] sm:$0xff] %v5224_v30  ;;  %v2245_v5 = vpop.f32.mrf.mxu0  ;;  %6091 = vst [vmem:[#allocation54_spill] sm:$0xff] %v5237_v39  ;;  %v2744_v25 = vsel %vm2743_vm12, %v5073_v12, %v2742_v47  ;;  %v2751_v18 = vsel %vm2750_vm14, %v5087_v33, %v2749_v13  ;;  %v2753_v39 = vand.u32 2147483648, %v5087_v33  ;;  %v2947_v43 = vmul.f32 %v4930_v14, %v4930_v14 }
 0x323   : > { %v2469_v36 = vadd.f32 %v2468_v19, %v2244_v20  ;;  %v2470_v27 = vpop.f32.mrf.mxu1  ;;  %v2723_v5 = vsel %vm2722_vm6, %v5050_v45, %v2721_v59  ;;  %v6092_v19 = vld [vmem:[#allocation16_spill] sm:$0xff]  ;;  %v3140_v59 = vand.u32 127, %v3139_v48  ;;  %v5271_v47 = vsel %vm2731_vm9, %v2732_v50, %v2730_v26  ;;  %v6095_v45 = vld [vmem:[#allocation35_spill] sm:$0xff] }
 0x324   : > { %v2248_v57 = vpop.f32.mrf.mxu0  ;;  %v5275_v13 = vsel %vm2738_vm11, %v2739_v31, %v2737_v4  ;;  %v5285_v32 = vsel %vm2745_vm13, %v2746_v3, %v2744_v25  ;;  %v5289_v40 = vsel %vm2752_vm15, %v2753_v39, %v2751_v18  ;;  %v2948_v50 = vmul.f32 %v4937_v37, %v4937_v37  ;;  %v6096_v39 = vld [vmem:[#allocation36_spill] sm:$0xff] }
 0x325   : > { %v2563_v20 = vadd.f32 %v2469_v36, %v6092_v19  ;;  %v2771_v41 = vmul.f32 %v2469_v36, %v2469_v36  ;;  %v2249_v49 = vadd.f32 %v2248_v57, %v6093_v46  ;;  %v2473_v6 = vpop.f32.mrf.mxu1  ;;  %v3142_v57 = vstv %s3314_s22 }
 0x326   : > { %v2250_v27 = vpop.f32.mrf.mxu0  ;;  %v2757_v31 = vmul.f32 %v4940_v62, %v4940_v62  ;;  %v2949_v33 = vmul.f32 %v4944_v54, %v4944_v54  ;;  %v2758_v37 = vmul.f32 %v4947_v24, %v4947_v24  ;;  %v2950_v62 = vmul.f32 %v4951_v17, %v4951_v17 }
 0x327   : > { %v2787_v36 = vadd.f32 %v2771_v41, %v2755_v7  ;;  %v2963_v19 = vmul.f32 %v2563_v20, %v2563_v20  ;;  %v2474_v9 = vadd.f32 %v2473_v6, %v2249_v49  ;;  %v2475_v48 = vpop.f32.mrf.mxu1  ;;  %v5267_v27 = vsel %vm2724_vm8, %v2725_v60, %v2723_v5  ;;  %v6094_v7 = vld [vmem:[#allocation17_spill] sm:$0xff] }
 0x328   : > { %v2253_v46 = vpop.f32.mrf.mxu0  ;;  %v2756_v49 = vmul.f32 %v4933_v23, %v4933_v23  ;;  %v5296_v23 = vadd.s32 %v3142_v57, %v3140_v59  ;;  %v5309_v59 = vmul.f32 %v4957_v63, %v4957_v63  ;;  %v6097_v57 = vld [vmem:[#allocation18_spill] sm:$0xff]  ;;  %v5325_v63 = vmul.f32 %v4976_v61, %v4976_v61 }
 0x329   : > { %v5277_v30 = vmax.f32 %v2787_v36, 1e-08  ;;  %v2979_v14 = vadd.f32 %v2963_v19, %v2947_v43  ;;  %v2564_v20 = vadd.f32 %v2474_v9, %v6094_v7  ;;  %v2772_v41 = vmul.f32 %v2474_v9, %v2474_v9  ;;  %v2478_v5 = vpop.f32.mrf.mxu1 }
 0x32a   : > { %v2254_v60 = vadd.f32 %v2253_v46, %v6095_v45  ;;  %v2255_v6 = vpop.f32.mrf.mxu0  ;;  %v5313_v43 = vmul.f32 %v4964_v44, %v4964_v44  ;;  %v5317_v36 = vmul.f32 %v4968_v29, %v4968_v29  ;;  %v5329_v44 = vmul.f32 %v4982_v2, %v4982_v2 }
 0x32b   : > { %3429 = vrsqrt.f32 %v5277_v30  ;;  %v5298_v9 = vmax.f32 %v2979_v14, 1e-08  ;;  %v2788_v26 = vadd.f32 %v2772_v41, %v2756_v49  ;;  %v2964_v12 = vmul.f32 %v2564_v20, %v2564_v20  ;;  %v2480_v4 = vpop.f32.mrf.mxu1 }
 0x32c   : > { %v2479_v3 = vadd.f32 %v2478_v5, %v2254_v60  ;;  %v2258_v25 = vpop.f32.mrf.mxu0  ;;  %v5333_v29 = vmul.f32 %v4990_v8, %v4990_v8  ;;  %v5337_v41 = vmul.f32 %v4997_v22, %v4997_v22  ;;  %v5341_v49 = vmul.f32 %v5005_v28, %v5005_v28  ;;  %v6098_v60 = vld [vmem:[#allocation19_spill] sm:$0xff] }
 0x32d   : > { %v2259_v18 = vadd.f32 %v2258_v25, %v6096_v39  ;;  %3431 = vrsqrt.f32 %v5298_v9  ;;  %v2483_v54 = vpop.f32.mrf.mxu1  ;;  %v5320_v19 = vmax.f32 %v2788_v26, 1e-08  ;;  %v2980_v17 = vadd.f32 %v2964_v12, %v2948_v50  ;;  %v6099_v26 = vld [vmem:[#allocation37_spill] sm:$0xff] }
 0x32e   : > { %v2260_v24 = vpop.f32.mrf.mxu0  ;;  %v2565_v48 = vadd.f32 %v2479_v3, %v6097_v57  ;;  %v2773_v46 = vmul.f32 %v2479_v3, %v2479_v3  ;;  %v5345_v61 = vmul.f32 %v5015_v58, %v5015_v58  ;;  %v5353_v22 = vmul.f32 %v5020_v53, %v5020_v53 }
 0x32f   : > { %v2484_v14 = vadd.f32 %v2483_v54, %v2259_v18  ;;  %v2485_v7 = vpop.f32.mrf.mxu1  ;;  %3433 = vrsqrt.f32 %v5320_v19  ;;  %v5348_v2 = vmax.f32 %v2980_v17, 1e-08  ;;  %v5357_v28 = vmul.f32 %v5031_v11, %v5031_v11 }
 0x330   : > { %v2263_v20 = vpop.f32.mrf.mxu0  ;;  %v2789_v8 = vadd.f32 %v2773_v46, %v2757_v31  ;;  %v2965_v45 = vmul.f32 %v2565_v48, %v2565_v48  ;;  %v5362_v3 = vmul.f32 %v5043_v38, %v5043_v38  ;;  %v5366_v31 = vmul.f32 %v5060_v10, %v5060_v10 }
 0x331   : > { %v2566_v5 = vadd.f32 %v2484_v14, %v6098_v60  ;;  %v2488_v6 = vpop.f32.mrf.mxu1  ;;  %v2774_v58 = vmul.f32 %v2484_v14, %v2484_v14  ;;  %v2264_v12 = vadd.f32 %v2263_v20, %v6099_v26  ;;  %v5370_v4 = vmul.f32 %v5077_v0, %v5077_v0  ;;  %v6100_v0 = vld [vmem:[#allocation38_spill] sm:$0xff]  ;;  %v6101_v20 = vld [vmem:[#allocation20_spill] sm:$0xff] }
 0x332   : > { %v2265_v50 = vpop.f32.mrf.mxu0  ;;  %3435 = vrsqrt.f32 %v5348_v2  ;;  %v5373_v25 = vmax.f32 %v2789_v8, 1e-08  ;;  %v2981_v39 = vadd.f32 %v2965_v45, %v2949_v33  ;;  %v5377_v38 = vmul.f32 %v5092_v56, %v5092_v56 }
 0x333   : > { %v2490_v53 = vpop.f32.mrf.mxu1  ;;  %v2790_v18 = vadd.f32 %v2774_v58, %v2758_v37  ;;  %v2966_v54 = vmul.f32 %v2566_v5, %v2566_v5  ;;  %v5381_v10 = vmul.f32 %v5107_v21, %v5107_v21  ;;  %v2489_v24 = vadd.f32 %v2488_v6, %v2264_v12  ;;  %v6102_v6 = vld [vmem:[#allocation39_spill] sm:$0xff] }
 0x334   : > { %v2268_v11 = vpop.f32.mrf.mxu0  ;;  %v5386_v46 = vmul.f32 %v5119_v15, %v5119_v15  ;;  %v5390_v33 = vmul.f32 %v5137_v52, %v5137_v52  ;;  %v5394_v56 = vmul.f32 %v5149_v16, %v5149_v16  ;;  %3437 = vrsqrt.f32 %v5373_v25 }
 0x335   : > { %v2269_v17 = vadd.f32 %v2268_v11, %v6100_v0  ;;  %v2493_v57 = vpop.f32.mrf.mxu1  ;;  %v5397_v37 = vmax.f32 %v2981_v39, 1e-08  ;;  %v5399_v14 = vmax.f32 %v2790_v18, 1e-08  ;;  %v2982_v7 = vadd.f32 %v2966_v54, %v2950_v62 }
 0x336   : > { %v2270_v48 = vpop.f32.mrf.mxu0  ;;  %v2567_v8 = vadd.f32 %v2489_v24, %v6101_v20  ;;  %v2775_v52 = vmul.f32 %v2489_v24, %v2489_v24  ;;  %v5406_v16 = vmul.f32 %v5164_v42, %v5164_v42  ;;  %vm2821_vm0 = vcmp.eq.f32.partialorder %v5277_v30, inf }
 0x337   : > { %v2495_v15 = vpop.f32.mrf.mxu1  ;;  %v2494_v5 = vadd.f32 %v2493_v57, %v2269_v17  ;;  %v2824_v58 = vand.u32 2147483648, %v5277_v30  ;;  %3439 = vrsqrt.f32 %v5397_v37  ;;  %vm2823_vm1 = vcmp.eq.f32.partialorder %v5277_v30, 0.0 }
 0x338   : > { %v3430_v21 = vpop.eup %3429  ;;  %v2273_v45 = vpop.f32.mrf.mxu0  ;;  %vm3013_vm2 = vcmp.eq.f32.partialorder %v5298_v9, inf  ;;  %3441 = vrsqrt.f32 %v5399_v14  ;;  %v3016_v39 = vand.u32 2147483648, %v5298_v9  ;;  %v5417_v18 = vmax.f32 %v2982_v7, 1e-08 }
 0x339   : > { %v2820_v60 = vmul.f32 %v3430_v21, %v5277_v30  ;;  %v2274_v50 = vadd.f32 %v2273_v45, %v6102_v6  ;;  %v2498_v62 = vpop.f32.mrf.mxu1  ;;  %v2791_v17 = vadd.f32 %v2775_v52, %v5309_v59  ;;  %v2967_v57 = vmul.f32 %v2567_v8, %v2567_v8 }
 0x33a   : > { %v2275_v26 = vpop.f32.mrf.mxu0  ;;  %v3432_v12 = vpop.eup %3431  ;;  %vm3015_vm3 = vcmp.eq.f32.partialorder %v5298_v9, 0.0  ;;  %vm2828_vm4 = vcmp.eq.f32.partialorder %v5320_v19, inf  ;;  %3443 = vrsqrt.f32 %v5417_v18  ;;  %v2831_v59 = vand.u32 2147483648, %v5320_v19 }
 0x33b   : > { %v2822_v53 = vsel %vm2821_vm0, %v5277_v30, %v2820_v60  ;;  %v3012_v42 = vmul.f32 %v3432_v12, %v5298_v9  ;;  %v2500_v54 = vpop.f32.mrf.mxu1  ;;  %v6103_v30 = vld [vmem:[#allocation21_spill] sm:$0xff]  ;;  %v5434_v8 = vmax.f32 %v2791_v17, 1e-08  ;;  %v2776_v52 = vmul.f32 %v2494_v5, %v2494_v5 }
 0x33c   : > { %v2825_v11 = vsel %vm2823_vm1, %v2824_v58, %v2822_v53  ;;  %v2278_v24 = vpop.f32.mrf.mxu0  ;;  %v2568_v48 = vadd.f32 %v2494_v5, %v6103_v30  ;;  %v3434_v21 = vpop.eup %3433  ;;  %vm2830_vm5 = vcmp.eq.f32.partialorder %v5320_v19, 0.0  ;;  %vm3020_vm6 = vcmp.eq.f32.partialorder %v5348_v2, inf }
 0x33d   : > { %v5420_v0 = vadd.f32 %v2825_v11, %v5082_v51  ;;  %v3014_v20 = vsel %vm3013_vm2, %v5298_v9, %v3012_v42  ;;  %v5428_v7 = vpop.f32.mrf.mxu1  ;;  %v2827_v51 = vmul.f32 %v3434_v21, %v5320_v19  ;;  %v2983_v9 = vadd.f32 %v2967_v57, %v5313_v43 }
 0x33e   : > { %v2280_v15 = vpop.f32.mrf.mxu0  ;;  %v5430_v45 = vsel %vm3015_vm3, %v3016_v39, %v3014_v20  ;;  %v2968_v6 = vmul.f32 %v2568_v48, %v2568_v48  ;;  %3445 = vrsqrt.f32 %v5434_v8  ;;  %vm3022_vm7 = vcmp.eq.f32.partialorder %v5348_v2, 0.0  ;;  %v6104_v20 = vld [vmem:[#allocation40_spill] sm:$0xff] }
 0x33f   : > { %v2505_v58 = vpop.f32.mrf.mxu1  ;;  %v3436_v12 = vpop.eup %3435  ;;  %v2829_v53 = vsel %vm2828_vm4, %v5320_v19, %v2827_v51  ;;  %v3023_v43 = vand.u32 2147483648, %v5348_v2  ;;  %vm2835_vm8 = vcmp.eq.f32.partialorder %v5373_v25, inf  ;;  %v5454_v19 = vmax.f32 %v2983_v9, 1e-08 }
 0x340   : > { %v5439_v26 = vpop.f32.mrf.mxu0  ;;  %v2832_v11 = vsel %vm2830_vm5, %v2831_v59, %v2829_v53  ;;  %v3019_v42 = vmul.f32 %v3436_v12, %v5348_v2  ;;  %v2792_v17 = vadd.f32 %v2776_v52, %v5317_v36  ;;  %v2984_v48 = vadd.f32 %v2968_v6, %v5325_v63  ;;  %v6105_v6 = vld [vmem:[#allocation22_spill] sm:$0xff] }
 0x341   : > { %v5448_v5 = vpop.f32.mrf.mxu1  ;;  %v5451_v54 = vadd.f32 %v2832_v11, %v5096_v1  ;;  %v3438_v57 = vpop.eup %3437  ;;  %v2499_v21 = vadd.f32 %v2498_v62, %v2274_v50  ;;  %v2279_v15 = vadd.f32 %v2278_v24, %v6104_v20  ;;  %vm2837_vm9 = vcmp.eq.f32.partialorder %v5373_v25, 0.0 }
 0x342   : > { %v2285_v39 = vpop.f32.mrf.mxu0  ;;  %v3021_v30 = vsel %vm3020_vm6, %v5348_v2, %v3019_v42  ;;  %v2834_v1 = vmul.f32 %v3438_v57, %v5373_v25  ;;  %v2838_v9 = vand.u32 2147483648, %v5373_v25  ;;  %vm3027_vm10 = vcmp.eq.f32.partialorder %v5397_v37, inf }
 0x343   : > { %v2510_v51 = vpop.f32.mrf.mxu1  ;;  %v5462_v58 = vsel %vm3022_vm7, %v3023_v43, %v3021_v30  ;;  %3447 = vrsqrt.f32 %v5454_v19  ;;  %v5471_v63 = vmax.f32 %v2792_v17, 1e-08  ;;  %vm3029_vm11 = vcmp.eq.f32.partialorder %v5397_v37, 0.0 }
 0x344   : > { %v5460_v59 = vpop.f32.mrf.mxu0  ;;  %v3440_v62 = vpop.eup %3439  ;;  %v2836_v24 = vsel %vm2835_vm8, %v5373_v25, %v2834_v1  ;;  %v3030_v52 = vand.u32 2147483648, %v5397_v37  ;;  %v2569_v12 = vadd.f32 %v2499_v21, %v6105_v6  ;;  %v5483_v43 = vmax.f32 %v2984_v48, 1e-08 }
 0x345   : > { %v5473_v2 = vpop.f32.mrf.mxu1  ;;  %v3442_v53 = vpop.eup %3441  ;;  %v2839_v11 = vsel %vm2837_vm9, %v2838_v9, %v2836_v24  ;;  %v3026_v42 = vmul.f32 %v3440_v62, %v5397_v37  ;;  %3449 = vrsqrt.f32 %v5471_v63  ;;  %vm2842_vm12 = vcmp.eq.f32.partialorder %v5399_v14, inf }
 0x346   : > { %v2290_v50 = vpop.f32.mrf.mxu0  ;;  %v5488_v57 = vadd.f32 %v2839_v11, %v5123_v35  ;;  %v2841_v25 = vmul.f32 %v3442_v53, %v5399_v14  ;;  %v2777_v30 = vmul.f32 %v2499_v21, %v2499_v21  ;;  %vm2844_vm13 = vcmp.eq.f32.partialorder %v5399_v14, 0.0 }
 0x347   : > { %v2515_v39 = vpop.f32.mrf.mxu1  ;;  %v3028_v20 = vsel %vm3027_vm10, %v5397_v37, %v3026_v42  ;;  %v2845_v48 = vand.u32 2147483648, %v5399_v14  ;;  %vm3034_vm14 = vcmp.eq.f32.partialorder %v5417_v18, inf  ;;  %v3444_v35 = vpop.eup %3443  ;;  %vm3036_vm15 = vcmp.eq.f32.partialorder %v5417_v18, 0.0 }
 0x348   : > { %v5485_v17 = vpop.f32.mrf.mxu0  ;;  %v5502_v9 = vsel %vm3029_vm11, %v3030_v52, %v3028_v20  ;;  %v2843_v21 = vsel %vm2842_vm12, %v5399_v14, %v2841_v25  ;;  %v3037_v50 = vand.u32 2147483648, %v5417_v18  ;;  %v3033_v6 = vmul.f32 %v3444_v35, %v5417_v18 }
 0x349   : > { %v5498_v51 = vpop.f32.mrf.mxu1  ;;  %v2846_v24 = vsel %vm2844_vm13, %v2845_v48, %v2843_v21  ;;  %3451 = vrsqrt.f32 %v5483_v43  ;;  %v2793_v14 = vadd.f32 %v2777_v30, %v5329_v44  ;;  %v2969_v52 = vmul.f32 %v2569_v12, %v2569_v12  ;;  %v6107_v48 = vld [vmem:[#allocation41_spill] sm:$0xff]  ;;  %v6109_v21 = vld [vmem:[#allocation23_spill] sm:$0xff] }
 0x34a   : > { %v2295_v1 = vpop.f32.mrf.mxu0  ;;  %v5514_v37 = vadd.f32 %v2846_v24, %v5130_v55  ;;  %v2504_v42 = vadd.f32 %v5428_v7, %v2279_v15  ;;  %v3035_v25 = vsel %vm3034_vm14, %v5417_v18, %v3033_v6  ;;  %vm2849_vm0 = vcmp.eq.f32.partialorder %v5434_v8, inf  ;;  %v6110_v18 = vld [vmem:[#allocation51_spill] sm:$0xff] }
 0x34b   : > { %v2520_v53 = vpop.f32.mrf.mxu1  ;;  %v3446_v39 = vpop.eup %3445  ;;  %v2852_v20 = vand.u32 2147483648, %v5434_v8  ;;  %v2284_v1 = vadd.f32 %v5439_v26, %v6107_v48  ;;  %v5529_v44 = vsel %vm3036_vm15, %v3037_v50, %v3035_v25  ;;  %v5532_v15 = vmax.f32 %v2793_v14, 1e-08 }
 0x34c   : > { %v5511_v11 = vpop.f32.mrf.mxu0  ;;  %6106 = vst [vmem:[#allocation16_spill] sm:$0xff] %v5514_v37  ;;  %6108 = vst [vmem:[#allocation34_spill] sm:$0xff] %v5529_v44  ;;  %v2848_v7 = vmul.f32 %v3446_v39, %v5434_v8  ;;  %v2985_v12 = vadd.f32 %v2969_v52, %v5333_v29  ;;  %v2570_v24 = vadd.f32 %v2504_v42, %v6109_v21  ;;  %vm2851_vm1 = vcmp.eq.f32.partialorder %v5434_v8, 0.0  ;;  %v6111_v29 = vld [vmem:[#allocation42_spill] sm:$0xff] }
 0x34d   : > { %v5525_v35 = vpop.f32.mrf.mxu1  ;;  %v2778_v6 = vmul.f32 %v2504_v42, %v2504_v42  ;;  %v2509_v26 = vadd.f32 %v5448_v5, %v2284_v1  ;;  %v5543_v50 = vmul.f32 %v6110_v18, %v6110_v18  ;;  %v2289_v52 = vadd.f32 %v5460_v59, %v6111_v29  ;;  %v6112_v21 = vld [vmem:[#allocation14_spill] sm:$0xff]  ;;  %v6114_v59 = vld [vmem:[#allocation24_spill] sm:$0xff] }
 0x34e   : > { %v2300_v55 = vpop.f32.mrf.mxu0  ;;  %v2850_v14 = vsel %vm2849_vm0, %v5434_v8, %v2848_v7  ;;  %3453 = vrsqrt.f32 %v5532_v15  ;;  %v5552_v5 = vmax.f32 %v2985_v12, 1e-08  ;;  %v6113_v7 = vld [vmem:[#allocation49_spill] sm:$0xff]  ;;  %v2970_v18 = vmul.f32 %v2570_v24, %v2570_v24 }
 0x34f   : > { %v2525_v53 = vpop.f32.mrf.mxu1  ;;  %v2853_v39 = vsel %vm2851_vm1, %v2852_v20, %v2850_v14  ;;  %v2794_v42 = vadd.f32 %v2778_v6, %v5337_v41  ;;  %v2571_v20 = vadd.f32 %v2509_v26, %v6114_v59  ;;  %v5567_v12 = vmul.f32 %v5209_v34, %v5209_v34  ;;  %v6115_v14 = vld [vmem:[#allocation15_spill] sm:$0xff] }
 0x350   : > { %v5539_v48 = vpop.f32.mrf.mxu0  ;;  %v3448_v55 = vpop.eup %3447  ;;  %v5559_v53 = vmul.f32 %v6112_v21, %v6112_v21  ;;  %v5562_v8 = vadd.f32 %v2853_v39, %v6113_v7  ;;  %v5571_v41 = vmul.f32 %v6115_v14, %v6115_v14  ;;  %vm3041_vm2 = vcmp.eq.f32.partialorder %v5454_v19, inf }
 0x351   : > { %v5555_v25 = vpop.f32.mrf.mxu1  ;;  %vm3043_vm3 = vcmp.eq.f32.partialorder %v5454_v19, 0.0  ;;  %3455 = vrsqrt.f32 %v5552_v5  ;;  %v5576_v24 = vmax.f32 %v2794_v42, 1e-08  ;;  %v2986_v39 = vadd.f32 %v2970_v18, %v5341_v49 }
 0x352   : > { %v2305_v1 = vpop.f32.mrf.mxu0  ;;  %v2779_v21 = vmul.f32 %v2509_v26, %v2509_v26  ;;  %v3040_v34 = vmul.f32 %v3448_v55, %v5454_v19  ;;  %v2971_v59 = vmul.f32 %v2571_v20, %v2571_v20  ;;  %v2514_v14 = vadd.f32 %v5473_v2, %v2289_v52  ;;  %v6116_v55 = vld [vmem:[#allocation43_spill] sm:$0xff] }
 0x353   : > { %v2530_v6 = vpop.f32.mrf.mxu1  ;;  %v3450_v1 = vpop.eup %3449  ;;  %vm2856_vm4 = vcmp.eq.f32.partialorder %v5471_v63, inf  ;;  %vm2858_vm5 = vcmp.eq.f32.partialorder %v5471_v63, 0.0  ;;  %v2859_v42 = vand.u32 2147483648, %v5471_v63  ;;  %3457 = vrsqrt.f32 %v5576_v24 }
 0x354   : > { %v2308_v29 = vpop.f32.mrf.mxu0  ;;  %v2855_v7 = vmul.f32 %v3450_v1, %v5471_v63  ;;  %v3044_v6 = vand.u32 2147483648, %v5454_v19  ;;  %v5589_v49 = vmax.f32 %v2986_v39, 1e-08  ;;  %v2795_v26 = vadd.f32 %v2779_v21, %v5345_v61  ;;  %v6117_v1 = vld [vmem:[#allocation25_spill] sm:$0xff] }
 0x355   : > { %v5582_v30 = vpop.f32.mrf.mxu1  ;;  %v2294_v2 = vadd.f32 %v5485_v17, %v6116_v55  ;;  %vm3048_vm6 = vcmp.eq.f32.partialorder %v5483_v43, inf  ;;  %v2987_v20 = vadd.f32 %v2971_v59, %v5353_v22  ;;  %v2572_v60 = vadd.f32 %v2514_v14, %v6117_v1 }
 0x356   : > { %v2310_v62 = vpop.f32.mrf.mxu0  ;;  %v2780_v36 = vmul.f32 %v2514_v14, %v2514_v14  ;;  %v3042_v39 = vsel %vm3041_vm2, %v5454_v19, %v3040_v34  ;;  %v2857_v61 = vsel %vm2856_vm4, %v5471_v63, %v2855_v7  ;;  %v5607_v44 = vmax.f32 %v2795_v26, 1e-08  ;;  %v6118_v7 = vld [vmem:[#allocation44_spill] sm:$0xff]  ;;  %v6120_v19 = vld [vmem:[#allocation46_spill] sm:$0xff] }
 0x357   : > { %v2535_v52 = vpop.f32.mrf.mxu1  ;;  %v3452_v62 = vpop.eup %3451  ;;  %v5609_v37 = vmax.f32 %v2987_v20, 1e-08  ;;  %v2972_v59 = vmul.f32 %v2572_v60, %v2572_v60  ;;  %3459 = vrsqrt.f32 %v5589_v49  ;;  %v2519_v34 = vadd.f32 %v5498_v51, %v2294_v2  ;;  %v6119_v51 = vld [vmem:[#allocation45_spill] sm:$0xff]  ;;  %v6121_v63 = vld [vmem:[#allocation26_spill] sm:$0xff] }
 0x358   : > { %v5594_v18 = vpop.f32.mrf.mxu0  ;;  %v2796_v22 = vadd.f32 %v2780_v36, %v5357_v28  ;;  %v3047_v14 = vmul.f32 %v3452_v62, %v5483_v43  ;;  %v2299_v1 = vadd.f32 %v5511_v11, %v6118_v7  ;;  %v5621_v26 = vsel %vm3043_vm3, %v3044_v6, %v3042_v39 }
 0x359   : > { %v5605_v55 = vpop.f32.mrf.mxu1  ;;  %v3058_v20 = vand.u32 2147483648, %v5552_v5  ;;  %v2873_v28 = vand.u32 2147483648, %v5576_v24  ;;  %3461 = vrsqrt.f32 %v5607_v44  ;;  %v5628_v60 = vsel %vm2858_vm5, %v2859_v42, %v2857_v61 }
 0x35a   : > { %v2315_v52 = vpop.f32.mrf.mxu0  ;;  %vm2863_vm7 = vcmp.eq.f32.partialorder %v5532_v15, inf  ;;  %v5631_v36 = vmax.f32 %v2796_v22, 1e-08  ;;  %v2304_v11 = vadd.f32 %v5539_v48, %v6119_v51  ;;  %v2309_v6 = vadd.f32 %v2308_v29, %v6120_v19  ;;  %v6122_v19 = vld [vmem:[#allocation27_spill] sm:$0xff] }
 0x35b   : > { %v2540_v21 = vpop.f32.mrf.mxu1  ;;  %v3454_v39 = vpop.eup %3453  ;;  %3463 = vrsqrt.f32 %v5609_v37  ;;  %v2573_v42 = vadd.f32 %v2519_v34, %v6121_v63  ;;  %v2781_v61 = vmul.f32 %v2519_v34, %v2519_v34  ;;  %v5644_v52 = vsel %vm3048_vm6, %v5483_v43, %v3047_v14 }
 0x35c   : > { %v5617_v17 = vpop.f32.mrf.mxu0  ;;  %v2988_v21 = vadd.f32 %v2972_v59, %v5362_v3  ;;  %3465 = vrsqrt.f32 %v5631_v36  ;;  %v2524_v29 = vadd.f32 %v5525_v35, %v2299_v1  ;;  %vm3055_vm8 = vcmp.eq.f32.partialorder %v5552_v5, inf }
 0x35d   : > { %v5636_v2 = vpop.f32.mrf.mxu1  ;;  %v2880_v7 = vand.u32 2147483648, %v5607_v44  ;;  %v2797_v59 = vadd.f32 %v2781_v61, %v5366_v31  ;;  %v2973_v34 = vmul.f32 %v2573_v42, %v2573_v42  ;;  %v2862_v14 = vmul.f32 %v3454_v39, %v5532_v15  ;;  %v6123_v61 = vld [vmem:[#allocation28_spill] sm:$0xff] }
 0x35e   : > { %v2320_v62 = vpop.f32.mrf.mxu0  ;;  %v5651_v3 = vmax.f32 %v2988_v21, 1e-08  ;;  %v3456_v51 = vpop.eup %3455  ;;  %v2782_v63 = vmul.f32 %v2524_v29, %v2524_v29  ;;  %v2529_v48 = vadd.f32 %v5555_v25, %v2304_v11  ;;  %vm2870_vm9 = vcmp.eq.f32.partialorder %v5576_v24, inf }
 0x35f   : > { %v2545_v22 = vpop.f32.mrf.mxu1  ;;  %v2574_v62 = vadd.f32 %v2524_v29, %v6122_v19  ;;  %v5659_v35 = vmax.f32 %v2797_v59, 1e-08  ;;  %v2989_v1 = vadd.f32 %v2973_v34, %v5370_v4  ;;  %v2534_v21 = vadd.f32 %v5582_v30, %v2309_v6  ;;  %v6124_v34 = vld [vmem:[#allocation29_spill] sm:$0xff] }
 0x360   : > { %3467 = vrsqrt.f32 %v5651_v3  ;;  %vm2877_vm10 = vcmp.eq.f32.partialorder %v5607_v44, inf  ;;  %v3072_v31 = vand.u32 2147483648, %v5609_v37  ;;  %v2798_v39 = vadd.f32 %v2782_v63, %v5377_v38  ;;  %v3458_v25 = vpop.eup %3457 }
 0x361   : > { %v2974_v42 = vmul.f32 %v2574_v62, %v2574_v62  ;;  %v2575_v29 = vadd.f32 %v2529_v48, %v6123_v61  ;;  %v3054_v11 = vmul.f32 %v3456_v51, %v5552_v5  ;;  %3469 = vrsqrt.f32 %v5659_v35 }
 0x362   : > { %v5669_v22 = vmax.f32 %v2989_v1, 1e-08  ;;  %v2783_v59 = vmul.f32 %v2529_v48, %v2529_v48  ;;  %vm2865_vm11 = vcmp.eq.f32.partialorder %v5532_v15, 0.0  ;;  %v5672_v4 = vmax.f32 %v2798_v39, 1e-08 }
 0x363   : > { %v2990_v30 = vadd.f32 %v2974_v42, %v5381_v10  ;;  %v2975_v6 = vmul.f32 %v2575_v29, %v2575_v29  ;;  %v2576_v38 = vadd.f32 %v2534_v21, %v6124_v34  ;;  %v2864_v19 = vsel %vm2863_vm7, %v5532_v15, %v2862_v14 }
 0x364   : > { %vm2884_vm12 = vcmp.eq.f32.partialorder %v5631_v36, inf  ;;  %v2887_v51 = vand.u32 2147483648, %v5631_v36  ;;  %v2799_v62 = vadd.f32 %v2783_v59, %v5386_v46  ;;  %v2784_v48 = vmul.f32 %v2534_v21, %v2534_v21  ;;  %v3460_v14 = vpop.eup %3459  ;;  %v6125_v46 = vld [vmem:[#allocation47_spill] sm:$0xff] }
 0x365   : > { %v2869_v63 = vmul.f32 %v3458_v25, %v5576_v24  ;;  %vm2872_vm13 = vcmp.eq.f32.partialorder %v5576_v24, 0.0  ;;  %vm2879_vm14 = vcmp.eq.f32.partialorder %v5607_v44, 0.0  ;;  %3471 = vrsqrt.f32 %v5672_v4 }
 0x366   : > { %v5686_v10 = vmax.f32 %v2990_v30, 1e-08  ;;  %v2991_v1 = vadd.f32 %v2975_v6, %v5390_v33  ;;  %v5689_v39 = vmax.f32 %v2799_v62, 1e-08  ;;  %v2800_v42 = vadd.f32 %v2784_v48, %v5394_v56  ;;  %v3462_v29 = vpop.eup %3461  ;;  %v6126_v33 = vld [vmem:[#allocation48_spill] sm:$0xff] }
 0x367   : > { %v2976_v61 = vmul.f32 %v2576_v38, %v2576_v38  ;;  %v2314_v21 = vadd.f32 %v5594_v18, %v6125_v46  ;;  %v5697_v25 = vsel %vm3055_vm8, %v5552_v5, %v3054_v11  ;;  %3473 = vrsqrt.f32 %v5669_v22 }
 0x368   : > { %v5700_v59 = vmax.f32 %v2991_v1, 1e-08  ;;  %v2319_v30 = vadd.f32 %v5617_v17, %v6126_v33  ;;  %v2876_v6 = vmul.f32 %v3462_v29, %v5607_v44  ;;  %3475 = vrsqrt.f32 %v5689_v39  ;;  %v3464_v34 = vpop.eup %3463 }
 0x369   : > { %v5706_v56 = vmax.f32 %v2800_v42, 1e-08  ;;  %v2992_v18 = vadd.f32 %v2976_v61, %v5406_v16  ;;  %v2871_v11 = vsel %vm2870_vm9, %v5576_v24, %v2869_v63  ;;  %3477 = vrsqrt.f32 %v5686_v10  ;;  %v3466_v17 = vpop.eup %3465  ;;  %v6127_v42 = vld [vmem:[#allocation30_spill] sm:$0xff] }
 0x36a   : > { %v2539_v38 = vadd.f32 %v5605_v55, %v2314_v21  ;;  %v2544_v62 = vadd.f32 %v5636_v2, %v2319_v30  ;;  %v5716_v48 = vmul.f32 %v3460_v14, %v5589_v49  ;;  %v2878_v1 = vsel %vm2877_vm10, %v5607_v44, %v2876_v6  ;;  %v6128_v55 = vld [vmem:[#allocation31_spill] sm:$0xff] }
 0x36b   : > { %3479 = vrsqrt.f32 %v5706_v56  ;;  %v5722_v16 = vmax.f32 %v2992_v18, 1e-08  ;;  %v2883_v63 = vmul.f32 %v3466_v17, %v5631_v36  ;;  %v5728_v2 = vmul.f32 %v3464_v34, %v5609_v37 }
 0x36c   : > { %v2577_v61 = vadd.f32 %v2539_v38, %v6127_v42  ;;  %v2785_v46 = vmul.f32 %v2539_v38, %v2539_v38  ;;  %v2578_v21 = vadd.f32 %v2544_v62, %v6128_v55  ;;  %3481 = vrsqrt.f32 %v5700_v59 }
 0x36d   : > { %v2786_v14 = vmul.f32 %v2544_v62, %v2544_v62  ;;  %v6129_v29 = vand.u32 2147483648, %v5532_v15  ;;  %v3468_v30 = vpop.eup %3467  ;;  %v2885_v38 = vsel %vm2884_vm12, %v5631_v36, %v2883_v63  ;;  %3483 = vrsqrt.f32 %v5722_v16 }
 0x36e   : > { %v2801_v6 = vadd.f32 %v2785_v46, %v5543_v50  ;;  %v2977_v18 = vmul.f32 %v2577_v61, %v2577_v61  ;;  %v2978_v17 = vmul.f32 %v2578_v21, %v2578_v21  ;;  %v2874_v62 = vsel %vm2872_vm13, %v2873_v28, %v2871_v11  ;;  %v3470_v50 = vpop.eup %3469 }
 0x36f   : > { %v2867_v33 = vsel %vm2865_vm11, %v6129_v29, %v2864_v19  ;;  %v2802_v34 = vadd.f32 %v2786_v14, %v5567_v12  ;;  %v2881_v15 = vsel %vm2879_vm14, %v2880_v7, %v2878_v1  ;;  %vm2886_vm15 = vcmp.eq.f32.partialorder %v5631_v36, 0.0 }
 0x370   : > { %v5749_v19 = vmax.f32 %v2801_v6, 1e-08  ;;  %v2993_v42 = vadd.f32 %v2977_v18, %v5559_v53  ;;  %v2994_v63 = vadd.f32 %v2978_v17, %v5571_v41  ;;  %v5755_v12 = vmul.f32 %v3468_v30, %v5651_v3 }
 0x371   : > { %v2890_v24 = vmul.f32 %v3470_v50, %v5659_v35  ;;  %v5758_v28 = vmax.f32 %v2802_v34, 1e-08  ;;  %v2888_v11 = vsel %vm2886_vm15, %v2887_v51, %v2885_v38  ;;  %vm3050_vm0 = vcmp.eq.f32.partialorder %v5483_v43, 0.0  ;;  %v6130_v34 = vld [vmem:[#allocation50_spill] sm:$0xff]  ;;  %v6131_v50 = vld [vmem:[#allocation52_spill] sm:$0xff] }
 0x372   : > { %vm3057_vm1 = vcmp.eq.f32.partialorder %v5552_v5, 0.0  ;;  %3485 = vrsqrt.f32 %v5749_v19  ;;  %v5763_v44 = vmax.f32 %v2993_v42, 1e-08  ;;  %v5765_v53 = vmax.f32 %v2994_v63, 1e-08  ;;  %v3472_v41 = vpop.eup %3471 }
 0x373   : > { %vm2891_vm2 = vcmp.eq.f32.partialorder %v5659_v35, inf  ;;  %vm3062_vm3 = vcmp.eq.f32.partialorder %v5589_v49, inf  ;;  %vm3069_vm4 = vcmp.eq.f32.partialorder %v5609_v37, inf  ;;  %3487 = vrsqrt.f32 %v5758_v28 }
 0x374   : > { %v2892_v36 = vsel %vm2891_vm2, %v5659_v35, %v2890_v24  ;;  %vm2893_vm5 = vcmp.eq.f32.partialorder %v5659_v35, 0.0  ;;  %v2894_v7 = vand.u32 2147483648, %v5659_v35  ;;  %v2897_v51 = vmul.f32 %v3472_v41, %v5672_v4  ;;  %v3474_v61 = vpop.eup %3473  ;;  %v6132_v41 = vld [vmem:[#allocation32_spill] sm:$0xff] }
 0x375   : > { %vm2898_vm6 = vcmp.eq.f32.partialorder %v5672_v4, inf  ;;  %vm2900_vm7 = vcmp.eq.f32.partialorder %v5672_v4, 0.0  ;;  %v2901_v1 = vand.u32 2147483648, %v5672_v4  ;;  %3489 = vrsqrt.f32 %v5763_v44  ;;  %v3476_v55 = vpop.eup %3475 }
 0x376   : > { %v2895_v46 = vsel %vm2893_vm5, %v2894_v7, %v2892_v36  ;;  %vm2905_vm8 = vcmp.eq.f32.partialorder %v5689_v39, inf  ;;  %vm2907_vm9 = vcmp.eq.f32.partialorder %v5689_v39, 0.0  ;;  %3491 = vrsqrt.f32 %v5765_v53  ;;  %v3478_v14 = vpop.eup %3477  ;;  %v6133_v7 = vld [vmem:[#allocation53_spill] sm:$0xff] }
 0x377   : > { %v2899_v35 = vsel %vm2898_vm6, %v5672_v4, %v2897_v51  ;;  %v2908_v21 = vand.u32 2147483648, %v5689_v39  ;;  %vm2912_vm10 = vcmp.eq.f32.partialorder %v5706_v56, inf  ;;  %v2904_v30 = vmul.f32 %v3476_v55, %v5689_v39 }
 0x378   : > { %v2902_v29 = vsel %vm2900_vm7, %v2901_v1, %v2899_v35  ;;  %vm2914_vm11 = vcmp.eq.f32.partialorder %v5706_v56, 0.0  ;;  %v2915_v6 = vand.u32 2147483648, %v5706_v56  ;;  %v3480_v18 = vpop.eup %3479  ;;  %v2922_v17 = vand.u32 2147483648, %v5749_v19  ;;  %v6135_v35 = vld [vmem:[#allocation54_spill] sm:$0xff] }
 0x379   : > { %v2929_v38 = vand.u32 2147483648, %v5758_v28  ;;  %v5792_v4 = vadd.f32 %v5628_v60, %v6130_v34  ;;  %v5795_v42 = vadd.f32 %v2867_v33, %v6131_v50  ;;  %v2906_v63 = vsel %vm2905_vm8, %v5689_v39, %v2904_v30  ;;  %v3482_v1 = vpop.eup %3481  ;;  %v6134_v33 = vld [vmem:[#allocation33_spill] sm:$0xff] }
 0x37a   : > { %v2911_v24 = vmul.f32 %v3480_v18, %v5706_v56  ;;  %vm2919_vm12 = vcmp.eq.f32.partialorder %v5749_v19, inf  ;;  %v5803_v36 = vadd.f32 %v2874_v62, %v6132_v41  ;;  %v5806_v51 = vadd.f32 %v2881_v15, %v6133_v7 }
 0x37b   : > { %v2909_v60 = vsel %vm2907_vm9, %v2908_v21, %v2906_v63  ;;  %vm2921_vm13 = vcmp.eq.f32.partialorder %v5749_v19, 0.0  ;;  %vm2926_vm14 = vcmp.eq.f32.partialorder %v5758_v28, inf  ;;  %v5813_v55 = vadd.f32 %v2888_v11, %v6134_v33 }
 0x37c   : > { %v5816_v30 = vadd.f32 %v2895_v46, %v6135_v35  ;;  %v5819_v62 = vadd.f32 %v2902_v29, %v5267_v27  ;;  %v2913_v15 = vsel %vm2912_vm10, %v5706_v56, %v2911_v24  ;;  %vm2928_vm15 = vcmp.eq.f32.partialorder %v5758_v28, 0.0  ;;  %v3484_v46 = vpop.eup %3483 }
 0x37d   : > { %v5826_v39 = vadd.f32 %v2909_v60, %v5271_v47  ;;  %v6136_v21 = vand.u32 2147483648, %v5483_v43  ;;  %v5840_v27 = vsel %vm3057_vm1, %v3058_v20, %v5697_v25  ;;  %v2916_v29 = vsel %vm2914_vm11, %v2915_v6, %v2913_v15 }
 0x37e   : > { %v3063_v47 = vsel %vm3062_vm3, %v5589_v49, %v5716_v48  ;;  %vm3064_vm2 = vcmp.eq.f32.partialorder %v5589_v49, 0.0  ;;  %v3070_v43 = vsel %vm3069_vm4, %v5609_v37, %v5728_v2  ;;  %v5854_v5 = vadd.f32 %v2916_v29, %v5275_v13 }
 0x37f   : > { %v5833_v11 = vsel %vm3050_vm0, %v6136_v21, %v5644_v52  ;;  %v6137_v20 = vand.u32 2147483648, %v5589_v49  ;;  %vm3071_vm0 = vcmp.eq.f32.partialorder %v5609_v37, 0.0  ;;  %vm3076_vm1 = vcmp.eq.f32.partialorder %v5651_v3, inf  ;;  %v3486_v48 = vpop.eup %3485 }
 0x380   : > { %v5864_v25 = vsel %vm3071_vm0, %v3072_v31, %v3070_v43  ;;  %v3077_v56 = vsel %vm3076_vm1, %v5651_v3, %v5755_v12  ;;  %vm3078_vm3 = vcmp.eq.f32.partialorder %v5651_v3, 0.0  ;;  %v3079_v13 = vand.u32 2147483648, %v5651_v3  ;;  %v3488_v6 = vpop.eup %3487 }
 0x381   : > { %v5858_v52 = vsel %vm3064_vm2, %v6137_v20, %v3063_v47  ;;  %v3082_v49 = vmul.f32 %v3474_v61, %v5669_v22  ;;  %vm3083_vm4 = vcmp.eq.f32.partialorder %v5669_v22, inf  ;;  %vm3085_vm5 = vcmp.eq.f32.partialorder %v5669_v22, 0.0 }
 0x382   : > { %v3086_v2 = vand.u32 2147483648, %v5669_v22  ;;  %v2918_v37 = vmul.f32 %v3486_v48, %v5749_v19  ;;  %v5875_v31 = vsel %vm3078_vm3, %v3079_v13, %v3077_v56  ;;  %v3089_v12 = vmul.f32 %v3478_v14, %v5686_v10  ;;  %v3490_v34 = vpop.eup %3489 }
 0x383   : > { %vm3090_vm6 = vcmp.eq.f32.partialorder %v5686_v10, inf  ;;  %v2925_v3 = vmul.f32 %v3488_v6, %v5758_v28  ;;  %v3084_v18 = vsel %vm3083_vm4, %v5669_v22, %v3082_v49  ;;  %vm3092_vm7 = vcmp.eq.f32.partialorder %v5686_v10, 0.0  ;;  %v3492_v41 = vpop.eup %3491 }
 0x384   : > { %v3093_v61 = vand.u32 2147483648, %v5686_v10  ;;  %v2920_v50 = vsel %vm2919_vm12, %v5749_v19, %v2918_v37  ;;  %v5886_v63 = vsel %vm3085_vm5, %v3086_v2, %v3084_v18  ;;  %v3091_v24 = vsel %vm3090_vm6, %v5686_v10, %v3089_v12 }
 0x385   : > { %v3096_v14 = vmul.f32 %v3482_v1, %v5700_v59  ;;  %v2923_v7 = vsel %vm2921_vm13, %v2922_v17, %v2920_v50  ;;  %v2927_v22 = vsel %vm2926_vm14, %v5758_v28, %v2925_v3  ;;  %vm3097_vm8 = vcmp.eq.f32.partialorder %v5700_v59, inf }
 0x386   : > { %v5895_v60 = vsel %vm3092_vm7, %v3093_v61, %v3091_v24  ;;  %vm3144_vm9 = vcmp.lt.s32.totalorder %v5296_v23, 136  ;;  %v2930_v33 = vsel %vm2928_vm15, %v2929_v38, %v2927_v22  ;;  %v5902_v10 = vadd.f32 %v2923_v7, %v5285_v32 }
 0x387   : > { %v3098_v1 = vsel %vm3097_vm8, %v5700_v59, %v3096_v14  ;;  %vm3099_vm10 = vcmp.eq.f32.partialorder %v5700_v59, 0.0  ;;  %v5907_v19 = vadd.f32 %v2930_v33, %v5289_v40  ;;  %v3100_v17 = vand.u32 2147483648, %v5700_v59 }
 0x388   : > { %v3103_v35 = vmul.f32 %v3484_v46, %v5722_v16  ;;  %vm3104_vm11 = vcmp.eq.f32.partialorder %v5722_v16, inf  ;;  %vm3106_vm12 = vcmp.eq.f32.partialorder %v5722_v16, 0.0  ;;  %v3107_v28 = vand.u32 2147483648, %v5722_v16 }
 0x389   : > { %v3110_v32 = vmul.f32 %v3490_v34, %v5763_v44  ;;  %vm3111_vm13 = vcmp.eq.f32.partialorder %v5763_v44, inf  ;;  %v3101_v38 = vsel %vm3099_vm10, %v3100_v17, %v3098_v1  ;;  %vm3113_vm14 = vcmp.eq.f32.partialorder %v5763_v44, 0.0 }
 0x38a   : > { %v3105_v15 = vsel %vm3104_vm11, %v5722_v16, %v3103_v35  ;;  %v3114_v40 = vand.u32 2147483648, %v5763_v44  ;;  %v3117_v46 = vmul.f32 %v3492_v41, %v5765_v53  ;;  %vm3118_vm15 = vcmp.eq.f32.partialorder %v5765_v53, inf }
 0x38b   : > { %v3108_v59 = vsel %vm3106_vm12, %v3107_v28, %v3105_v15  ;;  %v3112_v21 = vsel %vm3111_vm13, %v5763_v44, %v3110_v32  ;;  %vm3120_vm2 = vcmp.eq.f32.partialorder %v5765_v53, 0.0  ;;  %v3121_v47 = vand.u32 2147483648, %v5765_v53 }
 0x38c   : > { %v3115_v29 = vsel %vm3113_vm14, %v3114_v40, %v3112_v21  ;;  %v3127_v43 = vsub.f32 %v5562_v8, %v5621_v26  ;;  %v3119_v16 = vsel %vm3118_vm15, %v5765_v53, %v3117_v46  ;;  %v3128_v20 = vsub.f32 %v5792_v4, %v5833_v11 }
 0x38d   : > { %v3129_v44 = vsub.f32 %v5795_v42, %v5840_v27  ;;  %v3130_v56 = vsub.f32 %v5803_v36, %v5858_v52  ;;  %v3122_v13 = vsel %vm3120_vm2, %v3121_v47, %v3119_v16  ;;  %v3131_v48 = vsub.f32 %v5806_v51, %v5864_v25 }
 0x38e   : > { %v3132_v49 = vsub.f32 %v5813_v55, %v5875_v31  ;;  %v3133_v8 = vsub.f32 %v5816_v30, %v5886_v63  ;;  %v3134_v26 = vsub.f32 %v5819_v62, %v5895_v60  ;;  %v3135_v53 = vsub.f32 %v5826_v39, %v3101_v38 }
 0x38f   : > { %v3136_v4 = vsub.f32 %v5854_v5, %v3108_v59  ;;  %v3137_v42 = vsub.f32 %v5902_v10, %v3115_v29  ;;  %v6138_v36 = vsub.f32 %v5451_v54, %v5462_v58  ;;  %v3138_v55 = vsub.f32 %v5907_v19, %v3122_v13  ;;  %v6141_v5 = vld [vmem:[#allocation16_spill] sm:$0xff]  ;;  %v6142_v54 = vld [vmem:[#allocation34_spill] sm:$0xff] }
 0x390   : > { %v6139_v30 = vsub.f32 %v5420_v0, %v5430_v45  ;;  %v6140_v39 = vsub.f32 %v5488_v57, %v5502_v9  ;;  %v6143_v58 = vsub.f32 %v6141_v5, %v6142_v54  ;;  %v3149_v0 = vsel %vm3144_vm9, %v3127_v43, 0.0 }
 0x391   : > { %v3146_v51 = vsel %vm3144_vm9, %v6138_v36, 0.0  ;;  %v3150_v57 = vsel %vm3144_vm9, %v3128_v20, 0.0  ;;  %v3166_v9 = vmul.f32 %v3149_v0, %v3149_v0  ;;  %v3151_v31 = vsel %vm3144_vm9, %v3129_v44, 0.0 }
 0x392   : > { %v3145_v62 = vsel %vm3144_vm9, %v6139_v30, 0.0  ;;  %v3147_v11 = vsel %vm3144_vm9, %v6140_v39, 0.0  ;;  %v3163_v27 = vmul.f32 %v3146_v51, %v3146_v51  ;;  %v3148_v52 = vsel %vm3144_vm9, %v6143_v58, 0.0 }
 0x393   : > { %v3162_v25 = vmul.f32 %v3145_v62, %v3145_v62  ;;  %v3164_v2 = vmul.f32 %v3147_v11, %v3147_v11  ;;  %v3165_v45 = vmul.f32 %v3148_v52, %v3148_v52  ;;  %v3167_v12 = vmul.f32 %v3150_v57, %v3150_v57 }
 0x394   : > { %v3152_v18 = vsel %vm3144_vm9, %v3130_v56, 0.0  ;;  %v3168_v61 = vmul.f32 %v3151_v31, %v3151_v31  ;;  %v3153_v50 = vsel %vm3144_vm9, %v3131_v48, 0.0  ;;  %v3154_v14 = vsel %vm3144_vm9, %v3132_v49, 0.0 }
 0x395   : > { %v3178_v6 = vadd.f32 %v3163_v27, %v3162_v25  ;;  %v3169_v63 = vmul.f32 %v3152_v18, %v3152_v18  ;;  %v3170_v41 = vmul.f32 %v3153_v50, %v3153_v50  ;;  %v3155_v22 = vsel %vm3144_vm9, %v3133_v8, 0.0 }
 0x396   : > { %v3171_v60 = vmul.f32 %v3154_v14, %v3154_v14  ;;  %v3156_v10 = vsel %vm3144_vm9, %v3134_v26, 0.0  ;;  %v3172_v1 = vmul.f32 %v3155_v22, %v3155_v22  ;;  %v3157_v17 = vsel %vm3144_vm9, %v3135_v53, 0.0 }
 0x397   : > { %v3179_v37 = vadd.f32 %v3178_v6, %v3164_v2  ;;  %v3173_v35 = vmul.f32 %v3156_v10, %v3156_v10  ;;  %v3158_v32 = vsel %vm3144_vm9, %v3136_v4, 0.0  ;;  %v3174_v38 = vmul.f32 %v3157_v17, %v3157_v17 }
 0x398   : > { %v3159_v40 = vsel %vm3144_vm9, %v3137_v42, 0.0  ;;  %v3175_v59 = vmul.f32 %v3158_v32, %v3158_v32  ;;  %v3160_v46 = vsel %vm3144_vm9, %v3138_v55, 0.0 }
 0x399   : > { %v3180_v3 = vadd.f32 %v3179_v37, %v3165_v45  ;;  %v3176_v29 = vmul.f32 %v3159_v40, %v3159_v40  ;;  %v3177_v43 = vmul.f32 %v3160_v46, %v3160_v46 }
 0x39b   : > { %v3181_v34 = vadd.f32 %v3180_v3, %v3166_v9 }
 0x39d   : > { %v3182_v24 = vadd.f32 %v3181_v34, %v3167_v12 }
 0x39f   : > { %v3183_v7 = vadd.f32 %v3182_v24, %v3168_v61 }
 0x3a1   : > { %v3184_v33 = vadd.f32 %v3183_v7, %v3169_v63 }
 0x3a3   : > { %v3185_v19 = vadd.f32 %v3184_v33, %v3170_v41 }
 0x3a5   : > { %v3186_v28 = vadd.f32 %v3185_v19, %v3171_v60 }
 0x3a7   : > { %v3187_v15 = vadd.f32 %v3186_v28, %v3172_v1 }
 0x3a9   : > { %v3188_v21 = vadd.f32 %v3187_v15, %v3173_v35 }
 0x3ab   : > { %v3189_v47 = vadd.f32 %v3188_v21, %v3174_v38 }
 0x3ad   : > { %v3190_v16 = vadd.f32 %v3189_v47, %v3175_v59 }
 0x3af   : > { %v3191_v20 = vadd.f32 %v3190_v16, %v3176_v29 }
 0x3b1   : > { %v3192_v44 = vadd.f32 %v3191_v20, %v3177_v43 }
 0x3b3   : > { %3193 = vadd.xlane.f32.xlu0 %v3192_v44 }
 0x43c   : > { %v3194_v56 = vpop.xlane.xlu0 %3193 }
 0x43d   : > { %v3195_v13 = vrot.slane %v3194_v56, 4 }
 0x43f   : > { %v3196_v48 = vadd.f32 %v3195_v13, %v3194_v56 }
 0x441   : > { %v3197_v49 = vrot.slane %v3196_v48, 2 }
 0x443   : > { %v3198_v8 = vadd.f32 %v3197_v49, %v3196_v48 }
 0x445   : > { %v3199_v26 = vrot.slane %v3198_v8, 1 }
 0x447   : > { %v3200_v53 = vadd.f32 %v3199_v26, %v3198_v8 }
 0x449   : > { %3320 = vpush %v3200_v53 }
 0x47a   : > { %s3321_s12 = spop %3320 }
 0x47b   : > { %s3202_s25 = sadd.f32 %s3321_s12, %s3161_s10 }
 0x47d   : > { %3204 = sst [smem:[#allocation2]] %s3202_s25  ;;  %s3210_s30 = smul.f32 5.7444853e-05, %s3202_s25 }
 0x47f   : > { %3333 = sst [smem:[#allocation9]] (%p3353_p3), %s3210_s30 }
 0x480   : > { %3335 = dma.smem_to_hbm (%p3353_p3), %s3899_s27, 16, %s6011_s3, [#allocation5]  }
 0x481   : > { %3870 = dma.done.wait (%p3353_p3), [#allocation5], 16  }
 0x482   : > { %3872 = vsyncadd (%p3353_p3), [#allocation5], 4294967280 }
 0x483   : > { %3226 = sfence }
 0x484 PF: > { %p17_p6 = scmp.ge.s32.totalorder %s3942_s17, 4   ;;  %s6145_s12 = smov %s3879_s13 }
 0x485   : > { %s6146_s13 = smov %s3883_s14  ;;  %s6147_s14 = smov %s3952_s20 }
 0x486   : > { %s6148_s15 = smov %s3942_s17  ;;  %19 = sbr.rel (!%p17_p6) target bundleno = 6 (0x6), region = 97 }
 0x48b   :  { %3232 = vsyncpa [#allocation4], 1 }
 0x48c   :  { %3234 = vsyncpa [#allocation4 + $0x1], 1 }
 0x48d   :  { %3235 = vsyncpa [#allocation7], 1 }
 0x48e   :  { %3237 = vsyncpa [#allocation7 + $0x1], 1 }
 0x48f   :  { %3238 = vsyncpa [#allocation5], 1 }
 0x490   :  { %3240 = vsyncpa [#allocation5 + $0x1], 1 }

</bundles_post_ra>
